<compile_context>
chip_gen: v5e
topology: v5e:2x2
jax: 0.10.0
libtpu: 0.0.40
codegen_flags: <defaults>
</compile_context>

<pallas_src>
import functools

import numpy as np

import jax
import jax.numpy as jnp
from jax.experimental import pallas as pl
from jax.experimental.pallas import tpu as pltpu


# ---------------------------------------------------------------------------
# Fused Pallas kernel: whole network forward
# ---------------------------------------------------------------------------
def _lenet_kernel(x_ref, bw1_ref, b1_ref, bw2_ref, b2_ref,
                  wf1_ref, bf1_ref, wf2_ref, bf2_ref, wf3_ref, bf3_ref,
                  out_ref, *, batch):
    f32 = jnp.float32
    rows = 8 * batch          # rows per (h mod 4) residue group of the input
    L1 = rows - 1             # rows carried through conv1 / pool1 (junk-carry)
    L2 = rows - 3             # rows carried through conv2 / pool2
    L3 = rows - 7             # rows carried through the fc chain

    # x_all row = r*rows + 8*n + q, lane = 3*w + c  ==  x[n, c, 4*q + r, w]
    x_all = x_ref[...]                                            # (4*rows, 96)

    # -------- conv1 (5x5, 3->6) + bias + ReLU + 2x2 max-pool ---------------
    # acc1[r1][s][8*n + Q, 6*X + o] = conv1[n, o, y = 4*Q + r1, x = 2*X + s]
    acc1 = [[None, None] for _ in range(4)]
    for kh in range(5):
        lhs = {}
        for r1 in range(4):
            rp, q0 = (r1 + kh) % 4, (r1 + kh) // 4
            base = rp * rows + q0
            lhs[r1] = x_all[base:base + L1, :]                    # (L1, 96)
        for s in range(2):
            w = bw1_ref[5 * s + kh]                               # (96, 84)
            for r1 in range(4):
                d = jnp.dot(lhs[r1], w, preferred_element_type=f32)
                a = acc1[r1][s]
                acc1[r1][s] = d if a is None else a + d

    b1 = b1_ref[...]                                              # (1, 84)
    pooled1 = []    # [p][8*n + Q, 6*X + c] = pool1[n, c, 2*Q + p, X]
    for p in range(2):
        m = jnp.maximum(jnp.maximum(acc1[2 * p][0], acc1[2 * p][1]),
                        jnp.maximum(acc1[2 * p + 1][0], acc1[2 * p + 1][1]))
        pooled1.append(jnp.maximum(m + b1, 0.0))                  # (L1, 84)

    # -------- conv2 (5x5, 6->16) + bias + ReLU + 2x2 max-pool --------------
    # acc2[t][u][8*n + Y, 16*X + o] = conv2[n, o, y = 2*Y + t, x = 2*X + u]
    acc2 = [[None, None] for _ in range(2)]
    for kh in range(5):
        lhs = {}
        for t in range(2):
            pp, q0 = (t + kh) % 2, (t + kh) // 2
            lhs[t] = pooled1[pp][q0:q0 + L2, :]                   # (L2, 84)
        for u in range(2):
            w = bw2_ref[5 * u + kh]                               # (84, 80)
            for t in range(2):
                d = jnp.dot(lhs[t], w, preferred_element_type=f32)
                a = acc2[t][u]
                acc2[t][u] = d if a is None else a + d

    b2 = b2_ref[...]                                              # (1, 80)
    m2 = jnp.maximum(jnp.maximum(acc2[0][0], acc2[0][1]),
                     jnp.maximum(acc2[1][0], acc2[1][1]))
    # pooled2[8*n + Y, 16*X + c] = pool2[n, c, Y, X]
    pooled2 = jnp.maximum(m2 + b2, 0.0)                           # (L2, 80)

    # -------- flatten + fc1 -> fc2 -> fc3 ----------------------------------
    acc = None
    for y2 in range(5):
        d = jnp.dot(pooled2[y2:y2 + L3, :], wf1_ref[y2],
                    preferred_element_type=f32)                   # (L3, 120)
        acc = d if acc is None else acc + d
    h = jnp.maximum(acc + bf1_ref[...], 0.0)                      # (L3, 120)
    h = jnp.maximum(jnp.dot(h, wf2_ref[...], preferred_element_type=f32)
                    + bf2_ref[...], 0.0)                          # (L3, 84)
    y = jnp.dot(h, wf3_ref[...], preferred_element_type=f32) + bf3_ref[...]

    for n in range(batch):                # rows 8*n hold the real samples
        out_ref[n:n + 1, :] = y[8 * n:8 * n + 1, :]


def _full_spec(shape):
    nd = len(shape)
    return pl.BlockSpec(shape, lambda i: (0,) * nd)


@jax.jit
def net_forward(x, prep):
    """Forward of Net.  x: (N, 3, 32, 32) float32 -> logits (N, 10)."""
    n = x.shape[0]
    # Tiny XLA-side re-layout of the 24 KB input: NCHW -> NHWC, merge (W, C)
    # into lanes, group rows by (h mod 4) so every in-kernel row access is a
    # contiguous static slice.  Everything else runs inside one Pallas kernel.
    x_nhwc = jnp.transpose(x.astype(jnp.float32), (0, 2, 3, 1))   # (N,32,32,3)
    xr = (x_nhwc.reshape(n, 8, 4, 96)
          .transpose(2, 0, 1, 3)
          .reshape(4 * 8 * n, 96))                                # (32N, 96)

    args = (xr, prep["bw1"], prep["b1"], prep["bw2"], prep["b2"],
            prep["wfc1"], prep["bfc1"], prep["wfc2"], prep["bfc2"],
            prep["wfc3"], prep["bfc3"])
    return pl.pallas_call(
        functools.partial(_lenet_kernel, batch=n),
        out_shape=jax.ShapeDtypeStruct((n, 10), jnp.float32),
        grid=(1,),
        in_specs=[_full_spec(a.shape) for a in args],
        out_specs=_full_spec((n, 10)),
        compiler_params=pltpu.CompilerParams(
            dimension_semantics=("arbitrary",)),
    )(*args)


# ---------------------------------------------------------------------------
# One-time host-side parameter re-layout (Toeplitz weight slabs etc.)
# ---------------------------------------------------------------------------
def prepare_params(params):
    w1 = np.asarray(params["conv1_w"], np.float32)   # (6, 3, 5, 5)  [o, c, kh, kw]
    b1 = np.asarray(params["conv1_b"], np.float32)
    w2 = np.asarray(params["conv2_w"], np.float32)   # (16, 6, 5, 5)
    b2 = np.asarray(params["conv2_b"], np.float32)
    f1 = np.asarray(params["fc1_w"], np.float32)     # (120, 400)
    g1 = np.asarray(params["fc1_b"], np.float32)
    f2 = np.asarray(params["fc2_w"], np.float32)     # (84, 120)
    g2 = np.asarray(params["fc2_b"], np.float32)
    f3 = np.asarray(params["fc3_w"], np.float32)     # (10, 84)
    g3 = np.asarray(params["fc3_b"], np.float32)

    # conv1 slab: bw1[5*s + kh, 3*w + c, 6*X + o] = w1[o, c, kh, w - (2X + s)]
    bw1 = np.zeros((2, 5, 32, 3, 14, 6), np.float32)
    for s in range(2):
        for kh in range(5):
            for kw in range(5):
                for X in range(14):
                    bw1[s, kh, 2 * X + s + kw, :, X, :] = w1[:, :, kh, kw].T
    bw1 = bw1.reshape(10, 96, 84)

    # conv2 slab: bw2[5*u + kh, 6*X1 + c, 16*X2 + o] = w2[o, c, kh, X1 - (2X2 + u)]
    bw2 = np.zeros((2, 5, 14, 6, 5, 16), np.float32)
    for u in range(2):
        for kh in range(5):
            for kw in range(5):
                for X in range(5):
                    bw2[u, kh, 2 * X + u + kw, :, X, :] = w2[:, :, kh, kw].T
    bw2 = bw2.reshape(10, 84, 80)

    # fc1: permute torch's (c, h, w) flatten order to the kernel's (h, w, c)
    # lane order and split by h (the pooled row index).
    wfc1 = f1.reshape(120, 16, 5, 5).transpose(2, 3, 1, 0).reshape(5, 80, 120)

    prep = {
        "bw1": bw1, "b1": np.tile(b1, 14).reshape(1, 84),
        "bw2": bw2, "b2": np.tile(b2, 5).reshape(1, 80),
        "wfc1": wfc1, "bfc1": g1.reshape(1, 120),
        "wfc2": f2.T.copy(), "bfc2": g2.reshape(1, 84),
        "wfc3": f3.T.copy(), "bfc3": g3.reshape(1, 10),
    }
    return {k: jnp.asarray(v) for k, v in prep.items()}


# ---------------------------------------------------------------------------
# Parameters (deterministic, PyTorch-style uniform(-1/sqrt(fan_in), +...))
# ---------------------------------------------------------------------------
def init_params(key):
    def uniform(k, shape, fan_in):
        bound = 1.0 / np.sqrt(float(fan_in))
        return jax.random.uniform(k, shape, jnp.float32, -bound, bound)

    keys = jax.random.split(key, 10)
    return {
        "conv1_w": uniform(keys[0], (6, 3, 5, 5), 3 * 5 * 5),
        "conv1_b": uniform(keys[1], (6,), 3 * 5 * 5),
        "conv2_w": uniform(keys[2], (16, 6, 5, 5), 6 * 5 * 5),
        "conv2_b": uniform(keys[3], (16,), 6 * 5 * 5),
        "fc1_w": uniform(keys[4], (120, 16 * 5 * 5), 16 * 5 * 5),
        "fc1_b": uniform(keys[5], (120,), 16 * 5 * 5),
        "fc2_w": uniform(keys[6], (84, 120), 120),
        "fc2_b": uniform(keys[7], (84,), 120),
        "fc3_w": uniform(keys[8], (10, 84), 84),
        "fc3_b": uniform(keys[9], (10,), 84),
    }


# ---------------------------------------------------------------------------
# Pure-XLA reference (mirrors the PyTorch module) for a sanity check
# ---------------------------------------------------------------------------
def _reference_forward(x, params):
    dn = ("NCHW", "OIHW", "NCHW")
    hp = jax.lax.Precision.HIGHEST

    def conv(v, w):
        return jax.lax.conv_general_dilated(
            v, w, (1, 1), "VALID", dimension_numbers=dn, precision=hp)

    def pool(v):
        return jax.lax.reduce_window(
            v, -jnp.inf, jax.lax.max, (1, 1, 2, 2), (1, 1, 2, 2), "VALID")

    y = pool(jnp.maximum(conv(x, params["conv1_w"])
                         + params["conv1_b"][None, :, None, None], 0.0))
    y = pool(jnp.maximum(conv(y, params["conv2_w"])
                         + params["conv2_b"][None, :, None, None], 0.0))
    y = y.reshape(y.shape[0], -1)
    y = jnp.maximum(jnp.dot(y, params["fc1_w"].T, precision=hp)
                    + params["fc1_b"], 0.0)
    y = jnp.maximum(jnp.dot(y, params["fc2_w"].T, precision=hp)
                    + params["fc2_b"], 0.0)
    return jnp.dot(y, params["fc3_w"].T, precision=hp) + params["fc3_b"]


if __name__ == "__main__":
    key = jax.random.PRNGKey(0)
    k_param, k_x = jax.random.split(key)
    params = init_params(k_param)
    prep = prepare_params(params)

    # Input shape fixed by fc1 (16*5*5): CIFAR-style (N, 3, 32, 32), batch = 2.
    x = jax.random.normal(k_x, (2, 3, 32, 32), dtype=jnp.float32)

    out = jax.block_until_ready(net_forward(x, prep))
    assert out.shape == (2, 10)

    ref = jax.block_until_ready(_reference_forward(x, params))
    np.testing.assert_allclose(np.asarray(out), np.asarray(ref),
                               rtol=0.1, atol=0.1)

    print("KERNEL_OK")
</pallas_src>

<mosaic_0001>
module attributes {stable_mosaic.version = 11 : i64} {
  func.func @_lenet_kernel(%arg0: i32, %arg1: memref<64x96xf32, #tpu.memory_space<vmem>>, %arg2: memref<10x96x84xf32, #tpu.memory_space<vmem>>, %arg3: memref<1x84xf32, #tpu.memory_space<vmem>>, %arg4: memref<10x84x80xf32, #tpu.memory_space<vmem>>, %arg5: memref<1x80xf32, #tpu.memory_space<vmem>>, %arg6: memref<5x80x120xf32, #tpu.memory_space<vmem>>, %arg7: memref<1x120xf32, #tpu.memory_space<vmem>>, %arg8: memref<120x84xf32, #tpu.memory_space<vmem>>, %arg9: memref<1x84xf32, #tpu.memory_space<vmem>>, %arg10: memref<84x10xf32, #tpu.memory_space<vmem>>, %arg11: memref<1x10xf32, #tpu.memory_space<vmem>>, %arg12: memref<2x10xf32, #tpu.memory_space<vmem>>) attributes {dimension_semantics = [#tpu.dimension_semantics<arbitrary>], iteration_bounds = array<i64: 1>, scalar_prefetch = 0 : i64, scratch_operands = 0 : i64, tpu.core_type = #tpu.core_type<tc>, window_params = [{pipeline_mode = #tpu.pipeline_mode<synchronous>, transform_indices = @transform_0, window_bounds = array<i64: 64, 96>}, {pipeline_mode = #tpu.pipeline_mode<synchronous>, transform_indices = @transform_1, window_bounds = array<i64: 10, 96, 84>}, {pipeline_mode = #tpu.pipeline_mode<synchronous>, transform_indices = @transform_2, window_bounds = array<i64: 1, 84>}, {pipeline_mode = #tpu.pipeline_mode<synchronous>, transform_indices = @transform_3, window_bounds = array<i64: 10, 84, 80>}, {pipeline_mode = #tpu.pipeline_mode<synchronous>, transform_indices = @transform_4, window_bounds = array<i64: 1, 80>}, {pipeline_mode = #tpu.pipeline_mode<synchronous>, transform_indices = @transform_5, window_bounds = array<i64: 5, 80, 120>}, {pipeline_mode = #tpu.pipeline_mode<synchronous>, transform_indices = @transform_6, window_bounds = array<i64: 1, 120>}, {pipeline_mode = #tpu.pipeline_mode<synchronous>, transform_indices = @transform_7, window_bounds = array<i64: 120, 84>}, {pipeline_mode = #tpu.pipeline_mode<synchronous>, transform_indices = @transform_8, window_bounds = array<i64: 1, 84>}, {pipeline_mode = #tpu.pipeline_mode<synchronous>, transform_indices = @transform_9, window_bounds = array<i64: 84, 10>}, {pipeline_mode = #tpu.pipeline_mode<synchronous>, transform_indices = @transform_10, window_bounds = array<i64: 1, 10>}, {pipeline_mode = #tpu.pipeline_mode<synchronous>, transform_indices = @transform_11, window_bounds = array<i64: 2, 10>}]} {
    %c0 = arith.constant 0 : index
    %c0_0 = arith.constant 0 : index
    %0 = vector.load %arg1[%c0, %c0_0] : memref<64x96xf32, #tpu.memory_space<vmem>>, vector<64x96xf32>
    %1 = vector.extract_strided_slice %0 {offsets = [0, 0], sizes = [15, 96], strides = [1, 1]} : vector<64x96xf32> to vector<15x96xf32>
    %2 = vector.extract_strided_slice %0 {offsets = [16, 0], sizes = [15, 96], strides = [1, 1]} : vector<64x96xf32> to vector<15x96xf32>
    %3 = vector.extract_strided_slice %0 {offsets = [32, 0], sizes = [15, 96], strides = [1, 1]} : vector<64x96xf32> to vector<15x96xf32>
    %4 = vector.extract_strided_slice %0 {offsets = [48, 0], sizes = [15, 96], strides = [1, 1]} : vector<64x96xf32> to vector<15x96xf32>
    %c0_1 = arith.constant 0 : index
    %c0_2 = arith.constant 0 : index
    %c0_3 = arith.constant 0 : index
    %5 = vector.load %arg2[%c0_1, %c0_2, %c0_3] : memref<10x96x84xf32, #tpu.memory_space<vmem>>, vector<1x96x84xf32>
    %6 = vector.shape_cast %5 : vector<1x96x84xf32> to vector<96x84xf32>
    %cst = arith.constant dense<0.000000e+00> : vector<15x84xf32>
    %7 = tpu.matmul %1, %6, %cst {dimension_numbers = #tpu.dot_dimension_numbers<[1], [0], [0], [1], [0, 0, 1, 1], [], []>} : vector<15x96xf32>, vector<96x84xf32>, vector<15x84xf32> -> vector<15x84xf32>
    %cst_4 = arith.constant dense<0.000000e+00> : vector<15x84xf32>
    %8 = tpu.matmul %2, %6, %cst_4 {dimension_numbers = #tpu.dot_dimension_numbers<[1], [0], [0], [1], [0, 0, 1, 1], [], []>} : vector<15x96xf32>, vector<96x84xf32>, vector<15x84xf32> -> vector<15x84xf32>
    %cst_5 = arith.constant dense<0.000000e+00> : vector<15x84xf32>
    %9 = tpu.matmul %3, %6, %cst_5 {dimension_numbers = #tpu.dot_dimension_numbers<[1], [0], [0], [1], [0, 0, 1, 1], [], []>} : vector<15x96xf32>, vector<96x84xf32>, vector<15x84xf32> -> vector<15x84xf32>
    %cst_6 = arith.constant dense<0.000000e+00> : vector<15x84xf32>
    %10 = tpu.matmul %4, %6, %cst_6 {dimension_numbers = #tpu.dot_dimension_numbers<[1], [0], [0], [1], [0, 0, 1, 1], [], []>} : vector<15x96xf32>, vector<96x84xf32>, vector<15x84xf32> -> vector<15x84xf32>
    %c5 = arith.constant 5 : index
    %c0_7 = arith.constant 0 : index
    %c0_8 = arith.constant 0 : index
    %11 = vector.load %arg2[%c5, %c0_7, %c0_8] : memref<10x96x84xf32, #tpu.memory_space<vmem>>, vector<1x96x84xf32>
    %12 = vector.shape_cast %11 : vector<1x96x84xf32> to vector<96x84xf32>
    %cst_9 = arith.constant dense<0.000000e+00> : vector<15x84xf32>
    %13 = tpu.matmul %1, %12, %cst_9 {dimension_numbers = #tpu.dot_dimension_numbers<[1], [0], [0], [1], [0, 0, 1, 1], [], []>} : vector<15x96xf32>, vector<96x84xf32>, vector<15x84xf32> -> vector<15x84xf32>
    %cst_10 = arith.constant dense<0.000000e+00> : vector<15x84xf32>
    %14 = tpu.matmul %2, %12, %cst_10 {dimension_numbers = #tpu.dot_dimension_numbers<[1], [0], [0], [1], [0, 0, 1, 1], [], []>} : vector<15x96xf32>, vector<96x84xf32>, vector<15x84xf32> -> vector<15x84xf32>
    %cst_11 = arith.constant dense<0.000000e+00> : vector<15x84xf32>
    %15 = tpu.matmul %3, %12, %cst_11 {dimension_numbers = #tpu.dot_dimension_numbers<[1], [0], [0], [1], [0, 0, 1, 1], [], []>} : vector<15x96xf32>, vector<96x84xf32>, vector<15x84xf32> -> vector<15x84xf32>
    %cst_12 = arith.constant dense<0.000000e+00> : vector<15x84xf32>
    %16 = tpu.matmul %4, %12, %cst_12 {dimension_numbers = #tpu.dot_dimension_numbers<[1], [0], [0], [1], [0, 0, 1, 1], [], []>} : vector<15x96xf32>, vector<96x84xf32>, vector<15x84xf32> -> vector<15x84xf32>
    %17 = vector.extract_strided_slice %0 {offsets = [16, 0], sizes = [15, 96], strides = [1, 1]} : vector<64x96xf32> to vector<15x96xf32>
    %18 = vector.extract_strided_slice %0 {offsets = [32, 0], sizes = [15, 96], strides = [1, 1]} : vector<64x96xf32> to vector<15x96xf32>
    %19 = vector.extract_strided_slice %0 {offsets = [48, 0], sizes = [15, 96], strides = [1, 1]} : vector<64x96xf32> to vector<15x96xf32>
    %20 = vector.extract_strided_slice %0 {offsets = [1, 0], sizes = [15, 96], strides = [1, 1]} : vector<64x96xf32> to vector<15x96xf32>
    %c1 = arith.constant 1 : index
    %c0_13 = arith.constant 0 : index
    %c0_14 = arith.constant 0 : index
    %21 = vector.load %arg2[%c1, %c0_13, %c0_14] : memref<10x96x84xf32, #tpu.memory_space<vmem>>, vector<1x96x84xf32>
    %22 = vector.shape_cast %21 : vector<1x96x84xf32> to vector<96x84xf32>
    %cst_15 = arith.constant dense<0.000000e+00> : vector<15x84xf32>
    %23 = tpu.matmul %17, %22, %cst_15 {dimension_numbers = #tpu.dot_dimension_numbers<[1], [0], [0], [1], [0, 0, 1, 1], [], []>} : vector<15x96xf32>, vector<96x84xf32>, vector<15x84xf32> -> vector<15x84xf32>
    %24 = arith.addf %7, %23 : vector<15x84xf32>
    %cst_16 = arith.constant dense<0.000000e+00> : vector<15x84xf32>
    %25 = tpu.matmul %18, %22, %cst_16 {dimension_numbers = #tpu.dot_dimension_numbers<[1], [0], [0], [1], [0, 0, 1, 1], [], []>} : vector<15x96xf32>, vector<96x84xf32>, vector<15x84xf32> -> vector<15x84xf32>
    %26 = arith.addf %8, %25 : vector<15x84xf32>
    %cst_17 = arith.constant dense<0.000000e+00> : vector<15x84xf32>
    %27 = tpu.matmul %19, %22, %cst_17 {dimension_numbers = #tpu.dot_dimension_numbers<[1], [0], [0], [1], [0, 0, 1, 1], [], []>} : vector<15x96xf32>, vector<96x84xf32>, vector<15x84xf32> -> vector<15x84xf32>
    %28 = arith.addf %9, %27 : vector<15x84xf32>
    %cst_18 = arith.constant dense<0.000000e+00> : vector<15x84xf32>
    %29 = tpu.matmul %20, %22, %cst_18 {dimension_numbers = #tpu.dot_dimension_numbers<[1], [0], [0], [1], [0, 0, 1, 1], [], []>} : vector<15x96xf32>, vector<96x84xf32>, vector<15x84xf32> -> vector<15x84xf32>
    %30 = arith.addf %10, %29 : vector<15x84xf32>
    %c6 = arith.constant 6 : index
    %c0_19 = arith.constant 0 : index
    %c0_20 = arith.constant 0 : index
    %31 = vector.load %arg2[%c6, %c0_19, %c0_20] : memref<10x96x84xf32, #tpu.memory_space<vmem>>, vector<1x96x84xf32>
    %32 = vector.shape_cast %31 : vector<1x96x84xf32> to vector<96x84xf32>
    %cst_21 = arith.constant dense<0.000000e+00> : vector<15x84xf32>
    %33 = tpu.matmul %17, %32, %cst_21 {dimension_numbers = #tpu.dot_dimension_numbers<[1], [0], [0], [1], [0, 0, 1, 1], [], []>} : vector<15x96xf32>, vector<96x84xf32>, vector<15x84xf32> -> vector<15x84xf32>
    %34 = arith.addf %13, %33 : vector<15x84xf32>
    %cst_22 = arith.constant dense<0.000000e+00> : vector<15x84xf32>
    %35 = tpu.matmul %18, %32, %cst_22 {dimension_numbers = #tpu.dot_dimension_numbers<[1], [0], [0], [1], [0, 0, 1, 1], [], []>} : vector<15x96xf32>, vector<96x84xf32>, vector<15x84xf32> -> vector<15x84xf32>
    %36 = arith.addf %14, %35 : vector<15x84xf32>
    %cst_23 = arith.constant dense<0.000000e+00> : vector<15x84xf32>
    %37 = tpu.matmul %19, %32, %cst_23 {dimension_numbers = #tpu.dot_dimension_numbers<[1], [0], [0], [1], [0, 0, 1, 1], [], []>} : vector<15x96xf32>, vector<96x84xf32>, vector<15x84xf32> -> vector<15x84xf32>
    %38 = arith.addf %15, %37 : vector<15x84xf32>
    %cst_24 = arith.constant dense<0.000000e+00> : vector<15x84xf32>
    %39 = tpu.matmul %20, %32, %cst_24 {dimension_numbers = #tpu.dot_dimension_numbers<[1], [0], [0], [1], [0, 0, 1, 1], [], []>} : vector<15x96xf32>, vector<96x84xf32>, vector<15x84xf32> -> vector<15x84xf32>
    %40 = arith.addf %16, %39 : vector<15x84xf32>
    %41 = vector.extract_strided_slice %0 {offsets = [32, 0], sizes = [15, 96], strides = [1, 1]} : vector<64x96xf32> to vector<15x96xf32>
    %42 = vector.extract_strided_slice %0 {offsets = [48, 0], sizes = [15, 96], strides = [1, 1]} : vector<64x96xf32> to vector<15x96xf32>
    %43 = vector.extract_strided_slice %0 {offsets = [1, 0], sizes = [15, 96], strides = [1, 1]} : vector<64x96xf32> to vector<15x96xf32>
    %44 = vector.extract_strided_slice %0 {offsets = [17, 0], sizes = [15, 96], strides = [1, 1]} : vector<64x96xf32> to vector<15x96xf32>
    %c2 = arith.constant 2 : index
    %c0_25 = arith.constant 0 : index
    %c0_26 = arith.constant 0 : index
    %45 = vector.load %arg2[%c2, %c0_25, %c0_26] : memref<10x96x84xf32, #tpu.memory_space<vmem>>, vector<1x96x84xf32>
    %46 = vector.shape_cast %45 : vector<1x96x84xf32> to vector<96x84xf32>
    %cst_27 = arith.constant dense<0.000000e+00> : vector<15x84xf32>
    %47 = tpu.matmul %41, %46, %cst_27 {dimension_numbers = #tpu.dot_dimension_numbers<[1], [0], [0], [1], [0, 0, 1, 1], [], []>} : vector<15x96xf32>, vector<96x84xf32>, vector<15x84xf32> -> vector<15x84xf32>
    %48 = arith.addf %24, %47 : vector<15x84xf32>
    %cst_28 = arith.constant dense<0.000000e+00> : vector<15x84xf32>
    %49 = tpu.matmul %42, %46, %cst_28 {dimension_numbers = #tpu.dot_dimension_numbers<[1], [0], [0], [1], [0, 0, 1, 1], [], []>} : vector<15x96xf32>, vector<96x84xf32>, vector<15x84xf32> -> vector<15x84xf32>
    %50 = arith.addf %26, %49 : vector<15x84xf32>
    %cst_29 = arith.constant dense<0.000000e+00> : vector<15x84xf32>
    %51 = tpu.matmul %43, %46, %cst_29 {dimension_numbers = #tpu.dot_dimension_numbers<[1], [0], [0], [1], [0, 0, 1, 1], [], []>} : vector<15x96xf32>, vector<96x84xf32>, vector<15x84xf32> -> vector<15x84xf32>
    %52 = arith.addf %28, %51 : vector<15x84xf32>
    %cst_30 = arith.constant dense<0.000000e+00> : vector<15x84xf32>
    %53 = tpu.matmul %44, %46, %cst_30 {dimension_numbers = #tpu.dot_dimension_numbers<[1], [0], [0], [1], [0, 0, 1, 1], [], []>} : vector<15x96xf32>, vector<96x84xf32>, vector<15x84xf32> -> vector<15x84xf32>
    %54 = arith.addf %30, %53 : vector<15x84xf32>
    %c7 = arith.constant 7 : index
    %c0_31 = arith.constant 0 : index
    %c0_32 = arith.constant 0 : index
    %55 = vector.load %arg2[%c7, %c0_31, %c0_32] : memref<10x96x84xf32, #tpu.memory_space<vmem>>, vector<1x96x84xf32>
    %56 = vector.shape_cast %55 : vector<1x96x84xf32> to vector<96x84xf32>
    %cst_33 = arith.constant dense<0.000000e+00> : vector<15x84xf32>
    %57 = tpu.matmul %41, %56, %cst_33 {dimension_numbers = #tpu.dot_dimension_numbers<[1], [0], [0], [1], [0, 0, 1, 1], [], []>} : vector<15x96xf32>, vector<96x84xf32>, vector<15x84xf32> -> vector<15x84xf32>
    %58 = arith.addf %34, %57 : vector<15x84xf32>
    %cst_34 = arith.constant dense<0.000000e+00> : vector<15x84xf32>
    %59 = tpu.matmul %42, %56, %cst_34 {dimension_numbers = #tpu.dot_dimension_numbers<[1], [0], [0], [1], [0, 0, 1, 1], [], []>} : vector<15x96xf32>, vector<96x84xf32>, vector<15x84xf32> -> vector<15x84xf32>
    %60 = arith.addf %36, %59 : vector<15x84xf32>
    %cst_35 = arith.constant dense<0.000000e+00> : vector<15x84xf32>
    %61 = tpu.matmul %43, %56, %cst_35 {dimension_numbers = #tpu.dot_dimension_numbers<[1], [0], [0], [1], [0, 0, 1, 1], [], []>} : vector<15x96xf32>, vector<96x84xf32>, vector<15x84xf32> -> vector<15x84xf32>
    %62 = arith.addf %38, %61 : vector<15x84xf32>
    %cst_36 = arith.constant dense<0.000000e+00> : vector<15x84xf32>
    %63 = tpu.matmul %44, %56, %cst_36 {dimension_numbers = #tpu.dot_dimension_numbers<[1], [0], [0], [1], [0, 0, 1, 1], [], []>} : vector<15x96xf32>, vector<96x84xf32>, vector<15x84xf32> -> vector<15x84xf32>
    %64 = arith.addf %40, %63 : vector<15x84xf32>
    %65 = vector.extract_strided_slice %0 {offsets = [48, 0], sizes = [15, 96], strides = [1, 1]} : vector<64x96xf32> to vector<15x96xf32>
    %66 = vector.extract_strided_slice %0 {offsets = [1, 0], sizes = [15, 96], strides = [1, 1]} : vector<64x96xf32> to vector<15x96xf32>
    %67 = vector.extract_strided_slice %0 {offsets = [17, 0], sizes = [15, 96], strides = [1, 1]} : vector<64x96xf32> to vector<15x96xf32>
    %68 = vector.extract_strided_slice %0 {offsets = [33, 0], sizes = [15, 96], strides = [1, 1]} : vector<64x96xf32> to vector<15x96xf32>
    %c3 = arith.constant 3 : index
    %c0_37 = arith.constant 0 : index
    %c0_38 = arith.constant 0 : index
    %69 = vector.load %arg2[%c3, %c0_37, %c0_38] : memref<10x96x84xf32, #tpu.memory_space<vmem>>, vector<1x96x84xf32>
    %70 = vector.shape_cast %69 : vector<1x96x84xf32> to vector<96x84xf32>
    %cst_39 = arith.constant dense<0.000000e+00> : vector<15x84xf32>
    %71 = tpu.matmul %65, %70, %cst_39 {dimension_numbers = #tpu.dot_dimension_numbers<[1], [0], [0], [1], [0, 0, 1, 1], [], []>} : vector<15x96xf32>, vector<96x84xf32>, vector<15x84xf32> -> vector<15x84xf32>
    %72 = arith.addf %48, %71 : vector<15x84xf32>
    %cst_40 = arith.constant dense<0.000000e+00> : vector<15x84xf32>
    %73 = tpu.matmul %66, %70, %cst_40 {dimension_numbers = #tpu.dot_dimension_numbers<[1], [0], [0], [1], [0, 0, 1, 1], [], []>} : vector<15x96xf32>, vector<96x84xf32>, vector<15x84xf32> -> vector<15x84xf32>
    %74 = arith.addf %50, %73 : vector<15x84xf32>
    %cst_41 = arith.constant dense<0.000000e+00> : vector<15x84xf32>
    %75 = tpu.matmul %67, %70, %cst_41 {dimension_numbers = #tpu.dot_dimension_numbers<[1], [0], [0], [1], [0, 0, 1, 1], [], []>} : vector<15x96xf32>, vector<96x84xf32>, vector<15x84xf32> -> vector<15x84xf32>
    %76 = arith.addf %52, %75 : vector<15x84xf32>
    %cst_42 = arith.constant dense<0.000000e+00> : vector<15x84xf32>
    %77 = tpu.matmul %68, %70, %cst_42 {dimension_numbers = #tpu.dot_dimension_numbers<[1], [0], [0], [1], [0, 0, 1, 1], [], []>} : vector<15x96xf32>, vector<96x84xf32>, vector<15x84xf32> -> vector<15x84xf32>
    %78 = arith.addf %54, %77 : vector<15x84xf32>
    %c8 = arith.constant 8 : index
    %c0_43 = arith.constant 0 : index
    %c0_44 = arith.constant 0 : index
    %79 = vector.load %arg2[%c8, %c0_43, %c0_44] : memref<10x96x84xf32, #tpu.memory_space<vmem>>, vector<1x96x84xf32>
    %80 = vector.shape_cast %79 : vector<1x96x84xf32> to vector<96x84xf32>
    %cst_45 = arith.constant dense<0.000000e+00> : vector<15x84xf32>
    %81 = tpu.matmul %65, %80, %cst_45 {dimension_numbers = #tpu.dot_dimension_numbers<[1], [0], [0], [1], [0, 0, 1, 1], [], []>} : vector<15x96xf32>, vector<96x84xf32>, vector<15x84xf32> -> vector<15x84xf32>
    %82 = arith.addf %58, %81 : vector<15x84xf32>
    %cst_46 = arith.constant dense<0.000000e+00> : vector<15x84xf32>
    %83 = tpu.matmul %66, %80, %cst_46 {dimension_numbers = #tpu.dot_dimension_numbers<[1], [0], [0], [1], [0, 0, 1, 1], [], []>} : vector<15x96xf32>, vector<96x84xf32>, vector<15x84xf32> -> vector<15x84xf32>
    %84 = arith.addf %60, %83 : vector<15x84xf32>
    %cst_47 = arith.constant dense<0.000000e+00> : vector<15x84xf32>
    %85 = tpu.matmul %67, %80, %cst_47 {dimension_numbers = #tpu.dot_dimension_numbers<[1], [0], [0], [1], [0, 0, 1, 1], [], []>} : vector<15x96xf32>, vector<96x84xf32>, vector<15x84xf32> -> vector<15x84xf32>
    %86 = arith.addf %62, %85 : vector<15x84xf32>
    %cst_48 = arith.constant dense<0.000000e+00> : vector<15x84xf32>
    %87 = tpu.matmul %68, %80, %cst_48 {dimension_numbers = #tpu.dot_dimension_numbers<[1], [0], [0], [1], [0, 0, 1, 1], [], []>} : vector<15x96xf32>, vector<96x84xf32>, vector<15x84xf32> -> vector<15x84xf32>
    %88 = arith.addf %64, %87 : vector<15x84xf32>
    %89 = vector.extract_strided_slice %0 {offsets = [1, 0], sizes = [15, 96], strides = [1, 1]} : vector<64x96xf32> to vector<15x96xf32>
    %90 = vector.extract_strided_slice %0 {offsets = [17, 0], sizes = [15, 96], strides = [1, 1]} : vector<64x96xf32> to vector<15x96xf32>
    %91 = vector.extract_strided_slice %0 {offsets = [33, 0], sizes = [15, 96], strides = [1, 1]} : vector<64x96xf32> to vector<15x96xf32>
    %92 = vector.extract_strided_slice %0 {offsets = [49, 0], sizes = [15, 96], strides = [1, 1]} : vector<64x96xf32> to vector<15x96xf32>
    %c4 = arith.constant 4 : index
    %c0_49 = arith.constant 0 : index
    %c0_50 = arith.constant 0 : index
    %93 = vector.load %arg2[%c4, %c0_49, %c0_50] : memref<10x96x84xf32, #tpu.memory_space<vmem>>, vector<1x96x84xf32>
    %94 = vector.shape_cast %93 : vector<1x96x84xf32> to vector<96x84xf32>
    %cst_51 = arith.constant dense<0.000000e+00> : vector<15x84xf32>
    %95 = tpu.matmul %89, %94, %cst_51 {dimension_numbers = #tpu.dot_dimension_numbers<[1], [0], [0], [1], [0, 0, 1, 1], [], []>} : vector<15x96xf32>, vector<96x84xf32>, vector<15x84xf32> -> vector<15x84xf32>
    %96 = arith.addf %72, %95 : vector<15x84xf32>
    %cst_52 = arith.constant dense<0.000000e+00> : vector<15x84xf32>
    %97 = tpu.matmul %90, %94, %cst_52 {dimension_numbers = #tpu.dot_dimension_numbers<[1], [0], [0], [1], [0, 0, 1, 1], [], []>} : vector<15x96xf32>, vector<96x84xf32>, vector<15x84xf32> -> vector<15x84xf32>
    %98 = arith.addf %74, %97 : vector<15x84xf32>
    %cst_53 = arith.constant dense<0.000000e+00> : vector<15x84xf32>
    %99 = tpu.matmul %91, %94, %cst_53 {dimension_numbers = #tpu.dot_dimension_numbers<[1], [0], [0], [1], [0, 0, 1, 1], [], []>} : vector<15x96xf32>, vector<96x84xf32>, vector<15x84xf32> -> vector<15x84xf32>
    %100 = arith.addf %76, %99 : vector<15x84xf32>
    %cst_54 = arith.constant dense<0.000000e+00> : vector<15x84xf32>
    %101 = tpu.matmul %92, %94, %cst_54 {dimension_numbers = #tpu.dot_dimension_numbers<[1], [0], [0], [1], [0, 0, 1, 1], [], []>} : vector<15x96xf32>, vector<96x84xf32>, vector<15x84xf32> -> vector<15x84xf32>
    %102 = arith.addf %78, %101 : vector<15x84xf32>
    %c9 = arith.constant 9 : index
    %c0_55 = arith.constant 0 : index
    %c0_56 = arith.constant 0 : index
    %103 = vector.load %arg2[%c9, %c0_55, %c0_56] : memref<10x96x84xf32, #tpu.memory_space<vmem>>, vector<1x96x84xf32>
    %104 = vector.shape_cast %103 : vector<1x96x84xf32> to vector<96x84xf32>
    %cst_57 = arith.constant dense<0.000000e+00> : vector<15x84xf32>
    %105 = tpu.matmul %89, %104, %cst_57 {dimension_numbers = #tpu.dot_dimension_numbers<[1], [0], [0], [1], [0, 0, 1, 1], [], []>} : vector<15x96xf32>, vector<96x84xf32>, vector<15x84xf32> -> vector<15x84xf32>
    %106 = arith.addf %82, %105 : vector<15x84xf32>
    %cst_58 = arith.constant dense<0.000000e+00> : vector<15x84xf32>
    %107 = tpu.matmul %90, %104, %cst_58 {dimension_numbers = #tpu.dot_dimension_numbers<[1], [0], [0], [1], [0, 0, 1, 1], [], []>} : vector<15x96xf32>, vector<96x84xf32>, vector<15x84xf32> -> vector<15x84xf32>
    %108 = arith.addf %84, %107 : vector<15x84xf32>
    %cst_59 = arith.constant dense<0.000000e+00> : vector<15x84xf32>
    %109 = tpu.matmul %91, %104, %cst_59 {dimension_numbers = #tpu.dot_dimension_numbers<[1], [0], [0], [1], [0, 0, 1, 1], [], []>} : vector<15x96xf32>, vector<96x84xf32>, vector<15x84xf32> -> vector<15x84xf32>
    %110 = arith.addf %86, %109 : vector<15x84xf32>
    %cst_60 = arith.constant dense<0.000000e+00> : vector<15x84xf32>
    %111 = tpu.matmul %92, %104, %cst_60 {dimension_numbers = #tpu.dot_dimension_numbers<[1], [0], [0], [1], [0, 0, 1, 1], [], []>} : vector<15x96xf32>, vector<96x84xf32>, vector<15x84xf32> -> vector<15x84xf32>
    %112 = arith.addf %88, %111 : vector<15x84xf32>
    %c0_61 = arith.constant 0 : index
    %c0_62 = arith.constant 0 : index
    %113 = vector.load %arg3[%c0_61, %c0_62] : memref<1x84xf32, #tpu.memory_space<vmem>>, vector<1x84xf32>
    %114 = arith.maximumf %96, %106 : vector<15x84xf32>
    %115 = arith.maximumf %98, %108 : vector<15x84xf32>
    %116 = arith.maximumf %114, %115 : vector<15x84xf32>
    %117 = vector.broadcast %113 : vector<1x84xf32> to vector<15x84xf32>
    %118 = arith.addf %116, %117 : vector<15x84xf32>
    %cst_63 = arith.constant 0.000000e+00 : f32
    %119 = vector.broadcast %cst_63 : f32 to vector<15x84xf32>
    %120 = arith.maximumf %118, %119 : vector<15x84xf32>
    %121 = arith.maximumf %100, %110 : vector<15x84xf32>
    %122 = arith.maximumf %102, %112 : vector<15x84xf32>
    %123 = arith.maximumf %121, %122 : vector<15x84xf32>
    %124 = vector.broadcast %113 : vector<1x84xf32> to vector<15x84xf32>
    %125 = arith.addf %123, %124 : vector<15x84xf32>
    %cst_64 = arith.constant 0.000000e+00 : f32
    %126 = vector.broadcast %cst_64 : f32 to vector<15x84xf32>
    %127 = arith.maximumf %125, %126 : vector<15x84xf32>
    %128 = vector.extract_strided_slice %120 {offsets = [0, 0], sizes = [13, 84], strides = [1, 1]} : vector<15x84xf32> to vector<13x84xf32>
    %129 = vector.extract_strided_slice %127 {offsets = [0, 0], sizes = [13, 84], strides = [1, 1]} : vector<15x84xf32> to vector<13x84xf32>
    %c0_65 = arith.constant 0 : index
    %c0_66 = arith.constant 0 : index
    %c0_67 = arith.constant 0 : index
    %130 = vector.load %arg4[%c0_65, %c0_66, %c0_67] : memref<10x84x80xf32, #tpu.memory_space<vmem>>, vector<1x84x80xf32>
    %131 = vector.shape_cast %130 : vector<1x84x80xf32> to vector<84x80xf32>
    %cst_68 = arith.constant dense<0.000000e+00> : vector<13x80xf32>
    %132 = tpu.matmul %128, %131, %cst_68 {dimension_numbers = #tpu.dot_dimension_numbers<[1], [0], [0], [1], [0, 0, 1, 1], [], []>} : vector<13x84xf32>, vector<84x80xf32>, vector<13x80xf32> -> vector<13x80xf32>
    %cst_69 = arith.constant dense<0.000000e+00> : vector<13x80xf32>
    %133 = tpu.matmul %129, %131, %cst_69 {dimension_numbers = #tpu.dot_dimension_numbers<[1], [0], [0], [1], [0, 0, 1, 1], [], []>} : vector<13x84xf32>, vector<84x80xf32>, vector<13x80xf32> -> vector<13x80xf32>
    %c5_70 = arith.constant 5 : index
    %c0_71 = arith.constant 0 : index
    %c0_72 = arith.constant 0 : index
    %134 = vector.load %arg4[%c5_70, %c0_71, %c0_72] : memref<10x84x80xf32, #tpu.memory_space<vmem>>, vector<1x84x80xf32>
    %135 = vector.shape_cast %134 : vector<1x84x80xf32> to vector<84x80xf32>
    %cst_73 = arith.constant dense<0.000000e+00> : vector<13x80xf32>
    %136 = tpu.matmul %128, %135, %cst_73 {dimension_numbers = #tpu.dot_dimension_numbers<[1], [0], [0], [1], [0, 0, 1, 1], [], []>} : vector<13x84xf32>, vector<84x80xf32>, vector<13x80xf32> -> vector<13x80xf32>
    %cst_74 = arith.constant dense<0.000000e+00> : vector<13x80xf32>
    %137 = tpu.matmul %129, %135, %cst_74 {dimension_numbers = #tpu.dot_dimension_numbers<[1], [0], [0], [1], [0, 0, 1, 1], [], []>} : vector<13x84xf32>, vector<84x80xf32>, vector<13x80xf32> -> vector<13x80xf32>
    %138 = vector.extract_strided_slice %127 {offsets = [0, 0], sizes = [13, 84], strides = [1, 1]} : vector<15x84xf32> to vector<13x84xf32>
    %139 = vector.extract_strided_slice %120 {offsets = [1, 0], sizes = [13, 84], strides = [1, 1]} : vector<15x84xf32> to vector<13x84xf32>
    %c1_75 = arith.constant 1 : index
    %c0_76 = arith.constant 0 : index
    %c0_77 = arith.constant 0 : index
    %140 = vector.load %arg4[%c1_75, %c0_76, %c0_77] : memref<10x84x80xf32, #tpu.memory_space<vmem>>, vector<1x84x80xf32>
    %141 = vector.shape_cast %140 : vector<1x84x80xf32> to vector<84x80xf32>
    %cst_78 = arith.constant dense<0.000000e+00> : vector<13x80xf32>
    %142 = tpu.matmul %138, %141, %cst_78 {dimension_numbers = #tpu.dot_dimension_numbers<[1], [0], [0], [1], [0, 0, 1, 1], [], []>} : vector<13x84xf32>, vector<84x80xf32>, vector<13x80xf32> -> vector<13x80xf32>
    %143 = arith.addf %132, %142 : vector<13x80xf32>
    %cst_79 = arith.constant dense<0.000000e+00> : vector<13x80xf32>
    %144 = tpu.matmul %139, %141, %cst_79 {dimension_numbers = #tpu.dot_dimension_numbers<[1], [0], [0], [1], [0, 0, 1, 1], [], []>} : vector<13x84xf32>, vector<84x80xf32>, vector<13x80xf32> -> vector<13x80xf32>
    %145 = arith.addf %133, %144 : vector<13x80xf32>
    %c6_80 = arith.constant 6 : index
    %c0_81 = arith.constant 0 : index
    %c0_82 = arith.constant 0 : index
    %146 = vector.load %arg4[%c6_80, %c0_81, %c0_82] : memref<10x84x80xf32, #tpu.memory_space<vmem>>, vector<1x84x80xf32>
    %147 = vector.shape_cast %146 : vector<1x84x80xf32> to vector<84x80xf32>
    %cst_83 = arith.constant dense<0.000000e+00> : vector<13x80xf32>
    %148 = tpu.matmul %138, %147, %cst_83 {dimension_numbers = #tpu.dot_dimension_numbers<[1], [0], [0], [1], [0, 0, 1, 1], [], []>} : vector<13x84xf32>, vector<84x80xf32>, vector<13x80xf32> -> vector<13x80xf32>
    %149 = arith.addf %136, %148 : vector<13x80xf32>
    %cst_84 = arith.constant dense<0.000000e+00> : vector<13x80xf32>
    %150 = tpu.matmul %139, %147, %cst_84 {dimension_numbers = #tpu.dot_dimension_numbers<[1], [0], [0], [1], [0, 0, 1, 1], [], []>} : vector<13x84xf32>, vector<84x80xf32>, vector<13x80xf32> -> vector<13x80xf32>
    %151 = arith.addf %137, %150 : vector<13x80xf32>
    %152 = vector.extract_strided_slice %120 {offsets = [1, 0], sizes = [13, 84], strides = [1, 1]} : vector<15x84xf32> to vector<13x84xf32>
    %153 = vector.extract_strided_slice %127 {offsets = [1, 0], sizes = [13, 84], strides = [1, 1]} : vector<15x84xf32> to vector<13x84xf32>
    %c2_85 = arith.constant 2 : index
    %c0_86 = arith.constant 0 : index
    %c0_87 = arith.constant 0 : index
    %154 = vector.load %arg4[%c2_85, %c0_86, %c0_87] : memref<10x84x80xf32, #tpu.memory_space<vmem>>, vector<1x84x80xf32>
    %155 = vector.shape_cast %154 : vector<1x84x80xf32> to vector<84x80xf32>
    %cst_88 = arith.constant dense<0.000000e+00> : vector<13x80xf32>
    %156 = tpu.matmul %152, %155, %cst_88 {dimension_numbers = #tpu.dot_dimension_numbers<[1], [0], [0], [1], [0, 0, 1, 1], [], []>} : vector<13x84xf32>, vector<84x80xf32>, vector<13x80xf32> -> vector<13x80xf32>
    %157 = arith.addf %143, %156 : vector<13x80xf32>
    %cst_89 = arith.constant dense<0.000000e+00> : vector<13x80xf32>
    %158 = tpu.matmul %153, %155, %cst_89 {dimension_numbers = #tpu.dot_dimension_numbers<[1], [0], [0], [1], [0, 0, 1, 1], [], []>} : vector<13x84xf32>, vector<84x80xf32>, vector<13x80xf32> -> vector<13x80xf32>
    %159 = arith.addf %145, %158 : vector<13x80xf32>
    %c7_90 = arith.constant 7 : index
    %c0_91 = arith.constant 0 : index
    %c0_92 = arith.constant 0 : index
    %160 = vector.load %arg4[%c7_90, %c0_91, %c0_92] : memref<10x84x80xf32, #tpu.memory_space<vmem>>, vector<1x84x80xf32>
    %161 = vector.shape_cast %160 : vector<1x84x80xf32> to vector<84x80xf32>
    %cst_93 = arith.constant dense<0.000000e+00> : vector<13x80xf32>
    %162 = tpu.matmul %152, %161, %cst_93 {dimension_numbers = #tpu.dot_dimension_numbers<[1], [0], [0], [1], [0, 0, 1, 1], [], []>} : vector<13x84xf32>, vector<84x80xf32>, vector<13x80xf32> -> vector<13x80xf32>
    %163 = arith.addf %149, %162 : vector<13x80xf32>
    %cst_94 = arith.constant dense<0.000000e+00> : vector<13x80xf32>
    %164 = tpu.matmul %153, %161, %cst_94 {dimension_numbers = #tpu.dot_dimension_numbers<[1], [0], [0], [1], [0, 0, 1, 1], [], []>} : vector<13x84xf32>, vector<84x80xf32>, vector<13x80xf32> -> vector<13x80xf32>
    %165 = arith.addf %151, %164 : vector<13x80xf32>
    %166 = vector.extract_strided_slice %127 {offsets = [1, 0], sizes = [13, 84], strides = [1, 1]} : vector<15x84xf32> to vector<13x84xf32>
    %167 = vector.extract_strided_slice %120 {offsets = [2, 0], sizes = [13, 84], strides = [1, 1]} : vector<15x84xf32> to vector<13x84xf32>
    %c3_95 = arith.constant 3 : index
    %c0_96 = arith.constant 0 : index
    %c0_97 = arith.constant 0 : index
    %168 = vector.load %arg4[%c3_95, %c0_96, %c0_97] : memref<10x84x80xf32, #tpu.memory_space<vmem>>, vector<1x84x80xf32>
    %169 = vector.shape_cast %168 : vector<1x84x80xf32> to vector<84x80xf32>
    %cst_98 = arith.constant dense<0.000000e+00> : vector<13x80xf32>
    %170 = tpu.matmul %166, %169, %cst_98 {dimension_numbers = #tpu.dot_dimension_numbers<[1], [0], [0], [1], [0, 0, 1, 1], [], []>} : vector<13x84xf32>, vector<84x80xf32>, vector<13x80xf32> -> vector<13x80xf32>
    %171 = arith.addf %157, %170 : vector<13x80xf32>
    %cst_99 = arith.constant dense<0.000000e+00> : vector<13x80xf32>
    %172 = tpu.matmul %167, %169, %cst_99 {dimension_numbers = #tpu.dot_dimension_numbers<[1], [0], [0], [1], [0, 0, 1, 1], [], []>} : vector<13x84xf32>, vector<84x80xf32>, vector<13x80xf32> -> vector<13x80xf32>
    %173 = arith.addf %159, %172 : vector<13x80xf32>
    %c8_100 = arith.constant 8 : index
    %c0_101 = arith.constant 0 : index
    %c0_102 = arith.constant 0 : index
    %174 = vector.load %arg4[%c8_100, %c0_101, %c0_102] : memref<10x84x80xf32, #tpu.memory_space<vmem>>, vector<1x84x80xf32>
    %175 = vector.shape_cast %174 : vector<1x84x80xf32> to vector<84x80xf32>
    %cst_103 = arith.constant dense<0.000000e+00> : vector<13x80xf32>
    %176 = tpu.matmul %166, %175, %cst_103 {dimension_numbers = #tpu.dot_dimension_numbers<[1], [0], [0], [1], [0, 0, 1, 1], [], []>} : vector<13x84xf32>, vector<84x80xf32>, vector<13x80xf32> -> vector<13x80xf32>
    %177 = arith.addf %163, %176 : vector<13x80xf32>
    %cst_104 = arith.constant dense<0.000000e+00> : vector<13x80xf32>
    %178 = tpu.matmul %167, %175, %cst_104 {dimension_numbers = #tpu.dot_dimension_numbers<[1], [0], [0], [1], [0, 0, 1, 1], [], []>} : vector<13x84xf32>, vector<84x80xf32>, vector<13x80xf32> -> vector<13x80xf32>
    %179 = arith.addf %165, %178 : vector<13x80xf32>
    %180 = vector.extract_strided_slice %120 {offsets = [2, 0], sizes = [13, 84], strides = [1, 1]} : vector<15x84xf32> to vector<13x84xf32>
    %181 = vector.extract_strided_slice %127 {offsets = [2, 0], sizes = [13, 84], strides = [1, 1]} : vector<15x84xf32> to vector<13x84xf32>
    %c4_105 = arith.constant 4 : index
    %c0_106 = arith.constant 0 : index
    %c0_107 = arith.constant 0 : index
    %182 = vector.load %arg4[%c4_105, %c0_106, %c0_107] : memref<10x84x80xf32, #tpu.memory_space<vmem>>, vector<1x84x80xf32>
    %183 = vector.shape_cast %182 : vector<1x84x80xf32> to vector<84x80xf32>
    %cst_108 = arith.constant dense<0.000000e+00> : vector<13x80xf32>
    %184 = tpu.matmul %180, %183, %cst_108 {dimension_numbers = #tpu.dot_dimension_numbers<[1], [0], [0], [1], [0, 0, 1, 1], [], []>} : vector<13x84xf32>, vector<84x80xf32>, vector<13x80xf32> -> vector<13x80xf32>
    %185 = arith.addf %171, %184 : vector<13x80xf32>
    %cst_109 = arith.constant dense<0.000000e+00> : vector<13x80xf32>
    %186 = tpu.matmul %181, %183, %cst_109 {dimension_numbers = #tpu.dot_dimension_numbers<[1], [0], [0], [1], [0, 0, 1, 1], [], []>} : vector<13x84xf32>, vector<84x80xf32>, vector<13x80xf32> -> vector<13x80xf32>
    %187 = arith.addf %173, %186 : vector<13x80xf32>
    %c9_110 = arith.constant 9 : index
    %c0_111 = arith.constant 0 : index
    %c0_112 = arith.constant 0 : index
    %188 = vector.load %arg4[%c9_110, %c0_111, %c0_112] : memref<10x84x80xf32, #tpu.memory_space<vmem>>, vector<1x84x80xf32>
    %189 = vector.shape_cast %188 : vector<1x84x80xf32> to vector<84x80xf32>
    %cst_113 = arith.constant dense<0.000000e+00> : vector<13x80xf32>
    %190 = tpu.matmul %180, %189, %cst_113 {dimension_numbers = #tpu.dot_dimension_numbers<[1], [0], [0], [1], [0, 0, 1, 1], [], []>} : vector<13x84xf32>, vector<84x80xf32>, vector<13x80xf32> -> vector<13x80xf32>
    %191 = arith.addf %177, %190 : vector<13x80xf32>
    %cst_114 = arith.constant dense<0.000000e+00> : vector<13x80xf32>
    %192 = tpu.matmul %181, %189, %cst_114 {dimension_numbers = #tpu.dot_dimension_numbers<[1], [0], [0], [1], [0, 0, 1, 1], [], []>} : vector<13x84xf32>, vector<84x80xf32>, vector<13x80xf32> -> vector<13x80xf32>
    %193 = arith.addf %179, %192 : vector<13x80xf32>
    %c0_115 = arith.constant 0 : index
    %c0_116 = arith.constant 0 : index
    %194 = vector.load %arg5[%c0_115, %c0_116] : memref<1x80xf32, #tpu.memory_space<vmem>>, vector<1x80xf32>
    %195 = arith.maximumf %185, %191 : vector<13x80xf32>
    %196 = arith.maximumf %187, %193 : vector<13x80xf32>
    %197 = arith.maximumf %195, %196 : vector<13x80xf32>
    %198 = vector.broadcast %194 : vector<1x80xf32> to vector<13x80xf32>
    %199 = arith.addf %197, %198 : vector<13x80xf32>
    %cst_117 = arith.constant 0.000000e+00 : f32
    %200 = vector.broadcast %cst_117 : f32 to vector<13x80xf32>
    %201 = arith.maximumf %199, %200 : vector<13x80xf32>
    %202 = vector.extract_strided_slice %201 {offsets = [0, 0], sizes = [9, 80], strides = [1, 1]} : vector<13x80xf32> to vector<9x80xf32>
    %c0_118 = arith.constant 0 : index
    %c0_119 = arith.constant 0 : index
    %c0_120 = arith.constant 0 : index
    %203 = vector.load %arg6[%c0_118, %c0_119, %c0_120] : memref<5x80x120xf32, #tpu.memory_space<vmem>>, vector<1x80x120xf32>
    %204 = vector.shape_cast %203 : vector<1x80x120xf32> to vector<80x120xf32>
    %cst_121 = arith.constant dense<0.000000e+00> : vector<9x120xf32>
    %205 = tpu.matmul %202, %204, %cst_121 {dimension_numbers = #tpu.dot_dimension_numbers<[1], [0], [0], [1], [0, 0, 1, 1], [], []>} : vector<9x80xf32>, vector<80x120xf32>, vector<9x120xf32> -> vector<9x120xf32>
    %206 = vector.extract_strided_slice %201 {offsets = [1, 0], sizes = [9, 80], strides = [1, 1]} : vector<13x80xf32> to vector<9x80xf32>
    %c1_122 = arith.constant 1 : index
    %c0_123 = arith.constant 0 : index
    %c0_124 = arith.constant 0 : index
    %207 = vector.load %arg6[%c1_122, %c0_123, %c0_124] : memref<5x80x120xf32, #tpu.memory_space<vmem>>, vector<1x80x120xf32>
    %208 = vector.shape_cast %207 : vector<1x80x120xf32> to vector<80x120xf32>
    %cst_125 = arith.constant dense<0.000000e+00> : vector<9x120xf32>
    %209 = tpu.matmul %206, %208, %cst_125 {dimension_numbers = #tpu.dot_dimension_numbers<[1], [0], [0], [1], [0, 0, 1, 1], [], []>} : vector<9x80xf32>, vector<80x120xf32>, vector<9x120xf32> -> vector<9x120xf32>
    %210 = arith.addf %205, %209 : vector<9x120xf32>
    %211 = vector.extract_strided_slice %201 {offsets = [2, 0], sizes = [9, 80], strides = [1, 1]} : vector<13x80xf32> to vector<9x80xf32>
    %c2_126 = arith.constant 2 : index
    %c0_127 = arith.constant 0 : index
    %c0_128 = arith.constant 0 : index
    %212 = vector.load %arg6[%c2_126, %c0_127, %c0_128] : memref<5x80x120xf32, #tpu.memory_space<vmem>>, vector<1x80x120xf32>
    %213 = vector.shape_cast %212 : vector<1x80x120xf32> to vector<80x120xf32>
    %cst_129 = arith.constant dense<0.000000e+00> : vector<9x120xf32>
    %214 = tpu.matmul %211, %213, %cst_129 {dimension_numbers = #tpu.dot_dimension_numbers<[1], [0], [0], [1], [0, 0, 1, 1], [], []>} : vector<9x80xf32>, vector<80x120xf32>, vector<9x120xf32> -> vector<9x120xf32>
    %215 = arith.addf %210, %214 : vector<9x120xf32>
    %216 = vector.extract_strided_slice %201 {offsets = [3, 0], sizes = [9, 80], strides = [1, 1]} : vector<13x80xf32> to vector<9x80xf32>
    %c3_130 = arith.constant 3 : index
    %c0_131 = arith.constant 0 : index
    %c0_132 = arith.constant 0 : index
    %217 = vector.load %arg6[%c3_130, %c0_131, %c0_132] : memref<5x80x120xf32, #tpu.memory_space<vmem>>, vector<1x80x120xf32>
    %218 = vector.shape_cast %217 : vector<1x80x120xf32> to vector<80x120xf32>
    %cst_133 = arith.constant dense<0.000000e+00> : vector<9x120xf32>
    %219 = tpu.matmul %216, %218, %cst_133 {dimension_numbers = #tpu.dot_dimension_numbers<[1], [0], [0], [1], [0, 0, 1, 1], [], []>} : vector<9x80xf32>, vector<80x120xf32>, vector<9x120xf32> -> vector<9x120xf32>
    %220 = arith.addf %215, %219 : vector<9x120xf32>
    %221 = vector.extract_strided_slice %201 {offsets = [4, 0], sizes = [9, 80], strides = [1, 1]} : vector<13x80xf32> to vector<9x80xf32>
    %c4_134 = arith.constant 4 : index
    %c0_135 = arith.constant 0 : index
    %c0_136 = arith.constant 0 : index
    %222 = vector.load %arg6[%c4_134, %c0_135, %c0_136] : memref<5x80x120xf32, #tpu.memory_space<vmem>>, vector<1x80x120xf32>
    %223 = vector.shape_cast %222 : vector<1x80x120xf32> to vector<80x120xf32>
    %cst_137 = arith.constant dense<0.000000e+00> : vector<9x120xf32>
    %224 = tpu.matmul %221, %223, %cst_137 {dimension_numbers = #tpu.dot_dimension_numbers<[1], [0], [0], [1], [0, 0, 1, 1], [], []>} : vector<9x80xf32>, vector<80x120xf32>, vector<9x120xf32> -> vector<9x120xf32>
    %225 = arith.addf %220, %224 : vector<9x120xf32>
    %c0_138 = arith.constant 0 : index
    %c0_139 = arith.constant 0 : index
    %226 = vector.load %arg7[%c0_138, %c0_139] : memref<1x120xf32, #tpu.memory_space<vmem>>, vector<1x120xf32>
    %227 = vector.broadcast %226 : vector<1x120xf32> to vector<9x120xf32>
    %228 = arith.addf %225, %227 : vector<9x120xf32>
    %cst_140 = arith.constant 0.000000e+00 : f32
    %229 = vector.broadcast %cst_140 : f32 to vector<9x120xf32>
    %230 = arith.maximumf %228, %229 : vector<9x120xf32>
    %c0_141 = arith.constant 0 : index
    %c0_142 = arith.constant 0 : index
    %231 = vector.load %arg8[%c0_141, %c0_142] : memref<120x84xf32, #tpu.memory_space<vmem>>, vector<120x84xf32>
    %cst_143 = arith.constant dense<0.000000e+00> : vector<9x84xf32>
    %232 = tpu.matmul %230, %231, %cst_143 {dimension_numbers = #tpu.dot_dimension_numbers<[1], [0], [0], [1], [0, 0, 1, 1], [], []>} : vector<9x120xf32>, vector<120x84xf32>, vector<9x84xf32> -> vector<9x84xf32>
    %c0_144 = arith.constant 0 : index
    %c0_145 = arith.constant 0 : index
    %233 = vector.load %arg9[%c0_144, %c0_145] : memref<1x84xf32, #tpu.memory_space<vmem>>, vector<1x84xf32>
    %234 = vector.broadcast %233 : vector<1x84xf32> to vector<9x84xf32>
    %235 = arith.addf %232, %234 : vector<9x84xf32>
    %cst_146 = arith.constant 0.000000e+00 : f32
    %236 = vector.broadcast %cst_146 : f32 to vector<9x84xf32>
    %237 = arith.maximumf %235, %236 : vector<9x84xf32>
    %c0_147 = arith.constant 0 : index
    %c0_148 = arith.constant 0 : index
    %238 = vector.load %arg10[%c0_147, %c0_148] : memref<84x10xf32, #tpu.memory_space<vmem>>, vector<84x10xf32>
    %cst_149 = arith.constant dense<0.000000e+00> : vector<9x10xf32>
    %239 = tpu.matmul %237, %238, %cst_149 {dimension_numbers = #tpu.dot_dimension_numbers<[1], [0], [0], [1], [0, 0, 1, 1], [], []>} : vector<9x84xf32>, vector<84x10xf32>, vector<9x10xf32> -> vector<9x10xf32>
    %c0_150 = arith.constant 0 : index
    %c0_151 = arith.constant 0 : index
    %240 = vector.load %arg11[%c0_150, %c0_151] : memref<1x10xf32, #tpu.memory_space<vmem>>, vector<1x10xf32>
    %241 = vector.broadcast %240 : vector<1x10xf32> to vector<9x10xf32>
    %242 = arith.addf %239, %241 : vector<9x10xf32>
    %243 = vector.extract_strided_slice %242 {offsets = [0, 0], sizes = [1, 10], strides = [1, 1]} : vector<9x10xf32> to vector<1x10xf32>
    %c0_152 = arith.constant 0 : index
    %c0_153 = arith.constant 0 : index
    %244 = vector.load %arg12[%c0_152, %c0_153] : memref<2x10xf32, #tpu.memory_space<vmem>>, vector<1x10xf32>
    tpu.vector_store %arg12[%c0_152, %c0_153], %243 {strides = array<i32>} : memref<2x10xf32, #tpu.memory_space<vmem>>, vector<1x10xf32>,
    %245 = vector.extract_strided_slice %242 {offsets = [8, 0], sizes = [1, 10], strides = [1, 1]} : vector<9x10xf32> to vector<1x10xf32>
    %c1_154 = arith.constant 1 : index
    %c0_155 = arith.constant 0 : index
    %246 = vector.load %arg12[%c1_154, %c0_155] : memref<2x10xf32, #tpu.memory_space<vmem>>, vector<1x10xf32>
    tpu.vector_store %arg12[%c1_154, %c0_155], %245 {strides = array<i32>} : memref<2x10xf32, #tpu.memory_space<vmem>>, vector<1x10xf32>,
    return
  }
  func.func @transform_0(%arg0: i32) -> (i32, i32) {
    %c0_i32 = arith.constant 0 : i32
    %c0_i32_0 = arith.constant 0 : i32
    %c0_i32_1 = arith.constant 0 : i32
    return %c0_i32, %c0_i32_0 : i32, i32
  }
  func.func @transform_1(%arg0: i32) -> (i32, i32, i32) {
    %c0_i32 = arith.constant 0 : i32
    %c0_i32_0 = arith.constant 0 : i32
    %c0_i32_1 = arith.constant 0 : i32
    %c0_i32_2 = arith.constant 0 : i32
    return %c0_i32, %c0_i32_0, %c0_i32_1 : i32, i32, i32
  }
  func.func @transform_2(%arg0: i32) -> (i32, i32) {
    %c0_i32 = arith.constant 0 : i32
    %c0_i32_0 = arith.constant 0 : i32
    %c0_i32_1 = arith.constant 0 : i32
    return %c0_i32, %c0_i32_0 : i32, i32
  }
  func.func @transform_3(%arg0: i32) -> (i32, i32, i32) {
    %c0_i32 = arith.constant 0 : i32
    %c0_i32_0 = arith.constant 0 : i32
    %c0_i32_1 = arith.constant 0 : i32
    %c0_i32_2 = arith.constant 0 : i32
    return %c0_i32, %c0_i32_0, %c0_i32_1 : i32, i32, i32
  }
  func.func @transform_4(%arg0: i32) -> (i32, i32) {
    %c0_i32 = arith.constant 0 : i32
    %c0_i32_0 = arith.constant 0 : i32
    %c0_i32_1 = arith.constant 0 : i32
    return %c0_i32, %c0_i32_0 : i32, i32
  }
  func.func @transform_5(%arg0: i32) -> (i32, i32, i32) {
    %c0_i32 = arith.constant 0 : i32
    %c0_i32_0 = arith.constant 0 : i32
    %c0_i32_1 = arith.constant 0 : i32
    %c0_i32_2 = arith.constant 0 : i32
    return %c0_i32, %c0_i32_0, %c0_i32_1 : i32, i32, i32
  }
  func.func @transform_6(%arg0: i32) -> (i32, i32) {
    %c0_i32 = arith.constant 0 : i32
    %c0_i32_0 = arith.constant 0 : i32
    %c0_i32_1 = arith.constant 0 : i32
    return %c0_i32, %c0_i32_0 : i32, i32
  }
  func.func @transform_7(%arg0: i32) -> (i32, i32) {
    %c0_i32 = arith.constant 0 : i32
    %c0_i32_0 = arith.constant 0 : i32
    %c0_i32_1 = arith.constant 0 : i32
    return %c0_i32, %c0_i32_0 : i32, i32
  }
  func.func @transform_8(%arg0: i32) -> (i32, i32) {
    %c0_i32 = arith.constant 0 : i32
    %c0_i32_0 = arith.constant 0 : i32
    %c0_i32_1 = arith.constant 0 : i32
    return %c0_i32, %c0_i32_0 : i32, i32
  }
  func.func @transform_9(%arg0: i32) -> (i32, i32) {
    %c0_i32 = arith.constant 0 : i32
    %c0_i32_0 = arith.constant 0 : i32
    %c0_i32_1 = arith.constant 0 : i32
    return %c0_i32, %c0_i32_0 : i32, i32
  }
  func.func @transform_10(%arg0: i32) -> (i32, i32) {
    %c0_i32 = arith.constant 0 : i32
    %c0_i32_0 = arith.constant 0 : i32
    %c0_i32_1 = arith.constant 0 : i32
    return %c0_i32, %c0_i32_0 : i32, i32
  }
  func.func @transform_11(%arg0: i32) -> (i32, i32) {
    %c0_i32 = arith.constant 0 : i32
    %c0_i32_0 = arith.constant 0 : i32
    %c0_i32_1 = arith.constant 0 : i32
    return %c0_i32, %c0_i32_0 : i32, i32
  }
}

</mosaic_0001>

<bundles_post_ra>
// kernel: net_forward.1
= control target key start
LH: loop header
LB: loop body
LE: loop exit
PB: predicated region body
PF: predicated region fallthrough
CT: control target
= control target key end

     0   :  { %s4592_s0 = inlined_call_operand.vmem [shape: f32[64,96], index: 0, kind: input, shape index: {}]   ;;  %s4593_s1 = inlined_call_operand.vmem [shape: f32[10,96,84], index: 1, kind: input, shape index: {}]   ;;  %s4594_s2 = inlined_call_operand.vmem [shape: f32[1,84], index: 2, kind: input, shape index: {}]   ;;  %s4595_s3 = inlined_call_operand.vmem [shape: f32[10,84,80], index: 3, kind: input, shape index: {}]   ;;  %s4596_s4 = inlined_call_operand.vmem [shape: f32[1,80], index: 4, kind: input, shape index: {}]   ;;  %s4597_s5 = inlined_call_operand.vmem [shape: f32[5,80,120], index: 5, kind: input, shape index: {}]   ;;  %s4598_s6 = inlined_call_operand.vmem [shape: f32[1,120], index: 6, kind: input, shape index: {}]   ;;  %s4599_s7 = inlined_call_operand.vmem [shape: f32[120,84], index: 7, kind: input, shape index: {}]   ;;  %s4600_s8 = inlined_call_operand.vmem [shape: f32[1,84], index: 8, kind: input, shape index: {}]   ;;  %s4601_s9 = inlined_call_operand.vmem [shape: f32[84,10], index: 9, kind: input, shape index: {}]   ;;  %s4602_s10 = inlined_call_operand.vmem [shape: f32[1,10], index: 10, kind: input, shape index: {}]   ;;  %s4603_s11 = inlined_call_operand.hbm [shape: f32[2,10], index: 11, kind: output, shape index: {}]  }
   0x1   :  { %v2746_v0 = vld [vmem:[%s4593_s1 + $0xb8] sm:$0xff]  ;;  %v2756_v2 = vld [vmem:[%s4593_s1 + $0xb0] sm:$0xff]  ;;  %v2770_v4 = vld [vmem:[%s4593_s1 + $0xa8] sm:$0xff] }
   0x2   :  { %v2751_v1 = vld [vmem:[%s4593_s1 + $0x58] sm:$0xff]  ;;  %96 = vmatpush.msra.mxu0 %v2746_v0  ;;  %v2763_v3 = vld [vmem:[%s4593_s1 + $0x50] sm:$0xff]  ;;  %154 = vmatpush.msra.mxu2 %v2746_v0  ;;  %v2775_v5 = vld [vmem:[%s4593_s1 + $0x48] sm:$0xff] }
   0x3   :  { %125 = vmatpush.msra.mxu1 %v2751_v1  ;;  %177 = vmatpush.msra.mxu3 %v2751_v1  ;;  %v2784_v6 = vld [vmem:[%s4593_s1 + $0xa0] sm:$0xff]  ;;  %v2798_v8 = vld [vmem:[%s4593_s1 + $0x98] sm:$0xff]  ;;  %v2810_v10 = vld [vmem:[%s4593_s1 + $0x90] sm:$0xff] }
   0x4   :  { %97 = vmatpush.msra.mxu0 %v2756_v2  ;;  %155 = vmatpush.msra.mxu2 %v2756_v2  ;;  %v2789_v7 = vld [vmem:[%s4593_s1 + $0x40] sm:$0xff]  ;;  %v2803_v9 = vld [vmem:[%s4593_s1 + $0x38] sm:$0xff]  ;;  %v2815_v11 = vld [vmem:[%s4593_s1 + $0x30] sm:$0xff] }
   0x5   :  { %126 = vmatpush.msra.mxu1 %v2763_v3  ;;  %178 = vmatpush.msra.mxu3 %v2763_v3 }
   0x6   :  { %98 = vmatpush.msra.mxu0 %v2770_v4  ;;  %156 = vmatpush.msra.mxu2 %v2770_v4 }
   0x7   :  { %127 = vmatpush.msra.mxu1 %v2775_v5  ;;  %179 = vmatpush.msra.mxu3 %v2775_v5 }
   0x8   :  { %99 = vmatpush.msra.mxu0 %v2784_v6  ;;  %157 = vmatpush.msra.mxu2 %v2784_v6 }
   0x9   :  { %128 = vmatpush.msra.mxu1 %v2789_v7  ;;  %180 = vmatpush.msra.mxu3 %v2789_v7 }
   0xa   :  { %100 = vmatpush.msra.mxu0 %v2798_v8 }
   0xb   :  { %129 = vmatpush.msra.mxu1 %v2803_v9 }
   0xc   :  { %16 = vsyncpa [#allocation3], 0  ;;  %158 = vmatpush.msra.mxu2 %v2798_v8  ;;  %181 = vmatpush.msra.mxu3 %v2803_v9  ;;  %v2826_v12 = vld [vmem:[%s4593_s1 + $0x88] sm:$0xff]  ;;  %v2840_v14 = vld [vmem:[%s4593_s1 + $0x80] sm:$0xff]  ;;  %vm85_vm0 = vcmask 785408   ;;  %vm248_vm1 = vcmask 1046528  }
   0xd   :  { %v2831_v13 = vld [vmem:[%s4593_s1 + $0x28] sm:$0xff]  ;;  %101 = vmatpush.msra.mxu0 %v2810_v10  ;;  %130 = vmatpush.msra.mxu1 %v2815_v11  ;;  %v2845_v15 = vld [vmem:[%s4593_s1 + $0x20] sm:$0xff]  ;;  %v2263_v16 = vld [vmem:[%s4593_s1 + $0x78] sm:$0xff]  ;;  %vm1264_vm2 = vcmask 1043456   ;;  %vm1257_vm3 = vcmask 687104   ;;  %vm1663_vm4 = vcmask 1045504  }
   0xe   :  { %159 = vmatpush.msra.mxu2 %v2810_v10  ;;  %182 = vmatpush.msra.mxu3 %v2815_v11  ;;  %v50_v17 = vld [vmem:[%s4593_s1 + $0x18] sm:$0xff]  ;;  %v2262_v18 = vld [vmem:[%s4593_s1 + $0x70] sm:$0xff]  ;;  %v2261_v20 = vld [vmem:[%s4593_s1 + $0x68] sm:$0xff]  ;;  %vm1938_vm5 = vcmask 654336   ;;  %vm2047_vm6 = vcmask 1044480   ;;  %vm2150_vm7 = vcmask 982016  }
   0xf   :  { %102 = vmatpush.msra.mxu0 %v2826_v12  ;;  %131 = vmatpush.msra.mxu1 %v2831_v13  ;;  %v49_v19 = vld [vmem:[%s4593_s1 + $0x10] sm:$0xff]  ;;  %v48_v21 = vld [vmem:[%s4593_s1 + $0x8] sm:$0xff]  ;;  %v2260_v22 = vld [vmem:[%s4593_s1 + $0x60] sm:$0xff]  ;;  %vm2229_vm8 = vcmask 73728   ;;  %s2239_s17 = sshll.u32 %s4603_s11, 4  ;;  %s2240_s17 = int_to_ptr.hbm [resolvable:$true] %s2239_s17 }
  0x10   :  { %160 = vmatpush.msra.mxu2 %v2826_v12  ;;  %183 = vmatpush.msra.mxu3 %v2831_v13  ;;  %v47_v23 = vld [vmem:[%s4593_s1] sm:$0xff]  ;;  %v2914_v24 = vld [vmem:[%s4592_s0 + $0x10] sm:$0xff]  ;;  %v2929_v27 = vld [vmem:[%s4593_s1 + $0x298] sm:$0xff] }
  0x11   :  { %103 = vmatpush.msra.mxu0 %v2840_v14  ;;  %132 = vmatpush.msra.mxu1 %v2845_v15  ;;  %v2919_v25 = vld [vmem:[%s4592_s0] sm:$0xff]  ;;  %v2934_v28 = vld [vmem:[%s4593_s1 + $0x238] sm:$0xff]  ;;  %v2947_v29 = vld [vmem:[%s4593_s1 + $0x290] sm:$0xff] }
  0x12   :  { %161 = vmatpush.msra.mxu2 %v2840_v14  ;;  %184 = vmatpush.msra.mxu3 %v2845_v15  ;;  %v2924_v26 = vld [vmem:[%s4592_s0 + $0x20] sm:$0xff]  ;;  %v2952_v30 = vld [vmem:[%s4593_s1 + $0x230] sm:$0xff]  ;;  %v2961_v31 = vld [vmem:[%s4593_s1 + $0x288] sm:$0xff]  ;;  %v249_v50 = vrot.slane %v2919_v25, 1 }
  0x13   :  { %104 = vmatpush.msra.mxu0 %v2263_v16  ;;  %133 = vmatpush.msra.mxu1 %v50_v17  ;;  %v2966_v32 = vld [vmem:[%s4593_s1 + $0x228] sm:$0xff]  ;;  %v2975_v33 = vld [vmem:[%s4593_s1 + $0x280] sm:$0xff]  ;;  %v2989_v35 = vld [vmem:[%s4593_s1 + $0x278] sm:$0xff] }
  0x14   :  { %162 = vmatpush.msra.mxu2 %v2263_v16  ;;  %185 = vmatpush.msra.mxu3 %v50_v17  ;;  %v2980_v34 = vld [vmem:[%s4593_s1 + $0x220] sm:$0xff]  ;;  %v2994_v36 = vld [vmem:[%s4593_s1 + $0x218] sm:$0xff]  ;;  %v3003_v37 = vld [vmem:[%s4593_s1 + $0x270] sm:$0xff] }
  0x15   :  { %105 = vmatpush.msra.mxu0 %v2262_v18  ;;  %134 = vmatpush.msra.mxu1 %v49_v19  ;;  %v3008_v38 = vld [vmem:[%s4593_s1 + $0x210] sm:$0xff]  ;;  %v3017_v39 = vld [vmem:[%s4593_s1 + $0x268] sm:$0xff]  ;;  %v3031_v41 = vld [vmem:[%s4592_s0 + $0x18] sm:$0xff] }
  0x16   :  { %163 = vmatpush.msra.mxu2 %v2262_v18  ;;  %186 = vmatpush.msra.mxu3 %v49_v19  ;;  %v3022_v40 = vld [vmem:[%s4593_s1 + $0x208] sm:$0xff]  ;;  %v3050_v44 = vld [vmem:[%s4593_s1 + $0x260] sm:$0xff]  ;;  %v3068_v46 = vld [vmem:[%s4593_s1 + $0x258] sm:$0xff] }
  0x17   :  { %106 = vmatpush.msra.mxu0 %v2261_v20  ;;  %135 = vmatpush.msra.mxu1 %v48_v21  ;;  %v3036_v42 = vld [vmem:[%s4592_s0 + $0x8] sm:$0xff]  ;;  %v3055_v45 = vld [vmem:[%s4593_s1 + $0x200] sm:$0xff]  ;;  %v3073_v47 = vld [vmem:[%s4593_s1 + $0x1f8] sm:$0xff] }
  0x18   :  { %164 = vmatpush.msra.mxu2 %v2261_v20  ;;  %187 = vmatpush.msra.mxu3 %v48_v21  ;;  %v3043_v43 = vld [vmem:[%s4592_s0 + $0x28] sm:$0xff]  ;;  %v3082_v48 = vld [vmem:[%s4593_s1 + $0x250] sm:$0xff]  ;;  %v3091_v51 = vrot.slane %v3036_v42, 1  ;;  %v3127_v56 = vld [vmem:[%s4593_s1 + $0x240] sm:$0xff] }
  0x19   :  { %107 = vmatpush.msra.mxu0 %v2260_v22  ;;  %136 = vmatpush.msra.mxu1 %v47_v23  ;;  %v3087_v49 = vld [vmem:[%s4593_s1 + $0x1f0] sm:$0xff]  ;;  %v3100_v52 = vld [vmem:[%s4593_s1 + $0x248] sm:$0xff]  ;;  %v3132_v57 = vld [vmem:[%s4593_s1 + $0x1e0] sm:$0xff] }
  0x1a   :  { %165 = vmatpush.msra.mxu2 %v2260_v22  ;;  %188 = vmatpush.msra.mxu3 %v47_v23  ;;  %v3105_v53 = vld [vmem:[%s4593_s1 + $0x1e8] sm:$0xff]  ;;  %v3114_v54 = vld [vmem:[%s4592_s0 + $0x30] sm:$0xff]  ;;  %v3120_v55 = vsel %vm248_vm1, %v249_v50, %v3091_v51  ;;  %v3157_v58 = vld [vmem:[%s4592_s0 + $0x38] sm:$0xff] }
  0x1b   :  { %206 = vmatpush.msrb.mxu0 %v2746_v0  ;;  %229 = vmatpush.msrb.mxu1 %v2751_v1  ;;  %v2327_v59 = vld [vmem:[%s4593_s1 + $0x118] sm:$0xff]  ;;  %v2326_v60 = vld [vmem:[%s4593_s1 + $0x110] sm:$0xff]  ;;  %v2325_v61 = vld [vmem:[%s4593_s1 + $0x108] sm:$0xff] }
  0x1c   :  { %260 = vmatpush.msrb.mxu2 %v2746_v0  ;;  %283 = vmatpush.msrb.mxu3 %v2751_v1  ;;  %v2324_v62 = vld [vmem:[%s4593_s1 + $0x100] sm:$0xff]  ;;  %v2323_v63 = vld [vmem:[%s4593_s1 + $0xf8] sm:$0xff]  ;;  %v2322_v0 = vld [vmem:[%s4593_s1 + $0xf0] sm:$0xff] }
  0x1d   :  { %207 = vmatpush.msrb.mxu0 %v2756_v2  ;;  %230 = vmatpush.msrb.mxu1 %v2763_v3  ;;  %v2321_v1 = vld [vmem:[%s4593_s1 + $0xe8] sm:$0xff]  ;;  %v2406_v50 = vld [vmem:[%s4593_s1 + $0x1d0] sm:$0xff] }
  0x1e   :  { %261 = vmatpush.msrb.mxu2 %v2756_v2  ;;  %284 = vmatpush.msrb.mxu3 %v2763_v3  ;;  %v2320_v2 = vld [vmem:[%s4593_s1 + $0xe0] sm:$0xff]  ;;  %v2319_v3 = vld [vmem:[%s4593_s1 + $0xd8] sm:$0xff] }
  0x1f   :  { %208 = vmatpush.msrb.mxu0 %v2770_v4  ;;  %231 = vmatpush.msrb.mxu1 %v2775_v5 }
  0x20   :  { %262 = vmatpush.msrb.mxu2 %v2770_v4  ;;  %285 = vmatpush.msrb.mxu3 %v2775_v5  ;;  %v2318_v4 = vld [vmem:[%s4593_s1 + $0xd0] sm:$0xff]  ;;  %v2317_v5 = vld [vmem:[%s4593_s1 + $0xc8] sm:$0xff] }
  0x21   :  { %209 = vmatpush.msrb.mxu0 %v2784_v6  ;;  %232 = vmatpush.msrb.mxu1 %v2789_v7 }
  0x22   :  { %263 = vmatpush.msrb.mxu2 %v2784_v6  ;;  %286 = vmatpush.msrb.mxu3 %v2789_v7  ;;  %v587_v6 = vrot.slane %v2914_v24, 1  ;;  %v3274_v7 = vrot.slane %v3031_v41, 1 }
  0x23   :  { %210 = vmatpush.msrb.mxu0 %v2798_v8  ;;  %233 = vmatpush.msrb.mxu1 %v2803_v9 }
  0x24   :  { %264 = vmatpush.msrb.mxu2 %v2798_v8  ;;  %287 = vmatpush.msrb.mxu3 %v2803_v9  ;;  %v2316_v8 = vld [vmem:[%s4593_s1 + $0xc0] sm:$0xff]  ;;  %v3281_v9 = vsel %vm248_vm1, %v587_v6, %v3274_v7  ;;  %v1053_v6 = vrot.slane %v3114_v54, 1 }
  0x25   :  { %211 = vmatpush.msrb.mxu0 %v2810_v10  ;;  %234 = vmatpush.msrb.mxu1 %v2815_v11 }
  0x26   :  { %265 = vmatpush.msrb.mxu2 %v2810_v10  ;;  %288 = vmatpush.msrb.mxu3 %v2815_v11  ;;  %v2347_v10 = vld [vmem:[%s4593_s1 + $0x2f8] sm:$0xff]  ;;  %v2346_v11 = vld [vmem:[%s4593_s1 + $0x2f0] sm:$0xff] }
  0x27   :  { %212 = vmatpush.msrb.mxu0 %v2826_v12  ;;  %235 = vmatpush.msrb.mxu1 %v2831_v13 }
  0x28   :  { %266 = vmatpush.msrb.mxu2 %v2826_v12  ;;  %289 = vmatpush.msrb.mxu3 %v2831_v13  ;;  %v2345_v12 = vld [vmem:[%s4593_s1 + $0x2e8] sm:$0xff]  ;;  %v2344_v13 = vld [vmem:[%s4593_s1 + $0x2e0] sm:$0xff] }
  0x29   :  { %213 = vmatpush.msrb.mxu0 %v2840_v14  ;;  %236 = vmatpush.msrb.mxu1 %v2845_v15 }
  0x2a   :  { %267 = vmatpush.msrb.mxu2 %v2840_v14  ;;  %290 = vmatpush.msrb.mxu3 %v2845_v15  ;;  %v2343_v14 = vld [vmem:[%s4593_s1 + $0x2d8] sm:$0xff]  ;;  %v2342_v15 = vld [vmem:[%s4593_s1 + $0x2d0] sm:$0xff] }
  0x2b   :  { %214 = vmatpush.msrb.mxu0 %v2263_v16  ;;  %237 = vmatpush.msrb.mxu1 %v50_v17 }
  0x2c   :  { %268 = vmatpush.msrb.mxu2 %v2263_v16  ;;  %291 = vmatpush.msrb.mxu3 %v50_v17  ;;  %v2341_v16 = vld [vmem:[%s4593_s1 + $0x2c8] sm:$0xff]  ;;  %v2340_v17 = vld [vmem:[%s4593_s1 + $0x2c0] sm:$0xff] }
  0x2d   :  { %215 = vmatpush.msrb.mxu0 %v2262_v18  ;;  %238 = vmatpush.msrb.mxu1 %v49_v19 }
  0x2e   :  { %269 = vmatpush.msrb.mxu2 %v2262_v18  ;;  %292 = vmatpush.msrb.mxu3 %v49_v19  ;;  %v2339_v18 = vld [vmem:[%s4593_s1 + $0x2b8] sm:$0xff]  ;;  %v2338_v19 = vld [vmem:[%s4593_s1 + $0x2b0] sm:$0xff] }
  0x2f   :  { %216 = vmatpush.msrb.mxu0 %v2261_v20  ;;  %239 = vmatpush.msrb.mxu1 %v48_v21 }
  0x30   :  { %270 = vmatpush.msrb.mxu2 %v2261_v20  ;;  %293 = vmatpush.msrb.mxu3 %v48_v21  ;;  %v2337_v20 = vld [vmem:[%s4593_s1 + $0x2a8] sm:$0xff]  ;;  %v2336_v21 = vld [vmem:[%s4593_s1 + $0x2a0] sm:$0xff] }
  0x31   :  { %217 = vmatpush.msrb.mxu0 %v2260_v22  ;;  %240 = vmatpush.msrb.mxu1 %v47_v23 }
  0x32   :  { %271 = vmatpush.msrb.mxu2 %v2260_v22  ;;  %294 = vmatpush.msrb.mxu3 %v47_v23  ;;  %v2367_v22 = vld [vmem:[%s4593_s1 + $0x178] sm:$0xff]  ;;  %v2366_v23 = vld [vmem:[%s4593_s1 + $0x170] sm:$0xff] }
  0x33   :  { %2272 = vmatmul.msk.f32.vlgmr.msra.gmra.mxu0 %vm85_vm0, %v2914_v24  ;;  %2274 = vmatmul.msk.f32.vlgmr.msra.gmra.mxu1 %vm85_vm0, %v2919_v25 }
  0x34   :  { %2276 = vmatmul.msk.f32.vlgmr.msra.gmra.mxu2 %vm85_vm0, %v2924_v26  ;;  %2278 = vmatmul.msk.f32.vlgmr.msra.gmra.mxu3 %vm85_vm0, %v2914_v24 }
  0x35   :  { %319 = vmatpush.msra.mxu0 %v2929_v27  ;;  %342 = vmatpush.msra.mxu1 %v2934_v28 }
  0x36   :  { %365 = vmatpush.msra.mxu2 %v2929_v27  ;;  %388 = vmatpush.msra.mxu3 %v2934_v28 }
  0x37   :  { %320 = vmatpush.msra.mxu0 %v2947_v29  ;;  %343 = vmatpush.msra.mxu1 %v2952_v30 }
  0x38   :  { %366 = vmatpush.msra.mxu2 %v2947_v29  ;;  %389 = vmatpush.msra.mxu3 %v2952_v30 }
  0x39   :  { %321 = vmatpush.msra.mxu0 %v2961_v31  ;;  %344 = vmatpush.msra.mxu1 %v2966_v32 }
  0x3a   :  { %367 = vmatpush.msra.mxu2 %v2961_v31  ;;  %390 = vmatpush.msra.mxu3 %v2966_v32 }
  0x3b   :  { %322 = vmatpush.msra.mxu0 %v2975_v33  ;;  %345 = vmatpush.msra.mxu1 %v2980_v34 }
  0x3c   :  { %368 = vmatpush.msra.mxu2 %v2975_v33  ;;  %391 = vmatpush.msra.mxu3 %v2980_v34 }
  0x3d   :  { %323 = vmatpush.msra.mxu0 %v2989_v35  ;;  %346 = vmatpush.msra.mxu1 %v2994_v36 }
  0x3e   :  { %369 = vmatpush.msra.mxu2 %v2989_v35  ;;  %392 = vmatpush.msra.mxu3 %v2994_v36 }
  0x3f   :  { %324 = vmatpush.msra.mxu0 %v3003_v37  ;;  %347 = vmatpush.msra.mxu1 %v3008_v38 }
  0x40   :  { %370 = vmatpush.msra.mxu2 %v3003_v37  ;;  %393 = vmatpush.msra.mxu3 %v3008_v38 }
  0x41   :  { %325 = vmatpush.msra.mxu0 %v3017_v39  ;;  %348 = vmatpush.msra.mxu1 %v3022_v40 }
  0x42   :  { %371 = vmatpush.msra.mxu2 %v3017_v39  ;;  %394 = vmatpush.msra.mxu3 %v3022_v40 }
  0x43   :  { %2273 = vmatmul.msk.f32.gmra.mxu0 %vm85_vm0, %v3031_v41  ;;  %2275 = vmatmul.msk.f32.gmra.mxu1 %vm85_vm0, %v3036_v42 }
  0x44   :  { %2277 = vmatmul.msk.f32.gmra.mxu2 %vm85_vm0, %v3043_v43  ;;  %2279 = vmatmul.msk.f32.gmra.mxu3 %vm85_vm0, %v3031_v41 }
  0x45   :  { %326 = vmatpush.msra.mxu0 %v3050_v44  ;;  %349 = vmatpush.msra.mxu1 %v3055_v45 }
  0x46   :  { %372 = vmatpush.msra.mxu2 %v3050_v44  ;;  %395 = vmatpush.msra.mxu3 %v3055_v45 }
  0x47   :  { %327 = vmatpush.msra.mxu0 %v3068_v46  ;;  %350 = vmatpush.msra.mxu1 %v3073_v47 }
  0x48   :  { %373 = vmatpush.msra.mxu2 %v3068_v46  ;;  %396 = vmatpush.msra.mxu3 %v3073_v47 }
  0x49   :  { %328 = vmatpush.msra.mxu0 %v3082_v48  ;;  %351 = vmatpush.msra.mxu1 %v3087_v49 }
  0x4a   :  { %374 = vmatpush.msra.mxu2 %v3082_v48  ;;  %397 = vmatpush.msra.mxu3 %v3087_v49 }
  0x4b   :  { %329 = vmatpush.msra.mxu0 %v3100_v52  ;;  %352 = vmatpush.msra.mxu1 %v3105_v53 }
  0x4c   :  { %375 = vmatpush.msra.mxu2 %v3100_v52  ;;  %398 = vmatpush.msra.mxu3 %v3105_v53 }
  0x4d   :  { %2280 = vmatmul.msk.f32.vlgmr.msrb.gmra.mxu0 %vm85_vm0, %v3114_v54  ;;  %2282 = vmatmul.msk.f32.vlgmr.msrb.gmra.mxu1 %vm85_vm0, %v2924_v26 }
  0x4e   :  { %2284 = vmatmul.msk.f32.vlgmr.msrb.gmra.mxu2 %vm85_vm0, %v3120_v55  ;;  %2286 = vmatmul.msk.f32.vlgmr.msrb.gmra.mxu3 %vm85_vm0, %v3114_v54 }
  0x4f   :  { %330 = vmatpush.msra.mxu0 %v3127_v56  ;;  %353 = vmatpush.msra.mxu1 %v3132_v57 }
  0x50   :  { %376 = vmatpush.msra.mxu2 %v3127_v56  ;;  %399 = vmatpush.msra.mxu3 %v3132_v57 }
  0x51   :  { %411 = vmatpush.msrb.mxu0 %v2929_v27  ;;  %434 = vmatpush.msrb.mxu1 %v2934_v28 }
  0x52   :  { %457 = vmatpush.msrb.mxu2 %v2929_v27  ;;  %480 = vmatpush.msrb.mxu3 %v2934_v28  ;;  %v2363_v27 = vld [vmem:[%s4593_s1 + $0x158] sm:$0xff]  ;;  %v2362_v28 = vld [vmem:[%s4593_s1 + $0x150] sm:$0xff] }
  0x53   :  { %412 = vmatpush.msrb.mxu0 %v2947_v29  ;;  %435 = vmatpush.msrb.mxu1 %v2952_v30 }
  0x54   :  { %458 = vmatpush.msrb.mxu2 %v2947_v29  ;;  %481 = vmatpush.msrb.mxu3 %v2952_v30  ;;  %v2361_v29 = vld [vmem:[%s4593_s1 + $0x148] sm:$0xff]  ;;  %v2360_v30 = vld [vmem:[%s4593_s1 + $0x140] sm:$0xff] }
  0x55   :  { %413 = vmatpush.msrb.mxu0 %v2961_v31  ;;  %436 = vmatpush.msrb.mxu1 %v2966_v32 }
  0x56   :  { %459 = vmatpush.msrb.mxu2 %v2961_v31  ;;  %482 = vmatpush.msrb.mxu3 %v2966_v32  ;;  %v2359_v31 = vld [vmem:[%s4593_s1 + $0x138] sm:$0xff]  ;;  %v2358_v32 = vld [vmem:[%s4593_s1 + $0x130] sm:$0xff] }
  0x57   :  { %2281 = vmatmul.msk.f32.gmra.mxu0 %vm85_vm0, %v3157_v58  ;;  %2283 = vmatmul.msk.f32.gmra.mxu1 %vm85_vm0, %v3043_v43 }
  0x58   :  { %2285 = vmatmul.msk.f32.gmra.mxu2 %vm85_vm0, %v3091_v51  ;;  %2287 = vmatmul.msk.f32.gmra.mxu3 %vm85_vm0, %v3157_v58 }
  0x59   :  { %414 = vmatpush.msrb.mxu0 %v2975_v33  ;;  %437 = vmatpush.msrb.mxu1 %v2980_v34 }
  0x5a   :  { %460 = vmatpush.msrb.mxu2 %v2975_v33  ;;  %483 = vmatpush.msrb.mxu3 %v2980_v34  ;;  %v2357_v33 = vld [vmem:[%s4593_s1 + $0x128] sm:$0xff]  ;;  %v820_v34 = vrot.slane %v2924_v26, 1 }
  0x5b   :  { %415 = vmatpush.msrb.mxu0 %v2989_v35  ;;  %438 = vmatpush.msrb.mxu1 %v2994_v36 }
  0x5c   :  { %461 = vmatpush.msrb.mxu2 %v2989_v35  ;;  %484 = vmatpush.msrb.mxu3 %v2994_v36  ;;  %v3386_v35 = vrot.slane %v3043_v43, 1  ;;  %v2356_v36 = vld [vmem:[%s4593_s1 + $0x120] sm:$0xff] }
  0x5d   :  { %416 = vmatpush.msrb.mxu0 %v3003_v37  ;;  %439 = vmatpush.msrb.mxu1 %v3008_v38 }
  0x5e   :  { %462 = vmatpush.msrb.mxu2 %v3003_v37  ;;  %485 = vmatpush.msrb.mxu3 %v3008_v38  ;;  %v3393_v37 = vsel %vm248_vm1, %v820_v34, %v3386_v35  ;;  %v2386_v38 = vld [vmem:[%s4593_s1 + $0x350] sm:$0xff]  ;;  %v2416_v34 = vld [vmem:[%s4593_s1 + $0x360] sm:$0xff] }
  0x5f   :  { %417 = vmatpush.msrb.mxu0 %v3017_v39  ;;  %440 = vmatpush.msrb.mxu1 %v3022_v40 }
  0x60   :  { %463 = vmatpush.msrb.mxu2 %v3017_v39  ;;  %486 = vmatpush.msrb.mxu3 %v3022_v40  ;;  %v2385_v39 = vld [vmem:[%s4593_s1 + $0x348] sm:$0xff]  ;;  %v2384_v40 = vld [vmem:[%s4593_s1 + $0x340] sm:$0xff] }
  0x61   :  { %2300 = vmatmul.msk.f32.vlgmr.msra.gmra.mxu0 %vm85_vm0, %v2914_v24  ;;  %2302 = vmatmul.msk.f32.vlgmr.msra.gmra.mxu1 %vm85_vm0, %v2919_v25  ;;  %v2364_v25 = vld [vmem:[%s4593_s1 + $0x160] sm:$0xff] }
  0x62   :  { %2304 = vmatmul.msk.f32.vlgmr.msra.gmra.mxu2 %vm85_vm0, %v2924_v26  ;;  %2306 = vmatmul.msk.f32.vlgmr.msra.gmra.mxu3 %vm85_vm0, %v2914_v24  ;;  %v2365_v24 = vld [vmem:[%s4593_s1 + $0x168] sm:$0xff] }
  0x63   :  { %418 = vmatpush.msrb.mxu0 %v3050_v44  ;;  %441 = vmatpush.msrb.mxu1 %v3055_v45 }
  0x64   :  { %464 = vmatpush.msrb.mxu2 %v3050_v44  ;;  %487 = vmatpush.msrb.mxu3 %v3055_v45  ;;  %v2380_v44 = vld [vmem:[%s4593_s1 + $0x320] sm:$0xff]  ;;  %v2379_v45 = vld [vmem:[%s4593_s1 + $0x318] sm:$0xff] }
  0x65   :  { %419 = vmatpush.msrb.mxu0 %v3068_v46  ;;  %442 = vmatpush.msrb.mxu1 %v3073_v47 }
  0x66   :  { %465 = vmatpush.msrb.mxu2 %v3068_v46  ;;  %488 = vmatpush.msrb.mxu3 %v3073_v47  ;;  %v2378_v46 = vld [vmem:[%s4593_s1 + $0x310] sm:$0xff]  ;;  %v2377_v47 = vld [vmem:[%s4593_s1 + $0x308] sm:$0xff] }
  0x67   :  { %420 = vmatpush.msrb.mxu0 %v3082_v48  ;;  %443 = vmatpush.msrb.mxu1 %v3087_v49 }
  0x68   :  { %466 = vmatpush.msrb.mxu2 %v3082_v48  ;;  %489 = vmatpush.msrb.mxu3 %v3087_v49  ;;  %v2376_v48 = vld [vmem:[%s4593_s1 + $0x300] sm:$0xff]  ;;  %v2407_v49 = vld [vmem:[%s4593_s1 + $0x1d8] sm:$0xff] }
  0x69   :  { %421 = vmatpush.msrb.mxu0 %v3100_v52  ;;  %444 = vmatpush.msrb.mxu1 %v3105_v53 }
  0x6a   :  { %467 = vmatpush.msrb.mxu2 %v3100_v52  ;;  %490 = vmatpush.msrb.mxu3 %v3105_v53  ;;  %v2405_v52 = vld [vmem:[%s4593_s1 + $0x1c8] sm:$0xff]  ;;  %v2404_v53 = vld [vmem:[%s4593_s1 + $0x1c0] sm:$0xff] }
  0x6b   :  { %2301 = vmatmul.msk.f32.gmra.mxu0 %vm85_vm0, %v3031_v41  ;;  %2303 = vmatmul.msk.f32.gmra.mxu1 %vm85_vm0, %v3036_v42  ;;  %v2382_v42 = vld [vmem:[%s4593_s1 + $0x330] sm:$0xff] }
  0x6c   :  { %2305 = vmatmul.msk.f32.gmra.mxu2 %vm85_vm0, %v3043_v43  ;;  %2307 = vmatmul.msk.f32.gmra.mxu3 %vm85_vm0, %v3031_v41  ;;  %v2383_v41 = vld [vmem:[%s4593_s1 + $0x338] sm:$0xff] }
  0x6d   :  { %422 = vmatpush.msrb.mxu0 %v3127_v56  ;;  %445 = vmatpush.msrb.mxu1 %v3132_v57 }
  0x6e   :  { %468 = vmatpush.msrb.mxu2 %v3127_v56  ;;  %491 = vmatpush.msrb.mxu3 %v3132_v57  ;;  %v2403_v56 = vld [vmem:[%s4593_s1 + $0x1b8] sm:$0xff]  ;;  %v2402_v57 = vld [vmem:[%s4593_s1 + $0x1b0] sm:$0xff] }
  0x6f   :  { %516 = vmatpush.msra.mxu0 %v2327_v59  ;;  %541 = vmatpush.msra.mxu1 %v2327_v59 }
  0x70   :  { %566 = vmatpush.msra.mxu2 %v2327_v59  ;;  %598 = vmatpush.msra.mxu3 %v2327_v59 }
  0x71   :  { %517 = vmatpush.msra.mxu0 %v2326_v60  ;;  %542 = vmatpush.msra.mxu1 %v2326_v60 }
  0x72   :  { %567 = vmatpush.msra.mxu2 %v2326_v60  ;;  %599 = vmatpush.msra.mxu3 %v2326_v60 }
  0x73   :  { %518 = vmatpush.msra.mxu0 %v2325_v61  ;;  %543 = vmatpush.msra.mxu1 %v2325_v61 }
  0x74   :  { %568 = vmatpush.msra.mxu2 %v2325_v61  ;;  %600 = vmatpush.msra.mxu3 %v2325_v61  ;;  %v2401_v61 = vld [vmem:[%s4593_s1 + $0x1a8] sm:$0xff] }
  0x75   :  { %519 = vmatpush.msra.mxu0 %v2324_v62  ;;  %544 = vmatpush.msra.mxu1 %v2324_v62 }
  0x76   :  { %569 = vmatpush.msra.mxu2 %v2324_v62  ;;  %601 = vmatpush.msra.mxu3 %v2324_v62  ;;  %v2400_v62 = vld [vmem:[%s4593_s1 + $0x1a0] sm:$0xff] }
  0x77   :  { %2308 = vmatmul.msk.f32.vlgmr.msrb.gmra.mxu0 %vm85_vm0, %v3114_v54  ;;  %2310 = vmatmul.msk.f32.vlgmr.msrb.gmra.mxu1 %vm85_vm0, %v2924_v26 }
  0x78   :  { %2312 = vmatmul.msk.f32.vlgmr.msrb.gmra.mxu2 %vm85_vm0, %v3120_v55  ;;  %2314 = vmatmul.msk.f32.vlgmr.msrb.gmra.mxu3 %vm85_vm0, %v3114_v54 }
  0x79   :  { %520 = vmatpush.msra.mxu0 %v2323_v63  ;;  %545 = vmatpush.msra.mxu1 %v2323_v63 }
  0x7a   :  { %570 = vmatpush.msra.mxu2 %v2323_v63  ;;  %602 = vmatpush.msra.mxu3 %v2323_v63  ;;  %v2399_v63 = vld [vmem:[%s4593_s1 + $0x198] sm:$0xff] }
  0x7b   :  { %521 = vmatpush.msra.mxu0 %v2322_v0  ;;  %546 = vmatpush.msra.mxu1 %v2322_v0 }
  0x7c   :  { %571 = vmatpush.msra.mxu2 %v2322_v0  ;;  %603 = vmatpush.msra.mxu3 %v2322_v0 }
  0x7d   :  { %522 = vmatpush.msra.mxu0 %v2321_v1  ;;  %547 = vmatpush.msra.mxu1 %v2321_v1 }
  0x7e   :  { %572 = vmatpush.msra.mxu2 %v2321_v1  ;;  %604 = vmatpush.msra.mxu3 %v2321_v1 }
  0x7f   :  { %523 = vmatpush.msra.mxu0 %v2320_v2  ;;  %548 = vmatpush.msra.mxu1 %v2320_v2 }
  0x80   :  { %573 = vmatpush.msra.mxu2 %v2320_v2  ;;  %605 = vmatpush.msra.mxu3 %v2320_v2  ;;  %v2398_v2 = vld [vmem:[%s4593_s1 + $0x190] sm:$0xff] }
  0x81   :  { %2309 = vmatmul.msk.f32.gmra.mxu0 %vm85_vm0, %v3157_v58  ;;  %2311 = vmatmul.msk.f32.gmra.mxu1 %vm85_vm0, %v3043_v43 }
  0x82   :  { %2313 = vmatmul.msk.f32.gmra.mxu2 %vm85_vm0, %v3091_v51  ;;  %2315 = vmatmul.msk.f32.gmra.mxu3 %vm85_vm0, %v3157_v58 }
  0x83   :  { %524 = vmatpush.msra.mxu0 %v2319_v3  ;;  %549 = vmatpush.msra.mxu1 %v2319_v3 }
  0x84   :  { %574 = vmatpush.msra.mxu2 %v2319_v3  ;;  %606 = vmatpush.msra.mxu3 %v2319_v3 }
  0x85   :  { %525 = vmatpush.msra.mxu0 %v2318_v4  ;;  %550 = vmatpush.msra.mxu1 %v2318_v4 }
  0x86   :  { %575 = vmatpush.msra.mxu2 %v2318_v4  ;;  %607 = vmatpush.msra.mxu3 %v2318_v4 }
  0x87   :  { %526 = vmatpush.msra.mxu0 %v2317_v5  ;;  %551 = vmatpush.msra.mxu1 %v2317_v5 }
  0x88   :  { %576 = vmatpush.msra.mxu2 %v2317_v5  ;;  %608 = vmatpush.msra.mxu3 %v2317_v5  ;;  %v2397_v5 = vld [vmem:[%s4593_s1 + $0x188] sm:$0xff] }
  0x89   :  { %527 = vmatpush.msra.mxu0 %v2316_v8  ;;  %552 = vmatpush.msra.mxu1 %v2316_v8 }
  0x8a   :  { %577 = vmatpush.msra.mxu2 %v2316_v8  ;;  %609 = vmatpush.msra.mxu3 %v2316_v8  ;;  %v3510_v8 = vrot.slane %v3157_v58, 1 }
  0x8b   :  { %2328 = vmatmul.msk.f32.vlgmr.msra.gmra.mxu0 %vm85_vm0, %v2924_v26  ;;  %2330 = vmatmul.msk.f32.vlgmr.msra.gmra.mxu1 %vm85_vm0, %v3114_v54 }
  0x8c   :  { %2332 = vmatmul.msk.f32.vlgmr.msra.gmra.mxu2 %vm85_vm0, %v3120_v55  ;;  %2334 = vmatmul.msk.f32.vlgmr.msra.gmra.mxu3 %vm85_vm0, %v3281_v9 }
  0x8d   :  { %636 = vmatpush.msrb.mxu0 %v2347_v10  ;;  %661 = vmatpush.msrb.mxu1 %v2347_v10 }
  0x8e   :  { %686 = vmatpush.msrb.mxu2 %v2347_v10  ;;  %711 = vmatpush.msrb.mxu3 %v2347_v10  ;;  %v2396_v10 = vld [vmem:[%s4593_s1 + $0x180] sm:$0xff] }
  0x8f   :  { %637 = vmatpush.msrb.mxu0 %v2346_v11  ;;  %662 = vmatpush.msrb.mxu1 %v2346_v11 }
  0x90   :  { %687 = vmatpush.msrb.mxu2 %v2346_v11  ;;  %712 = vmatpush.msrb.mxu3 %v2346_v11  ;;  %v3517_v11 = vsel %vm248_vm1, %v1053_v6, %v3510_v8 }
  0x91   :  { %638 = vmatpush.msrb.mxu0 %v2345_v12  ;;  %663 = vmatpush.msrb.mxu1 %v2345_v12 }
  0x92   :  { %688 = vmatpush.msrb.mxu2 %v2345_v12  ;;  %713 = vmatpush.msrb.mxu3 %v2345_v12 }
  0x93   :  { %639 = vmatpush.msrb.mxu0 %v2344_v13  ;;  %664 = vmatpush.msrb.mxu1 %v2344_v13 }
  0x94   :  { %689 = vmatpush.msrb.mxu2 %v2344_v13  ;;  %714 = vmatpush.msrb.mxu3 %v2344_v13  ;;  %v2426_v13 = vld [vmem:[%s4593_s1 + $0x3b0] sm:$0xff] }
  0x95   :  { %2329 = vmatmul.msk.f32.gmra.mxu0 %vm85_vm0, %v3043_v43  ;;  %2331 = vmatmul.msk.f32.gmra.mxu1 %vm85_vm0, %v3157_v58 }
  0x96   :  { %2333 = vmatmul.msk.f32.gmra.mxu2 %vm85_vm0, %v3091_v51  ;;  %2335 = vmatmul.msk.f32.gmra.mxu3 %vm85_vm0, %v3274_v7 }
  0x97   :  { %640 = vmatpush.msrb.mxu0 %v2343_v14  ;;  %665 = vmatpush.msrb.mxu1 %v2343_v14 }
  0x98   :  { %690 = vmatpush.msrb.mxu2 %v2343_v14  ;;  %715 = vmatpush.msrb.mxu3 %v2343_v14 }
  0x99   :  { %641 = vmatpush.msrb.mxu0 %v2342_v15  ;;  %666 = vmatpush.msrb.mxu1 %v2342_v15 }
  0x9a   :  { %691 = vmatpush.msrb.mxu2 %v2342_v15  ;;  %716 = vmatpush.msrb.mxu3 %v2342_v15 }
  0x9b   :  { %642 = vmatpush.msrb.mxu0 %v2341_v16  ;;  %667 = vmatpush.msrb.mxu1 %v2341_v16 }
  0x9c   :  { %692 = vmatpush.msrb.mxu2 %v2341_v16  ;;  %717 = vmatpush.msrb.mxu3 %v2341_v16  ;;  %v2425_v16 = vld [vmem:[%s4593_s1 + $0x3a8] sm:$0xff] }
  0x9d   :  { %643 = vmatpush.msrb.mxu0 %v2340_v17  ;;  %668 = vmatpush.msrb.mxu1 %v2340_v17 }
  0x9e   :  { %693 = vmatpush.msrb.mxu2 %v2340_v17  ;;  %718 = vmatpush.msrb.mxu3 %v2340_v17  ;;  %v2424_v17 = vld [vmem:[%s4593_s1 + $0x3a0] sm:$0xff] }
  0x9f   :  { %644 = vmatpush.msrb.mxu0 %v2339_v18  ;;  %669 = vmatpush.msrb.mxu1 %v2339_v18 }
  0xa0   :  { %694 = vmatpush.msrb.mxu2 %v2339_v18  ;;  %719 = vmatpush.msrb.mxu3 %v2339_v18  ;;  %v2423_v18 = vld [vmem:[%s4593_s1 + $0x398] sm:$0xff] }
  0xa1   :  { %645 = vmatpush.msrb.mxu0 %v2338_v19  ;;  %670 = vmatpush.msrb.mxu1 %v2338_v19 }
  0xa2   :  { %695 = vmatpush.msrb.mxu2 %v2338_v19  ;;  %720 = vmatpush.msrb.mxu3 %v2338_v19 }
  0xa3   :  { %646 = vmatpush.msrb.mxu0 %v2337_v20  ;;  %671 = vmatpush.msrb.mxu1 %v2337_v20 }
  0xa4   :  { %696 = vmatpush.msrb.mxu2 %v2337_v20  ;;  %721 = vmatpush.msrb.mxu3 %v2337_v20 }
  0xa5   :  { %647 = vmatpush.msrb.mxu0 %v2336_v21  ;;  %672 = vmatpush.msrb.mxu1 %v2336_v21 }
  0xa6   :  { %697 = vmatpush.msrb.mxu2 %v2336_v21  ;;  %722 = vmatpush.msrb.mxu3 %v2336_v21  ;;  %v2422_v21 = vld [vmem:[%s4593_s1 + $0x390] sm:$0xff] }
  0xa7   :  { %2348 = vmatmul.msk.f32.vlgmr.msrb.gmra.mxu0 %vm85_vm0, %v2924_v26  ;;  %2350 = vmatmul.msk.f32.vlgmr.msrb.gmra.mxu1 %vm85_vm0, %v3114_v54  ;;  %v2387_v26 = vld [vmem:[%s4593_s1 + $0x358] sm:$0xff] }
  0xa8   :  { %2352 = vmatmul.msk.f32.vlgmr.msrb.gmra.mxu2 %vm85_vm0, %v3120_v55  ;;  %2354 = vmatmul.msk.f32.vlgmr.msrb.gmra.mxu3 %vm85_vm0, %v3281_v9 }
  0xa9   :  { %749 = vmatpush.msra.mxu0 %v2367_v22  ;;  %774 = vmatpush.msra.mxu1 %v2367_v22 }
  0xaa   :  { %799 = vmatpush.msra.mxu2 %v2367_v22  ;;  %831 = vmatpush.msra.mxu3 %v2367_v22 }
  0xab   :  { %750 = vmatpush.msra.mxu0 %v2366_v23  ;;  %775 = vmatpush.msra.mxu1 %v2366_v23 }
  0xac   :  { %800 = vmatpush.msra.mxu2 %v2366_v23  ;;  %832 = vmatpush.msra.mxu3 %v2366_v23 }
  0xad   :  { %751 = vmatpush.msra.mxu0 %v2365_v24  ;;  %776 = vmatpush.msra.mxu1 %v2365_v24 }
  0xae   :  { %801 = vmatpush.msra.mxu2 %v2365_v24  ;;  %833 = vmatpush.msra.mxu3 %v2365_v24  ;;  %v2421_v24 = vld [vmem:[%s4593_s1 + $0x388] sm:$0xff] }
  0xaf   :  { %752 = vmatpush.msra.mxu0 %v2364_v25  ;;  %777 = vmatpush.msra.mxu1 %v2364_v25 }
  0xb0   :  { %802 = vmatpush.msra.mxu2 %v2364_v25  ;;  %834 = vmatpush.msra.mxu3 %v2364_v25  ;;  %v3481_v59 = vpop.f32.mrf.mxu0  ;;  %v3483_v60 = vpop.f32.mrf.mxu1  ;;  %v2420_v25 = vld [vmem:[%s4593_s1 + $0x380] sm:$0xff] }
  0xb1   :  { %2349 = vmatmul.msk.f32.gmra.mxu0 %vm85_vm0, %v3043_v43  ;;  %2351 = vmatmul.msk.f32.gmra.mxu1 %vm85_vm0, %v3157_v58  ;;  %v2381_v43 = vld [vmem:[%s4593_s1 + $0x328] sm:$0xff] }
  0xb2   :  { %2353 = vmatmul.msk.f32.gmra.mxu2 %vm85_vm0, %v3091_v51  ;;  %2355 = vmatmul.msk.f32.gmra.mxu3 %vm85_vm0, %v3274_v7 }
  0xb3   :  { %753 = vmatpush.msra.mxu0 %v2363_v27  ;;  %778 = vmatpush.msra.mxu1 %v2363_v27 }
  0xb4   :  { %803 = vmatpush.msra.mxu2 %v2363_v27  ;;  %835 = vmatpush.msra.mxu3 %v2363_v27  ;;  %v2419_v27 = vld [vmem:[%s4593_s1 + $0x378] sm:$0xff] }
  0xb5   :  { %754 = vmatpush.msra.mxu0 %v2362_v28  ;;  %779 = vmatpush.msra.mxu1 %v2362_v28 }
  0xb6   :  { %804 = vmatpush.msra.mxu2 %v2362_v28  ;;  %836 = vmatpush.msra.mxu3 %v2362_v28  ;;  %v2418_v28 = vld [vmem:[%s4593_s1 + $0x370] sm:$0xff] }
  0xb7   :  { %755 = vmatpush.msra.mxu0 %v2361_v29  ;;  %780 = vmatpush.msra.mxu1 %v2361_v29  ;;  %v3494_v0 = vpop.f32.mrf.mxu2  ;;  %v3496_v1 = vpop.f32.mrf.mxu3 }
  0xb8   :  { %805 = vmatpush.msra.mxu2 %v2361_v29  ;;  %837 = vmatpush.msra.mxu3 %v2361_v29 }
  0xb9   :  { %756 = vmatpush.msra.mxu0 %v2360_v30  ;;  %781 = vmatpush.msra.mxu1 %v2360_v30 }
  0xba   :  { %806 = vmatpush.msra.mxu2 %v2360_v30  ;;  %838 = vmatpush.msra.mxu3 %v2360_v30 }
  0xbb   :  { %757 = vmatpush.msra.mxu0 %v2359_v31  ;;  %782 = vmatpush.msra.mxu1 %v2359_v31 }
  0xbc   :  { %807 = vmatpush.msra.mxu2 %v2359_v31  ;;  %839 = vmatpush.msra.mxu3 %v2359_v31  ;;  %v2417_v31 = vld [vmem:[%s4593_s1 + $0x368] sm:$0xff] }
  0xbd   :  { %758 = vmatpush.msra.mxu0 %v2358_v32  ;;  %783 = vmatpush.msra.mxu1 %v2358_v32 }
  0xbe   :  { %808 = vmatpush.msra.mxu2 %v2358_v32  ;;  %840 = vmatpush.msra.mxu3 %v2358_v32 }
  0xbf   :  { %759 = vmatpush.msra.mxu0 %v2357_v33  ;;  %784 = vmatpush.msra.mxu1 %v2357_v33 }
  0xc0   :  { %809 = vmatpush.msra.mxu2 %v2357_v33  ;;  %841 = vmatpush.msra.mxu3 %v2357_v33  ;;  %v3501_v3 = vpop.f32.mrf.mxu0  ;;  %v3503_v4 = vpop.f32.mrf.mxu1 }
  0xc1   :  { %760 = vmatpush.msra.mxu0 %v2356_v36  ;;  %785 = vmatpush.msra.mxu1 %v2356_v36 }
  0xc2   :  { %810 = vmatpush.msra.mxu2 %v2356_v36  ;;  %842 = vmatpush.msra.mxu3 %v2356_v36 }
  0xc3   :  { %2368 = vmatmul.msk.f32.vlgmr.msra.gmra.mxu0 %vm85_vm0, %v3114_v54  ;;  %2370 = vmatmul.msk.f32.vlgmr.msra.gmra.mxu1 %vm85_vm0, %v3120_v55 }
  0xc4   :  { %2372 = vmatmul.msk.f32.vlgmr.msra.gmra.mxu2 %vm85_vm0, %v3281_v9  ;;  %2374 = vmatmul.msk.f32.vlgmr.msra.gmra.mxu3 %vm85_vm0, %v3393_v37 }
  0xc5   :  { %869 = vmatpush.msrb.mxu0 %v2387_v26  ;;  %894 = vmatpush.msrb.mxu1 %v2387_v26 }
  0xc6   :  { %919 = vmatpush.msrb.mxu2 %v2387_v26  ;;  %944 = vmatpush.msrb.mxu3 %v2387_v26 }
  0xc7   :  { %870 = vmatpush.msrb.mxu0 %v2386_v38  ;;  %895 = vmatpush.msrb.mxu1 %v2386_v38  ;;  %v3524_v12 = vpop.f32.mrf.mxu3 }
  0xc8   :  { %920 = vmatpush.msrb.mxu2 %v2386_v38  ;;  %945 = vmatpush.msrb.mxu3 %v2386_v38 }
  0xc9   :  { %871 = vmatpush.msrb.mxu0 %v2385_v39  ;;  %896 = vmatpush.msrb.mxu1 %v2385_v39 }
  0xca   :  { %921 = vmatpush.msrb.mxu2 %v2385_v39  ;;  %946 = vmatpush.msrb.mxu3 %v2385_v39  ;;  %v3537_v14 = vpop.f32.mrf.mxu0  ;;  %v3539_v15 = vpop.f32.mrf.mxu1 }
  0xcb   :  { %872 = vmatpush.msrb.mxu0 %v2384_v40  ;;  %897 = vmatpush.msrb.mxu1 %v2384_v40 }
  0xcc   :  { %922 = vmatpush.msrb.mxu2 %v2384_v40  ;;  %947 = vmatpush.msrb.mxu3 %v2384_v40 }
  0xcd   :  { %2369 = vmatmul.msk.f32.gmra.mxu0 %vm85_vm0, %v3157_v58  ;;  %2371 = vmatmul.msk.f32.gmra.mxu1 %vm85_vm0, %v3091_v51 }
  0xce   :  { %2373 = vmatmul.msk.f32.gmra.mxu2 %vm85_vm0, %v3274_v7  ;;  %2375 = vmatmul.msk.f32.gmra.mxu3 %vm85_vm0, %v3386_v35 }
  0xcf   :  { %873 = vmatpush.msrb.mxu0 %v2383_v41  ;;  %898 = vmatpush.msrb.mxu1 %v2383_v41 }
  0xd0   :  { %923 = vmatpush.msrb.mxu2 %v2383_v41  ;;  %948 = vmatpush.msrb.mxu3 %v2383_v41 }
  0xd1   :  { %874 = vmatpush.msrb.mxu0 %v2382_v42  ;;  %899 = vmatpush.msrb.mxu1 %v2382_v42  ;;  %v3552_v20 = vpop.f32.mrf.mxu3 }
  0xd2   :  { %924 = vmatpush.msrb.mxu2 %v2382_v42  ;;  %949 = vmatpush.msrb.mxu3 %v2382_v42 }
  0xd3   :  { %875 = vmatpush.msrb.mxu0 %v2381_v43  ;;  %900 = vmatpush.msrb.mxu1 %v2381_v43 }
  0xd4   :  { %925 = vmatpush.msrb.mxu2 %v2381_v43  ;;  %950 = vmatpush.msrb.mxu3 %v2381_v43  ;;  %v3565_v22 = vpop.f32.mrf.mxu0  ;;  %v3567_v23 = vpop.f32.mrf.mxu1 }
  0xd5   :  { %876 = vmatpush.msrb.mxu0 %v2380_v44  ;;  %901 = vmatpush.msrb.mxu1 %v2380_v44 }
  0xd6   :  { %926 = vmatpush.msrb.mxu2 %v2380_v44  ;;  %951 = vmatpush.msrb.mxu3 %v2380_v44 }
  0xd7   :  { %877 = vmatpush.msrb.mxu0 %v2379_v45  ;;  %902 = vmatpush.msrb.mxu1 %v2379_v45 }
  0xd8   :  { %927 = vmatpush.msrb.mxu2 %v2379_v45  ;;  %952 = vmatpush.msrb.mxu3 %v2379_v45 }
  0xd9   :  { %878 = vmatpush.msrb.mxu0 %v2378_v46  ;;  %903 = vmatpush.msrb.mxu1 %v2378_v46 }
  0xda   :  { %928 = vmatpush.msrb.mxu2 %v2378_v46  ;;  %953 = vmatpush.msrb.mxu3 %v2378_v46 }
  0xdb   :  { %879 = vmatpush.msrb.mxu0 %v2377_v47  ;;  %904 = vmatpush.msrb.mxu1 %v2377_v47  ;;  %v3583_v30 = vpop.f32.mrf.mxu3 }
  0xdc   :  { %929 = vmatpush.msrb.mxu2 %v2377_v47  ;;  %954 = vmatpush.msrb.mxu3 %v2377_v47 }
  0xdd   :  { %880 = vmatpush.msrb.mxu0 %v2376_v48  ;;  %905 = vmatpush.msrb.mxu1 %v2376_v48 }
  0xde   :  { %930 = vmatpush.msrb.mxu2 %v2376_v48  ;;  %955 = vmatpush.msrb.mxu3 %v2376_v48  ;;  %v3588_v32 = vpop.f32.mrf.mxu0  ;;  %v3590_v33 = vpop.f32.mrf.mxu1 }
  0xdf   :  { %2388 = vmatmul.msk.f32.vlgmr.msrb.gmra.mxu0 %vm85_vm0, %v3114_v54  ;;  %2390 = vmatmul.msk.f32.vlgmr.msrb.gmra.mxu1 %vm85_vm0, %v3120_v55  ;;  %v2427_v54 = vld [vmem:[%s4593_s1 + $0x3b8] sm:$0xff] }
  0xe0   :  { %2392 = vmatmul.msk.f32.vlgmr.msrb.gmra.mxu2 %vm85_vm0, %v3281_v9  ;;  %2394 = vmatmul.msk.f32.vlgmr.msrb.gmra.mxu3 %vm85_vm0, %v3393_v37 }
  0xe1   :  { %982 = vmatpush.msra.mxu0 %v2407_v49  ;;  %1007 = vmatpush.msra.mxu1 %v2407_v49 }
  0xe2   :  { %1032 = vmatpush.msra.mxu2 %v2407_v49  ;;  %1064 = vmatpush.msra.mxu3 %v2407_v49 }
  0xe3   :  { %983 = vmatpush.msra.mxu0 %v2406_v50  ;;  %1008 = vmatpush.msra.mxu1 %v2406_v50 }
  0xe4   :  { %1033 = vmatpush.msra.mxu2 %v2406_v50  ;;  %1065 = vmatpush.msra.mxu3 %v2406_v50 }
  0xe5   :  { %984 = vmatpush.msra.mxu0 %v2405_v52  ;;  %1009 = vmatpush.msra.mxu1 %v2405_v52  ;;  %v3605_v26 = vpop.f32.mrf.mxu3 }
  0xe6   :  { %1034 = vmatpush.msra.mxu2 %v2405_v52  ;;  %1066 = vmatpush.msra.mxu3 %v2405_v52 }
  0xe7   :  { %985 = vmatpush.msra.mxu0 %v2404_v53  ;;  %1010 = vmatpush.msra.mxu1 %v2404_v53 }
  0xe8   :  { %1035 = vmatpush.msra.mxu2 %v2404_v53  ;;  %1067 = vmatpush.msra.mxu3 %v2404_v53  ;;  %v3607_v38 = vpop.f32.mrf.mxu0  ;;  %v3609_v39 = vpop.f32.mrf.mxu1 }
  0xe9   :  { %2389 = vmatmul.msk.f32.gmra.mxu0 %vm85_vm0, %v3157_v58  ;;  %2391 = vmatmul.msk.f32.gmra.mxu1 %vm85_vm0, %v3091_v51  ;;  %v3522_v58 = vpop.f32.mrf.mxu2 }
  0xea   :  { %2393 = vmatmul.msk.f32.gmra.mxu2 %vm85_vm0, %v3274_v7  ;;  %2395 = vmatmul.msk.f32.gmra.mxu3 %vm85_vm0, %v3386_v35 }
  0xeb   :  { %986 = vmatpush.msra.mxu0 %v2403_v56  ;;  %1011 = vmatpush.msra.mxu1 %v2403_v56 }
  0xec   :  { %1036 = vmatpush.msra.mxu2 %v2403_v56  ;;  %1068 = vmatpush.msra.mxu3 %v2403_v56 }
  0xed   :  { %987 = vmatpush.msra.mxu0 %v2402_v57  ;;  %1012 = vmatpush.msra.mxu1 %v2402_v57 }
  0xee   :  { %1037 = vmatpush.msra.mxu2 %v2402_v57  ;;  %1069 = vmatpush.msra.mxu3 %v2402_v57  ;;  %v1232_v57 = vld [vmem:[%s4595_s3 + $0x50] sm:$0xf] }
  0xef   :  { %988 = vmatpush.msra.mxu0 %v2401_v61  ;;  %1013 = vmatpush.msra.mxu1 %v2401_v61 }
  0xf0   :  { %1038 = vmatpush.msra.mxu2 %v2401_v61  ;;  %1070 = vmatpush.msra.mxu3 %v2401_v61  ;;  %v1231_v61 = vld [vmem:[%s4595_s3 + $0x48] sm:$0xff] }
  0xf1   :  { %989 = vmatpush.msra.mxu0 %v2400_v62  ;;  %1014 = vmatpush.msra.mxu1 %v2400_v62  ;;  %v3550_v19 = vpop.f32.mrf.mxu2 }
  0xf2   :  { %1039 = vmatpush.msra.mxu2 %v2400_v62  ;;  %1071 = vmatpush.msra.mxu3 %v2400_v62  ;;  %v2457_v62 = vld [vmem:[%s4595_s3 + $0xa8] sm:$0xf] }
  0xf3   :  { %990 = vmatpush.msra.mxu0 %v2399_v63  ;;  %1015 = vmatpush.msra.mxu1 %v2399_v63 }
  0xf4   :  { %1040 = vmatpush.msra.mxu2 %v2399_v63  ;;  %1072 = vmatpush.msra.mxu3 %v2399_v63  ;;  %v3625_v40 = vpop.f32.mrf.mxu1  ;;  %v1230_v63 = vld [vmem:[%s4595_s3 + $0x40] sm:$0xff] }
  0xf5   :  { %991 = vmatpush.msra.mxu0 %v2398_v2  ;;  %1016 = vmatpush.msra.mxu1 %v2398_v2 }
  0xf6   :  { %1041 = vmatpush.msra.mxu2 %v2398_v2  ;;  %1073 = vmatpush.msra.mxu3 %v2398_v2  ;;  %v1229_v2 = vld [vmem:[%s4595_s3 + $0x38] sm:$0xff] }
  0xf7   :  { %992 = vmatpush.msra.mxu0 %v2397_v5  ;;  %1017 = vmatpush.msra.mxu1 %v2397_v5 }
  0xf8   :  { %1042 = vmatpush.msra.mxu2 %v2397_v5  ;;  %1074 = vmatpush.msra.mxu3 %v2397_v5 }
  0xf9   :  { %993 = vmatpush.msra.mxu0 %v2396_v10  ;;  %1018 = vmatpush.msra.mxu1 %v2396_v10  ;;  %v3581_v29 = vpop.f32.mrf.mxu2 }
  0xfa   :  { %1043 = vmatpush.msra.mxu2 %v2396_v10  ;;  %1075 = vmatpush.msra.mxu3 %v2396_v10 }
  0xfb   :  { %2408 = vmatmul.msk.f32.vlgmr.msra.gmra.mxu0 %vm85_vm0, %v3120_v55  ;;  %2410 = vmatmul.msk.f32.vlgmr.msra.gmra.mxu1 %vm85_vm0, %v3281_v9 }
  0xfc   :  { %2412 = vmatmul.msk.f32.vlgmr.msra.gmra.mxu2 %vm85_vm0, %v3393_v37  ;;  %2414 = vmatmul.msk.f32.vlgmr.msra.gmra.mxu3 %vm85_vm0, %v3517_v11 }
  0xfd   :  { %1102 = vmatpush.msrb.mxu0 %v2427_v54  ;;  %1127 = vmatpush.msrb.mxu1 %v2427_v54 }
  0xfe   :  { %1152 = vmatpush.msrb.mxu2 %v2427_v54  ;;  %1177 = vmatpush.msrb.mxu3 %v2427_v54  ;;  %v1228_v54 = vld [vmem:[%s4595_s3 + $0x30] sm:$0xff] }
  0xff   :  { %1103 = vmatpush.msrb.mxu0 %v2426_v13  ;;  %1128 = vmatpush.msrb.mxu1 %v2426_v13 }
 0x100   :  { %1153 = vmatpush.msrb.mxu2 %v2426_v13  ;;  %1178 = vmatpush.msrb.mxu3 %v2426_v13  ;;  %v2455_v13 = vld [vmem:[%s4595_s3 + $0x98] sm:$0xff] }
 0x101   :  { %1104 = vmatpush.msrb.mxu0 %v2425_v16  ;;  %1129 = vmatpush.msrb.mxu1 %v2425_v16  ;;  %v3603_v36 = vpop.f32.mrf.mxu2 }
 0x102   :  { %1154 = vmatpush.msrb.mxu2 %v2425_v16  ;;  %1179 = vmatpush.msrb.mxu3 %v2425_v16  ;;  %v1227_v16 = vld [vmem:[%s4595_s3 + $0x28] sm:$0xff] }
 0x103   :  { %1105 = vmatpush.msrb.mxu0 %v2424_v17  ;;  %1130 = vmatpush.msrb.mxu1 %v2424_v17 }
 0x104   :  { %1155 = vmatpush.msrb.mxu2 %v2424_v17  ;;  %1180 = vmatpush.msrb.mxu3 %v2424_v17  ;;  %v2454_v17 = vld [vmem:[%s4595_s3 + $0x90] sm:$0xff] }
 0x105   :  { %2409 = vmatmul.msk.f32.gmra.mxu0 %vm85_vm0, %v3091_v51  ;;  %2411 = vmatmul.msk.f32.gmra.mxu1 %vm85_vm0, %v3274_v7 }
 0x106   :  { %2413 = vmatmul.msk.f32.gmra.mxu2 %vm85_vm0, %v3386_v35  ;;  %2415 = vmatmul.msk.f32.gmra.mxu3 %vm85_vm0, %v3510_v8 }
 0x107   :  { %1106 = vmatpush.msrb.mxu0 %v2423_v18  ;;  %1131 = vmatpush.msrb.mxu1 %v2423_v18 }
 0x108   :  { %1156 = vmatpush.msrb.mxu2 %v2423_v18  ;;  %1181 = vmatpush.msrb.mxu3 %v2423_v18  ;;  %v1226_v18 = vld [vmem:[%s4595_s3 + $0x20] sm:$0xff] }
 0x109   :  { %1107 = vmatpush.msrb.mxu0 %v2422_v21  ;;  %1132 = vmatpush.msrb.mxu1 %v2422_v21 }
 0x10a   :  { %1157 = vmatpush.msrb.mxu2 %v2422_v21  ;;  %1182 = vmatpush.msrb.mxu3 %v2422_v21 }
 0x10b   :  { %1108 = vmatpush.msrb.mxu0 %v2421_v24  ;;  %1133 = vmatpush.msrb.mxu1 %v2421_v24 }
 0x10c   :  { %1158 = vmatpush.msrb.mxu2 %v2421_v24  ;;  %1183 = vmatpush.msrb.mxu3 %v2421_v24 }
 0x10d   :  { %1109 = vmatpush.msrb.mxu0 %v2420_v25  ;;  %1134 = vmatpush.msrb.mxu1 %v2420_v25 }
 0x10e   :  { %1159 = vmatpush.msrb.mxu2 %v2420_v25  ;;  %1184 = vmatpush.msrb.mxu3 %v2420_v25 }
 0x10f   :  { %1110 = vmatpush.msrb.mxu0 %v2419_v27  ;;  %1135 = vmatpush.msrb.mxu1 %v2419_v27 }
 0x110   :  { %1160 = vmatpush.msrb.mxu2 %v2419_v27  ;;  %1185 = vmatpush.msrb.mxu3 %v2419_v27 }
 0x111   :  { %1111 = vmatpush.msrb.mxu0 %v2418_v28  ;;  %1136 = vmatpush.msrb.mxu1 %v2418_v28 }
 0x112   :  { %1161 = vmatpush.msrb.mxu2 %v2418_v28  ;;  %1186 = vmatpush.msrb.mxu3 %v2418_v28  ;;  %v2453_v28 = vld [vmem:[%s4595_s3 + $0x88] sm:$0xff] }
 0x113   :  { %1112 = vmatpush.msrb.mxu0 %v2417_v31  ;;  %1137 = vmatpush.msrb.mxu1 %v2417_v31 }
 0x114   :  { %1162 = vmatpush.msrb.mxu2 %v2417_v31  ;;  %1187 = vmatpush.msrb.mxu3 %v2417_v31  ;;  %v1225_v31 = vld [vmem:[%s4595_s3 + $0x18] sm:$0xff] }
 0x115   :  { %1113 = vmatpush.msrb.mxu0 %v2416_v34  ;;  %1138 = vmatpush.msrb.mxu1 %v2416_v34 }
 0x116   :  { %1163 = vmatpush.msrb.mxu2 %v2416_v34  ;;  %1188 = vmatpush.msrb.mxu3 %v2416_v34  ;;  %v2452_v34 = vld [vmem:[%s4595_s3 + $0x80] sm:$0xff] }
 0x117   :  { %2428 = vmatmul.msk.f32.vlgmr.msrb.gmra.mxu0 %vm85_vm0, %v3120_v55  ;;  %2430 = vmatmul.msk.f32.vlgmr.msrb.gmra.mxu1 %vm85_vm0, %v3281_v9  ;;  %v3619_v55 = vpop.f32.mrf.mxu2  ;;  %v3621_v9 = vpop.f32.mrf.mxu3 }
 0x118   :  { %2432 = vmatmul.msk.f32.vlgmr.msrb.gmra.mxu2 %vm85_vm0, %v3393_v37  ;;  %2434 = vmatmul.msk.f32.vlgmr.msrb.gmra.mxu3 %vm85_vm0, %v3517_v11  ;;  %v3623_v37 = vpop.f32.mrf.mxu0  ;;  %v2456_v11 = vld [vmem:[%s4595_s3 + $0xa0] sm:$0xff] }
 0x119   :  { %2461 = vmatpush.msk.msra.mxu1 %vm1264_vm2, %v1232_v57  ;;  %2467 = vmatpush.msk.msra.mxu3 %vm1264_vm2, %v1232_v57  ;;  %v1224_v57 = vld [vmem:[%s4595_s3 + $0x10] sm:$0xff] }
 0x11a   :  { %2458 = vmatpush.msk.msra.mxu0 %vm1264_vm2, %v2457_v62  ;;  %2464 = vmatpush.msk.msra.mxu2 %vm1264_vm2, %v2457_v62  ;;  %v1223_v62 = vld [vmem:[%s4595_s3 + $0x8] sm:$0xff] }
 0x11b   :  { %1306 = vmatpush.msra.mxu1 %v1231_v61  ;;  %1359 = vmatpush.msra.mxu3 %v1231_v61  ;;  %v2451_v61 = vld [vmem:[%s4595_s3 + $0x78] sm:$0xff] }
 0x11c   :  { %1274 = vmatpush.msra.mxu0 %v2456_v11  ;;  %1336 = vmatpush.msra.mxu2 %v2456_v11  ;;  %v2450_v11 = vld [vmem:[%s4595_s3 + $0x70] sm:$0xff] }
 0x11d   :  { %1307 = vmatpush.msra.mxu1 %v1230_v63  ;;  %1360 = vmatpush.msra.mxu3 %v1230_v63 }
 0x11e   :  { %1275 = vmatpush.msra.mxu0 %v2455_v13  ;;  %1337 = vmatpush.msra.mxu2 %v2455_v13 }
 0x11f   :  { %2429 = vmatmul.msk.f32.gmra.mxu0 %vm85_vm0, %v3091_v51  ;;  %2431 = vmatmul.msk.f32.gmra.mxu1 %vm85_vm0, %v3274_v7  ;;  %v3627_v41 = vpop.f32.mrf.mxu2  ;;  %v3629_v51 = vpop.f32.mrf.mxu3 }
 0x120   :  { %2433 = vmatmul.msk.f32.gmra.mxu2 %vm85_vm0, %v3386_v35  ;;  %2435 = vmatmul.msk.f32.gmra.mxu3 %vm85_vm0, %v3510_v8  ;;  %v3631_v42 = vpop.f32.mrf.mxu0  ;;  %v3633_v7 = vpop.f32.mrf.mxu1 }
 0x121   :  { %4604 = vst [vmem:[#allocation5_spill] sm:$0xff] %v3631_v42  ;;  %1308 = vmatpush.msra.mxu1 %v1229_v2  ;;  %1361 = vmatpush.msra.mxu3 %v1229_v2  ;;  %v402_v42 = vadd.f32 %v3605_v26, %v3603_v36 }
 0x122   :  { %4605 = vst [vmem:[#allocation6_spill] sm:$0xff] %v3633_v7  ;;  %1276 = vmatpush.msra.mxu0 %v2454_v17  ;;  %1338 = vmatpush.msra.mxu2 %v2454_v17  ;;  %v2446_v17 = vld [vmem:[%s4595_s3 + $0x208] sm:$0xf]  ;;  %v191_v7 = vadd.f32 %v3496_v1, %v3494_v0  ;;  %v243_v0 = vadd.f32 %v3539_v15, %v3537_v14 }
 0x123   :  { %1309 = vmatpush.msra.mxu1 %v1228_v54  ;;  %1362 = vmatpush.msra.mxu3 %v1228_v54  ;;  %v1222_v54 = vld [vmem:[%s4595_s3] sm:$0xff]  ;;  %v297_v1 = vadd.f32 %v3552_v20, %v3550_v19  ;;  %v405_v14 = vadd.f32 %v3621_v9, %v3619_v55 }
 0x124   :  { %1277 = vmatpush.msra.mxu0 %v2453_v28  ;;  %1339 = vmatpush.msra.mxu2 %v2453_v28  ;;  %v2445_v28 = vld [vmem:[%s4595_s3 + $0x200] sm:$0xff] }
 0x125   :  { %1310 = vmatpush.msra.mxu1 %v1227_v16  ;;  %1363 = vmatpush.msra.mxu3 %v1227_v16  ;;  %v3890_v9 = vld [vmem:[%s4594_s2] ss:$0 sm:$0xff] }
 0x126   :  { %1278 = vmatpush.msra.mxu0 %v2452_v34  ;;  %1340 = vmatpush.msra.mxu2 %v2452_v34  ;;  %v2444_v34 = vld [vmem:[%s4595_s3 + $0x1f8] sm:$0xff] }
 0x127   :  { %v3635_v35 = vpop.f32.mrf.mxu2  ;;  %v3637_v43 = vpop.f32.mrf.mxu3  ;;  %1311 = vmatpush.msra.mxu1 %v1226_v18  ;;  %1364 = vmatpush.msra.mxu3 %v1226_v18  ;;  %v2449_v18 = vld [vmem:[%s4595_s3 + $0x68] sm:$0xff] }
 0x128   :  { %4606 = vst [vmem:[#allocation7_spill] sm:$0xff] %v3635_v35  ;;  %v3639_v44 = vpop.f32.mrf.mxu0  ;;  %v3641_v45 = vpop.f32.mrf.mxu1  ;;  %1279 = vmatpush.msra.mxu0 %v2451_v61  ;;  %1341 = vmatpush.msra.mxu2 %v2451_v61  ;;  %v2480_v61 = vld [vmem:[%s4595_s3 + $0x260] sm:$0xf]  ;;  %v139_v35 = vadd.f32 %v3483_v60, %v3481_v59  ;;  %v142_v59 = vadd.f32 %v3503_v4, %v3501_v3 }
 0x129   :  { %4607 = vst [vmem:[#allocation8_spill] sm:$0xff] %v3637_v43  ;;  %1312 = vmatpush.msra.mxu1 %v1225_v31  ;;  %1365 = vmatpush.msra.mxu3 %v1225_v31  ;;  %v2448_v31 = vld [vmem:[%s4595_s3 + $0x60] sm:$0xff]  ;;  %v194_v60 = vadd.f32 %v3524_v12, %v3522_v58  ;;  %v246_v4 = vadd.f32 %v3567_v23, %v3565_v22 }
 0x12a   :  { %1280 = vmatpush.msra.mxu0 %v2450_v11  ;;  %1342 = vmatpush.msra.mxu2 %v2450_v11  ;;  %v300_v58 = vadd.f32 %v3583_v30, %v3581_v29  ;;  %v359_v12 = vadd.f32 %v3609_v39, %v3607_v38  ;;  %v494_v22 = vadd.f32 %v3629_v51, %v3627_v41 }
 0x12b   :  { %1313 = vmatpush.msra.mxu1 %v1224_v57  ;;  %1366 = vmatpush.msra.mxu3 %v1224_v57  ;;  %v2447_v57 = vld [vmem:[%s4595_s3 + $0x58] sm:$0xff] }
 0x12c   :  { %1281 = vmatpush.msra.mxu0 %v2449_v18  ;;  %1343 = vmatpush.msra.mxu2 %v2449_v18 }
 0x12d   :  { %1314 = vmatpush.msra.mxu1 %v1223_v62  ;;  %1367 = vmatpush.msra.mxu3 %v1223_v62  ;;  %v2443_v62 = vld [vmem:[%s4595_s3 + $0x1f0] sm:$0xff] }
 0x12e   :  { %1282 = vmatpush.msra.mxu0 %v2448_v31  ;;  %1344 = vmatpush.msra.mxu2 %v2448_v31  ;;  %v2478_v31 = vld [vmem:[%s4595_s3 + $0x250] sm:$0xff] }
 0x12f   :  { %v3643_v46 = vpop.f32.mrf.mxu2  ;;  %v3645_v47 = vpop.f32.mrf.mxu3  ;;  %1315 = vmatpush.msra.mxu1 %v1222_v54  ;;  %1368 = vmatpush.msra.mxu3 %v1222_v54 }
 0x130   :  { %v3647_v48 = vpop.f32.mrf.mxu0  ;;  %v3649_v49 = vpop.f32.mrf.mxu1  ;;  %1283 = vmatpush.msra.mxu0 %v2447_v57  ;;  %1345 = vmatpush.msra.mxu2 %v2447_v57  ;;  %v585_v23 = vadd.f32 %v3643_v46, %v243_v0  ;;  %v617_v29 = vadd.f32 %v3645_v47, %v297_v1  ;;  %v4623_v0 = vld [vmem:[#allocation8_spill] sm:$0xff] }
 0x131   :  { %2484 = vmatpush.msk.msrb.mxu1 %vm1264_vm2, %v2446_v17  ;;  %2490 = vmatpush.msk.msrb.mxu3 %vm1264_vm2, %v2446_v17  ;;  %v2479_v17 = vld [vmem:[%s4595_s3 + $0x258] sm:$0xff]  ;;  %v536_v30 = vadd.f32 %v3647_v48, %v142_v59  ;;  %v561_v38 = vadd.f32 %v3649_v49, %v194_v60 }
 0x132   :  { %2481 = vmatpush.msk.msrb.mxu0 %vm1264_vm2, %v2480_v61  ;;  %2487 = vmatpush.msk.msrb.mxu2 %vm1264_vm2, %v2480_v61  ;;  %v2477_v61 = vld [vmem:[%s4595_s3 + $0x248] sm:$0xff]  ;;  %v4622_v60 = vld [vmem:[#allocation7_spill] sm:$0xff] }
 0x133   :  { %1423 = vmatpush.msrb.mxu1 %v2445_v28  ;;  %1469 = vmatpush.msrb.mxu3 %v2445_v28  ;;  %v2442_v28 = vld [vmem:[%s4595_s3 + $0x1e8] sm:$0xff] }
 0x134   :  { %1397 = vmatpush.msrb.mxu0 %v2479_v17  ;;  %1446 = vmatpush.msrb.mxu2 %v2479_v17  ;;  %v2476_v17 = vld [vmem:[%s4595_s3 + $0x240] sm:$0xff] }
 0x135   :  { %1424 = vmatpush.msrb.mxu1 %v2444_v34  ;;  %1470 = vmatpush.msrb.mxu3 %v2444_v34 }
 0x136   :  { %1398 = vmatpush.msrb.mxu0 %v2478_v31  ;;  %1447 = vmatpush.msrb.mxu2 %v2478_v31  ;;  %v2438_v31 = vld [vmem:[%s4595_s3 + $0x1c8] sm:$0xff] }
 0x137   :  { %v3651_v50 = vpop.f32.mrf.mxu2  ;;  %v3653_v52 = vpop.f32.mrf.mxu3  ;;  %1425 = vmatpush.msrb.mxu1 %v2443_v62  ;;  %1471 = vmatpush.msrb.mxu3 %v2443_v62  ;;  %v2440_v62 = vld [vmem:[%s4595_s3 + $0x1d8] sm:$0xff] }
 0x138   :  { %4608 = vst [vmem:[#allocation9_spill] sm:$0xff] %v3651_v50  ;;  %v3655_v53 = vpop.f32.mrf.mxu0  ;;  %v3657_v56 = vpop.f32.mrf.mxu1  ;;  %1399 = vmatpush.msrb.mxu0 %v2477_v61  ;;  %1448 = vmatpush.msrb.mxu2 %v2477_v61  ;;  %v2474_v61 = vld [vmem:[%s4595_s3 + $0x230] sm:$0xff] }
 0x139   :  { %4609 = vst [vmem:[#allocation10_spill] sm:$0xff] %v3653_v52  ;;  %1426 = vmatpush.msrb.mxu1 %v2442_v28  ;;  %1472 = vmatpush.msrb.mxu3 %v2442_v28  ;;  %v2439_v28 = vld [vmem:[%s4595_s3 + $0x1d0] sm:$0xff]  ;;  %v2473_v52 = vld [vmem:[%s4595_s3 + $0x228] sm:$0xff] }
 0x13a   :  { %1400 = vmatpush.msrb.mxu0 %v2476_v17  ;;  %1449 = vmatpush.msrb.mxu2 %v2476_v17  ;;  %v2436_v17 = vld [vmem:[%s4595_s3 + $0x1b8] sm:$0xff] }
 0x13f   :  { %v3678_v5 = vpop.f32.mrf.mxu2  ;;  %v3680_v6 = vpop.f32.mrf.mxu3 }
 0x140   :  { %v3682_v8 = vpop.f32.mrf.mxu0  ;;  %v3684_v10 = vpop.f32.mrf.mxu1 }
 0x141   :  { %v656_v41 = vadd.f32 %v3682_v8, %v359_v12  ;;  %v681_v51 = vadd.f32 %v3684_v10, %v405_v14  ;;  %v4625_v12 = vld [vmem:[#allocation10_spill] sm:$0xff] }
 0x142   :  { %v618_v14 = vadd.f32 %v4625_v12, %v300_v58  ;;  %v2553_v12 = vld [vmem:[%s4595_s3 + $0x308] sm:$0xff] }
 0x147   :  { %v3704_v21 = vpop.f32.mrf.mxu2  ;;  %v3706_v24 = vpop.f32.mrf.mxu3 }
 0x148   :  { %4610 = vst [vmem:[#allocation11_spill] sm:$0xff] %v3704_v21  ;;  %v3708_v25 = vpop.f32.mrf.mxu0  ;;  %v3710_v27 = vpop.f32.mrf.mxu1 }
 0x149   :  { %4611 = vst [vmem:[#allocation12_spill] sm:$0xff] %v3706_v24 }
 0x14f   :  { %v3730_v63 = vpop.f32.mrf.mxu2  ;;  %v3732_v2 = vpop.f32.mrf.mxu3 }
 0x150   :  { %v3740_v13 = vpop.f32.mrf.mxu0  ;;  %v3742_v16 = vpop.f32.mrf.mxu1  ;;  %v850_v46 = vadd.f32 %v3732_v2, %v617_v29 }
 0x151   :  { %v769_v47 = vadd.f32 %v3740_v13, %v536_v30  ;;  %v794_v49 = vadd.f32 %v3742_v16, %v561_v38 }
 0x157   :  { %v3770_v11 = vpop.f32.mrf.mxu2  ;;  %v3772_v54 = vpop.f32.mrf.mxu3 }
 0x158   :  { %4612 = vst [vmem:[#allocation13_spill] sm:$0xff] %v3770_v11 }
 0x159   :  { %4613 = vst [vmem:[#allocation14_spill] sm:$0xff] %v3772_v54  ;;  %v2441_v54 = vld [vmem:[%s4595_s3 + $0x1e0] sm:$0xff] }
 0x15a   :  { %1427 = vmatpush.msrb.mxu1 %v2441_v54  ;;  %1473 = vmatpush.msrb.mxu3 %v2441_v54  ;;  %v2475_v54 = vld [vmem:[%s4595_s3 + $0x238] sm:$0xff] }
 0x15b   :  { %1401 = vmatpush.msrb.mxu0 %v2475_v54  ;;  %1450 = vmatpush.msrb.mxu2 %v2475_v54  ;;  %v2472_v54 = vld [vmem:[%s4595_s3 + $0x220] sm:$0xff] }
 0x15c   :  { %v3777_v18 = vpop.f32.mrf.mxu0  ;;  %v3779_v24 = vpop.f32.mrf.mxu1  ;;  %1428 = vmatpush.msrb.mxu1 %v2440_v62  ;;  %1474 = vmatpush.msrb.mxu3 %v2440_v62  ;;  %v2437_v62 = vld [vmem:[%s4595_s3 + $0x1c0] sm:$0xff] }
 0x15d   :  { %1402 = vmatpush.msrb.mxu0 %v2474_v61  ;;  %1451 = vmatpush.msrb.mxu2 %v2474_v61  ;;  %v2471_v61 = vld [vmem:[%s4595_s3 + $0x218] sm:$0xff] }
 0x15e   :  { %1429 = vmatpush.msrb.mxu1 %v2439_v28  ;;  %1475 = vmatpush.msrb.mxu3 %v2439_v28 }
 0x15f   :  { %1403 = vmatpush.msrb.mxu0 %v2473_v52  ;;  %1452 = vmatpush.msrb.mxu2 %v2473_v52 }
 0x160   :  { %1430 = vmatpush.msrb.mxu1 %v2438_v31  ;;  %1476 = vmatpush.msrb.mxu3 %v2438_v31 }
 0x161   :  { %1404 = vmatpush.msrb.mxu0 %v2472_v54  ;;  %1453 = vmatpush.msrb.mxu2 %v2472_v54  ;;  %v356_v54 = vadd.f32 %v3590_v33, %v3588_v32 }
 0x162   :  { %1431 = vmatpush.msrb.mxu1 %v2437_v62  ;;  %1477 = vmatpush.msrb.mxu3 %v2437_v62  ;;  %v2470_v62 = vld [vmem:[%s4595_s3 + $0x210] sm:$0xff] }
 0x163   :  { %v3792_v57 = vpop.f32.mrf.mxu2  ;;  %v3794_v34 = vpop.f32.mrf.mxu3  ;;  %1405 = vmatpush.msrb.mxu0 %v2471_v61  ;;  %1454 = vmatpush.msrb.mxu2 %v2471_v61  ;;  %v535_v61 = vadd.f32 %v3639_v44, %v139_v35 }
 0x164   :  { %1432 = vmatpush.msrb.mxu1 %v2436_v17  ;;  %1478 = vmatpush.msrb.mxu3 %v2436_v17 }
 0x165   :  { %1406 = vmatpush.msrb.mxu0 %v2470_v62  ;;  %1455 = vmatpush.msrb.mxu2 %v2470_v62  ;;  %v560_v62 = vadd.f32 %v3641_v45, %v191_v7  ;;  %v768_v32 = vadd.f32 %v3708_v25, %v535_v61  ;;  %v448_v45 = vadd.f32 %v3625_v40, %v3623_v37  ;;  %v4620_v61 = vld [vmem:[#allocation5_spill] sm:$0xff] }
 0x166   :  { %v3808_v11 = vpop.f32.mrf.mxu0  ;;  %v3810_v21 = vpop.f32.mrf.mxu1  ;;  %v730_v40 = vadd.f32 %v3680_v6, %v494_v22  ;;  %v2501_v22 = vld [vmem:[%s4595_s3 + $0xf0] sm:$0xff] }
 0x167   :  { %4614 = vst [vmem:[#allocation15_spill] sm:$0xff] %v3808_v11  ;;  %v680_v11 = vadd.f32 %v3657_v56, %v402_v42  ;;  %v793_v33 = vadd.f32 %v3710_v27, %v560_v62  ;;  %v705_v37 = vadd.f32 %v3678_v5, %v448_v45  ;;  %v4621_v62 = vld [vmem:[#allocation6_spill] sm:$0xff] }
 0x168   :  { %4615 = vst [vmem:[#allocation16_spill] sm:$0xff] %v3810_v21  ;;  %v655_v21 = vadd.f32 %v3655_v53, %v356_v54  ;;  %v963_v56 = vadd.f32 %v3794_v34, %v730_v40  ;;  %v451_v59 = vadd.f32 %v4621_v62, %v4620_v61  ;;  %v2494_v61 = vld [vmem:[%s4595_s3 + $0xb8] sm:$0xff]  ;;  %v2514_v62 = vld [vmem:[%s4595_s3 + $0x288] sm:$0xff] }
 0x169   :  { %v913_v26 = vadd.f32 %v3779_v24, %v680_v11  ;;  %v938_v53 = vadd.f32 %v3792_v57, %v705_v37 }
 0x16a   :  { %v888_v36 = vadd.f32 %v3777_v18, %v655_v21 }
 0x16d   :  { %v3830_v28 = vpop.f32.mrf.mxu2  ;;  %v3832_v50 = vpop.f32.mrf.mxu3 }
 0x16e   :  { %4616 = vst [vmem:[#allocation17_spill] sm:$0xff] %v3830_v28  ;;  %v4618_v5 = vld [vmem:[#allocation15_spill] sm:$0xff] }
 0x16f   :  { %4617 = vst [vmem:[#allocation18_spill] sm:$0xff] %v3832_v50  ;;  %v889_v21 = vadd.f32 %v4618_v5, %v656_v41  ;;  %v4619_v6 = vld [vmem:[#allocation16_spill] sm:$0xff] }
 0x170   :  { %v914_v24 = vadd.f32 %v4619_v6, %v681_v51 }
 0x175   :  { %v4630_v30 = vld [vmem:[#allocation17_spill] sm:$0xff] }
 0x178   :  { %v995_v31 = vpop.f32.mrf.mxu0  ;;  %v1020_v43 = vpop.f32.mrf.mxu1 }
 0x179   :  { %v1001_v20 = vadd.f32 %v995_v31, %v768_v32  ;;  %v1026_v7 = vadd.f32 %v1020_v43, %v793_v33  ;;  %v818_v43 = vadd.f32 %v3730_v63, %v585_v23  ;;  %v4624_v32 = vld [vmem:[#allocation9_spill] sm:$0xff]  ;;  %v4629_v23 = vld [vmem:[#allocation14_spill] sm:$0xff] }
 0x17a   :  { %v586_v33 = vadd.f32 %v4624_v32, %v246_v4  ;;  %v851_v29 = vadd.f32 %v4629_v23, %v618_v14  ;;  %v2510_v32 = vld [vmem:[%s4595_s3 + $0x268] sm:$0xff]  ;;  %v2528_v23 = vld [vmem:[%s4595_s3 + $0x110] sm:$0xff] }
 0x17f   :  { %v1045_v50 = vpop.f32.mrf.mxu2  ;;  %v1077_v28 = vpop.f32.mrf.mxu3 }
 0x180   :  { %v1051_v8 = vadd.f32 %v1045_v50, %v818_v43  ;;  %v1083_v63 = vadd.f32 %v1077_v28, %v850_v46  ;;  %v2503_v50 = vld [vmem:[%s4595_s3 + $0x100] sm:$0xf]  ;;  %v497_v28 = vadd.f32 %v4623_v0, %v4622_v60  ;;  %v2537_v60 = vld [vmem:[%s4595_s3 + $0x158] sm:$0xf] }
 0x181   :  { %v2512_v0 = vld [vmem:[%s4595_s3 + $0x278] sm:$0xff] }
 0x182   :  { %v998_v52 = vpop.f32.mrf.mxu0  ;;  %v1023_v17 = vpop.f32.mrf.mxu1 }
 0x183   :  { %v1002_v2 = vadd.f32 %v998_v52, %v769_v47  ;;  %v1027_v31 = vadd.f32 %v1023_v17, %v794_v49  ;;  %v2500_v49 = vld [vmem:[%s4595_s3 + $0xe8] sm:$0xff] }
 0x189   :  { %v3867_v42 = vpop.f32.mrf.mxu2  ;;  %v3869_v3 = vpop.f32.mrf.mxu3 }
 0x18a   :  { %v1084_v43 = vadd.f32 %v3869_v3, %v851_v29  ;;  %v2499_v3 = vld [vmem:[%s4595_s3 + $0xe0] sm:$0xff] }
 0x18b   :  { %v2548_v29 = vld [vmem:[%s4595_s3 + $0x2e0] sm:$0xff] }
 0x194   :  { %v1115_v15 = vpop.f32.mrf.mxu0  ;;  %v1140_v19 = vpop.f32.mrf.mxu1 }
 0x195   :  { %v1121_v35 = vadd.f32 %v1115_v15, %v888_v36  ;;  %v1146_v44 = vadd.f32 %v1140_v19, %v913_v26  ;;  %v2502_v26 = vld [vmem:[%s4595_s3 + $0xf8] sm:$0xff] }
 0x196   :  { %v4626_v15 = vld [vmem:[#allocation11_spill] sm:$0xff] }
 0x197   :  { %v1199_v39 = vmax.f32 %v1001_v20, %v1121_v35  ;;  %v1201_v55 = vmax.f32 %v1026_v7, %v1146_v44  ;;  %v706_v19 = vadd.f32 %v4626_v15, %v451_v59  ;;  %v4627_v20 = vld [vmem:[#allocation12_spill] sm:$0xff]  ;;  %v4628_v44 = vld [vmem:[#allocation13_spill] sm:$0xff]  ;;  %v2493_v59 = vld [vmem:[%s4595_s3 + $0xb0] sm:$0xff] }
 0x198   :  { %v731_v7 = vadd.f32 %v4627_v20, %v497_v28  ;;  %v819_v4 = vadd.f32 %v4628_v44, %v586_v33  ;;  %v2536_v28 = vld [vmem:[%s4595_s3 + $0x150] sm:$0xff]  ;;  %v2534_v33 = vld [vmem:[%s4595_s3 + $0x140] sm:$0xff] }
 0x199   :  { %v1203_v48 = vmax.f32 %v1199_v39, %v1201_v55  ;;  %v939_v38 = vadd.f32 %v4630_v30, %v706_v19  ;;  %v4631_v39 = vld [vmem:[#allocation18_spill] sm:$0xff]  ;;  %v2552_v20 = vld [vmem:[%s4595_s3 + $0x300] sm:$0xff] }
 0x19a   :  { %v964_v58 = vadd.f32 %v4631_v39, %v731_v7  ;;  %v1052_v37 = vadd.f32 %v3867_v42, %v819_v4  ;;  %v2520_v42 = vld [vmem:[%s4595_s3 + $0x2b8] sm:$0xf]  ;;  %v2532_v19 = vld [vmem:[%s4595_s3 + $0x130] sm:$0xff]  ;;  %v2531_v7 = vld [vmem:[%s4595_s3 + $0x128] sm:$0xff] }
 0x19b   :  { %v1208_v10 = vadd.f32 %v3890_v9, %v1203_v48  ;;  %v1165_v25 = vpop.f32.mrf.mxu2  ;;  %v1190_v27 = vpop.f32.mrf.mxu3  ;;  %v2530_v44 = vld [vmem:[%s4595_s3 + $0x120] sm:$0xff]  ;;  %v2550_v4 = vld [vmem:[%s4595_s3 + $0x2f0] sm:$0xff]  ;;  %v2527_v30 = vld [vmem:[%s4595_s3 + $0x108] sm:$0xff] }
 0x19c   :  { %v1171_v13 = vadd.f32 %v1165_v25, %v938_v53  ;;  %v1196_v11 = vadd.f32 %v1190_v27, %v963_v56  ;;  %v1118_v18 = vpop.f32.mrf.mxu0  ;;  %v1143_v16 = vpop.f32.mrf.mxu1  ;;  %v2498_v27 = vld [vmem:[%s4595_s3 + $0xd8] sm:$0xff]  ;;  %v2571_v39 = vld [vmem:[%s4595_s3 + $0x1b0] sm:$0xf] }
 0x19d   :  { %v3905_v57 = vmax.f32 %v1208_v10, 0.0  ;;  %v1122_v34 = vadd.f32 %v1118_v18, %v889_v21  ;;  %v1147_v54 = vadd.f32 %v1143_v16, %v914_v24  ;;  %v2519_v24 = vld [vmem:[%s4595_s3 + $0x2b0] sm:$0xff]  ;;  %v2517_v16 = vld [vmem:[%s4595_s3 + $0x2a0] sm:$0xff] }
 0x19e   :  { %v1212_v52 = vmax.f32 %v1051_v8, %v1171_v13  ;;  %v1214_v1 = vmax.f32 %v1083_v63, %v1196_v11  ;;  %v2497_v18 = vld [vmem:[%s4595_s3 + $0xd0] sm:$0xff] }
 0x19f   :  { %v1200_v36 = vmax.f32 %v1002_v2, %v1122_v34  ;;  %v1202_v17 = vmax.f32 %v1027_v31, %v1147_v54  ;;  %2462 = vmatmul.msk.f32.vlgmr.msra.gmra.mxu1 %vm1257_vm3, %v3905_v57  ;;  %v1323_v8 = vrot.slane %v3905_v57, 1  ;;  %v1664_v10 = vrot.slane %v3905_v57, 2  ;;  %v2518_v2 = vld [vmem:[%s4595_s3 + $0x2a8] sm:$0xff]  ;;  %v2516_v34 = vld [vmem:[%s4595_s3 + $0x298] sm:$0xff]  ;;  %v2495_v54 = vld [vmem:[%s4595_s3 + $0xc0] sm:$0xff] }
 0x1a0   :  { %v1216_v35 = vmax.f32 %v1212_v52, %v1214_v1  ;;  %2507 = vmatpush.msk.msra.mxu1 %vm1264_vm2, %v2503_v50  ;;  %v2511_v52 = vld [vmem:[%s4595_s3 + $0x270] sm:$0xff]  ;;  %v2535_v1 = vld [vmem:[%s4595_s3 + $0x148] sm:$0xff] }
 0x1a1   :  { %v1204_v45 = vmax.f32 %v1200_v36, %v1202_v17  ;;  %v2554_v36 = vld [vmem:[%s4595_s3 + $0x310] sm:$0xf] }
 0x1a2   :  { %v1218_v55 = vadd.f32 %v3890_v9, %v1216_v35  ;;  %1539 = vmatpush.msra.mxu1 %v2502_v26  ;;  %v2551_v35 = vld [vmem:[%s4595_s3 + $0x2f8] sm:$0xff] }
 0x1a3   :  { %v1209_v40 = vadd.f32 %v3890_v9, %v1204_v45  ;;  %v1168_v41 = vpop.f32.mrf.mxu2  ;;  %v1193_v51 = vpop.f32.mrf.mxu3  ;;  %v2529_v45 = vld [vmem:[%s4595_s3 + $0x118] sm:$0xff] }
 0x1a4   :  { %v3935_v46 = vmax.f32 %v1218_v55, 0.0  ;;  %v1172_v47 = vadd.f32 %v1168_v41, %v939_v38  ;;  %v1197_v48 = vadd.f32 %v1193_v51, %v964_v58  ;;  %1540 = vmatpush.msra.mxu1 %v2501_v22  ;;  %v2547_v38 = vld [vmem:[%s4595_s3 + $0x2d8] sm:$0xff]  ;;  %v2546_v58 = vld [vmem:[%s4595_s3 + $0x2d0] sm:$0xff]  ;;  %v2570_v55 = vld [vmem:[%s4595_s3 + $0x1a8] sm:$0xff] }
 0x1a5   :  { %v3940_v53 = vmax.f32 %v1209_v40, 0.0  ;;  %v2569_v40 = vld [vmem:[%s4595_s3 + $0x1a0] sm:$0xff]  ;;  %v2568_v51 = vld [vmem:[%s4595_s3 + $0x198] sm:$0xff] }
 0x1a6   :  { %v1213_v56 = vmax.f32 %v1052_v37, %v1172_v47  ;;  %v1215_v5 = vmax.f32 %v1084_v43, %v1197_v48  ;;  %2459 = vmatmul.msk.f32.vlgmr.msra.gmra.mxu0 %vm1257_vm3, %v3935_v46  ;;  %2468 = vmatmul.msk.f32.vlgmr.msra.gmra.mxu3 %vm1257_vm3, %v3935_v46  ;;  %v1526_v14 = vrot.slane %v3935_v46, 1  ;;  %v2545_v37 = vld [vmem:[%s4595_s3 + $0x2c8] sm:$0xff]  ;;  %v2544_v41 = vld [vmem:[%s4595_s3 + $0x2c0] sm:$0xff]  ;;  %v2567_v47 = vld [vmem:[%s4595_s3 + $0x190] sm:$0xff] }
 0x1a7   :  { %v3953_v21 = vrot.slane %v3940_v53, 1  ;;  %v3956_v6 = vrot.slane %v3940_v53, 2  ;;  %2504 = vmatpush.msk.msra.mxu0 %vm1264_vm2, %v2503_v50  ;;  %1541 = vmatpush.msra.mxu1 %v2500_v49  ;;  %v2515_v50 = vld [vmem:[%s4595_s3 + $0x290] sm:$0xff]  ;;  %v2588_v43 = vld [vmem:[%s4595_s3 + $0x368] sm:$0xf]  ;;  %v2587_v48 = vld [vmem:[%s4595_s3 + $0x360] sm:$0xff] }
 0x1a8   :  { %v1217_v25 = vmax.f32 %v1213_v56, %v1215_v5  ;;  %2524 = vmatpush.msk.msra.mxu3 %vm1264_vm2, %v2520_v42  ;;  %2463 = vmatmul.msk.f32.gmra.mxu1 %vm1257_vm3, %v3940_v53  ;;  %v2585_v56 = vld [vmem:[%s4595_s3 + $0x350] sm:$0xff]  ;;  %v2564_v5 = vld [vmem:[%s4595_s3 + $0x178] sm:$0xff] }
 0x1a9   :  { %1507 = vmatpush.msra.mxu0 %v2502_v26  ;;  %1542 = vmatpush.msra.mxu1 %v2499_v3  ;;  %v3972_v63 = vsel %vm248_vm1, %v1323_v8, %v3953_v21  ;;  %v3979_v13 = vsel %vm1663_vm4, %v1664_v10, %v3956_v6  ;;  %v2533_v26 = vld [vmem:[%s4595_s3 + $0x138] sm:$0xff]  ;;  %v2562_v8 = vld [vmem:[%s4595_s3 + $0x168] sm:$0xff] }
 0x1aa   :  { %v1219_v11 = vadd.f32 %v3890_v9, %v1217_v25  ;;  %1604 = vmatpush.msra.mxu3 %v2519_v24  ;;  %2465 = vmatmul.msk.f32.vlgmr.msra.gmra.mxu2 %vm1257_vm3, %v3972_v63  ;;  %v2496_v9 = vld [vmem:[%s4595_s3 + $0xc8] sm:$0xff]  ;;  %v2582_v10 = vld [vmem:[%s4595_s3 + $0x338] sm:$0xff] }
 0x1ab   :  { %1508 = vmatpush.msra.mxu0 %v2501_v22  ;;  %1543 = vmatpush.msra.mxu1 %v2498_v27  ;;  %v2549_v22 = vld [vmem:[%s4595_s3 + $0x2e8] sm:$0xff] }
 0x1ac   :  { %v3990_v31 = vmax.f32 %v1219_v11, 0.0  ;;  %1605 = vmatpush.msra.mxu3 %v2518_v2  ;;  %2521 = vmatpush.msk.msra.mxu2 %vm1264_vm2, %v2520_v42  ;;  %v2565_v42 = vld [vmem:[%s4595_s3 + $0x180] sm:$0xff] }
 0x1ad   :  { %1509 = vmatpush.msra.mxu0 %v2500_v49  ;;  %1544 = vmatpush.msra.mxu1 %v2497_v18  ;;  %v2566_v49 = vld [vmem:[%s4595_s3 + $0x188] sm:$0xff] }
 0x1ae   :  { %1606 = vmatpush.msra.mxu3 %v2517_v16  ;;  %2460 = vmatmul.msk.f32.gmra.mxu0 %vm1257_vm3, %v3990_v31  ;;  %v4059_v17 = vrot.slane %v3990_v31, 1  ;;  %v1802_v25 = vrot.slane %v3990_v31, 2 }
 0x1af   :  { %2469 = vmatmul.msk.f32.gmra.mxu3 %vm1257_vm3, %v3990_v31  ;;  %1579 = vmatpush.msra.mxu2 %v2519_v24  ;;  %v2583_v24 = vld [vmem:[%s4595_s3 + $0x340] sm:$0xff] }
 0x1b0   :  { %1510 = vmatpush.msra.mxu0 %v2499_v3  ;;  %1545 = vmatpush.msra.mxu1 %v2496_v9  ;;  %v4076_v15 = vsel %vm248_vm1, %v1526_v14, %v4059_v17  ;;  %v2584_v3 = vld [vmem:[%s4595_s3 + $0x348] sm:$0xff] }
 0x1b1   :  { %1607 = vmatpush.msra.mxu3 %v2516_v34  ;;  %2485 = vmatmul.msk.f32.vlgmr.msrb.gmra.mxu1 %vm1257_vm3, %v3905_v57  ;;  %v2513_v57 = vld [vmem:[%s4595_s3 + $0x280] sm:$0xff] }
 0x1b2   :  { %1580 = vmatpush.msra.mxu2 %v2518_v2  ;;  %1511 = vmatpush.msra.mxu0 %v2498_v27  ;;  %v2561_v27 = vld [vmem:[%s4595_s3 + $0x160] sm:$0xff]  ;;  %v1801_v2 = vrot.slane %v3935_v46, 2 }
 0x1b3   :  { %1546 = vmatpush.msra.mxu1 %v2495_v54  ;;  %1608 = vmatpush.msra.mxu3 %v2515_v50 }
 0x1b4   :  { %1581 = vmatpush.msra.mxu2 %v2517_v16  ;;  %1512 = vmatpush.msra.mxu0 %v2497_v18  ;;  %v1803_v11 = vsel %vm1663_vm4, %v1801_v2, %v1802_v25  ;;  %v2580_v18 = vld [vmem:[%s4595_s3 + $0x328] sm:$0xff]  ;;  %v2578_v16 = vld [vmem:[%s4595_s3 + $0x318] sm:$0xff]  ;;  %v2611_v2 = vld [vmem:[%s4597_s5 + $0xb0] sm:$0xff] }
 0x1b5   :  { %2466 = vmatmul.msk.f32.gmra.mxu2 %vm1257_vm3, %v3953_v21  ;;  %1547 = vmatpush.msra.mxu1 %v2494_v61 }
 0x1b6   :  { %1609 = vmatpush.msra.mxu3 %v2514_v62  ;;  %1582 = vmatpush.msra.mxu2 %v2516_v34 }
 0x1b7   :  { %1513 = vmatpush.msra.mxu0 %v2496_v9  ;;  %1548 = vmatpush.msra.mxu1 %v2493_v59 }
 0x1b8   :  { %1610 = vmatpush.msra.mxu3 %v2513_v57  ;;  %2482 = vmatmul.msk.f32.vlgmr.msrb.gmra.mxu0 %vm1257_vm3, %v3935_v46 }
 0x1b9   :  { %2491 = vmatmul.msk.f32.vlgmr.msrb.gmra.mxu3 %vm1257_vm3, %v3935_v46  ;;  %1583 = vmatpush.msra.mxu2 %v2515_v50  ;;  %v2579_v46 = vld [vmem:[%s4595_s3 + $0x320] sm:$0xff] }
 0x1ba   :  { %2541 = vmatpush.msk.msrb.mxu1 %vm1264_vm2, %v2537_v60  ;;  %1514 = vmatpush.msra.mxu0 %v2495_v54 }
 0x1bb   :  { %1611 = vmatpush.msra.mxu3 %v2512_v0  ;;  %2486 = vmatmul.msk.f32.gmra.mxu1 %vm1257_vm3, %v3940_v53  ;;  %v2586_v53 = vld [vmem:[%s4595_s3 + $0x358] sm:$0xff] }
 0x1bc   :  { %1584 = vmatpush.msra.mxu2 %v2514_v62  ;;  %1677 = vmatpush.msrb.mxu1 %v2536_v28 }
 0x1bd   :  { %1515 = vmatpush.msra.mxu0 %v2494_v61  ;;  %1612 = vmatpush.msra.mxu3 %v2511_v52 }
 0x1be   :  { %1585 = vmatpush.msra.mxu2 %v2513_v57  ;;  %1678 = vmatpush.msrb.mxu1 %v2535_v1 }
 0x1bf   :  { %2488 = vmatmul.msk.f32.vlgmr.msrb.gmra.mxu2 %vm1257_vm3, %v3972_v63  ;;  %1516 = vmatpush.msra.mxu0 %v2493_v59 }
 0x1c0   :  { %1613 = vmatpush.msra.mxu3 %v2510_v32  ;;  %1586 = vmatpush.msra.mxu2 %v2512_v0 }
 0x1c1   :  { %2538 = vmatpush.msk.msrb.mxu0 %vm1264_vm2, %v2537_v60  ;;  %1679 = vmatpush.msrb.mxu1 %v2534_v33 }
 0x1c2   :  { %2558 = vmatpush.msk.msrb.mxu3 %vm1264_vm2, %v2554_v36  ;;  %2483 = vmatmul.msk.f32.gmra.mxu0 %vm1257_vm3, %v3990_v31 }
 0x1c3   :  { %2492 = vmatmul.msk.f32.gmra.mxu3 %vm1257_vm3, %v3990_v31  ;;  %1587 = vmatpush.msra.mxu2 %v2511_v52 }
 0x1c4   :  { %1644 = vmatpush.msrb.mxu0 %v2536_v28  ;;  %1680 = vmatpush.msrb.mxu1 %v2533_v26 }
 0x1c5   :  { %1742 = vmatpush.msrb.mxu3 %v2553_v12  ;;  %2508 = vmatmul.msk.f32.vlgmr.msra.gmra.mxu1 %vm1257_vm3, %v4076_v15 }
 0x1c6   :  { %1588 = vmatpush.msra.mxu2 %v2510_v32  ;;  %1645 = vmatpush.msrb.mxu0 %v2535_v1 }
 0x1c7   :  { %1681 = vmatpush.msrb.mxu1 %v2532_v19  ;;  %1743 = vmatpush.msrb.mxu3 %v2552_v20 }
 0x1c8   :  { %2555 = vmatpush.msk.msrb.mxu2 %vm1264_vm2, %v2554_v36  ;;  %1646 = vmatpush.msrb.mxu0 %v2534_v33 }
 0x1c9   :  { %1682 = vmatpush.msrb.mxu1 %v2531_v7  ;;  %1744 = vmatpush.msrb.mxu3 %v2551_v35 }
 0x1ca   :  { %2489 = vmatmul.msk.f32.gmra.mxu2 %vm1257_vm3, %v3953_v21  ;;  %1647 = vmatpush.msrb.mxu0 %v2533_v26  ;;  %v1920_v26 = vld [vmem:[%s4597_s5 + $0x40] sm:$0xff] }
 0x1cb   :  { %1717 = vmatpush.msrb.mxu2 %v2553_v12  ;;  %1683 = vmatpush.msrb.mxu1 %v2530_v44  ;;  %v1919_v12 = vld [vmem:[%s4597_s5 + $0x38] sm:$0xff] }
 0x1cc   :  { %1745 = vmatpush.msrb.mxu3 %v2550_v4  ;;  %2505 = vmatmul.msk.f32.vlgmr.msra.gmra.mxu0 %vm1257_vm3, %v3972_v63 }
 0x1cd   :  { %1718 = vmatpush.msrb.mxu2 %v2552_v20  ;;  %2525 = vmatmul.msk.f32.vlgmr.msra.gmra.mxu3 %vm1257_vm3, %v4076_v15 }
 0x1ce   :  { %1648 = vmatpush.msrb.mxu0 %v2532_v19  ;;  %1684 = vmatpush.msrb.mxu1 %v2529_v45  ;;  %v1917_v19 = vld [vmem:[%s4597_s5 + $0x28] sm:$0xff] }
 0x1cf   :  { %1746 = vmatpush.msrb.mxu3 %v2549_v22  ;;  %1719 = vmatpush.msrb.mxu2 %v2551_v35 }
 0x1d0   :  { %2509 = vmatmul.msk.f32.gmra.mxu1 %vm1257_vm3, %v4059_v17  ;;  %1649 = vmatpush.msrb.mxu0 %v2531_v7 }
 0x1d1   :  { %1685 = vmatpush.msrb.mxu1 %v2528_v23  ;;  %1747 = vmatpush.msrb.mxu3 %v2548_v29 }
 0x1d2   :  { %1720 = vmatpush.msrb.mxu2 %v2550_v4  ;;  %1650 = vmatpush.msrb.mxu0 %v2530_v44  ;;  %v1916_v44 = vld [vmem:[%s4597_s5 + $0x20] sm:$0xff]  ;;  %v2604_v4 = vld [vmem:[%s4597_s5 + $0x98] sm:$0xff] }
 0x1d3   :  { %1686 = vmatpush.msrb.mxu1 %v2527_v30  ;;  %1748 = vmatpush.msrb.mxu3 %v2547_v38 }
 0x1d4   :  { %2522 = vmatmul.msk.f32.vlgmr.msra.gmra.mxu2 %vm1257_vm3, %v3972_v63  ;;  %1651 = vmatpush.msrb.mxu0 %v2529_v45  ;;  %v2581_v63 = vld [vmem:[%s4595_s3 + $0x330] sm:$0xff]  ;;  %v1915_v45 = vld [vmem:[%s4597_s5 + $0x18] sm:$0xff] }
 0x1d5   :  { %2575 = vmatpush.msk.msra.mxu1 %vm1264_vm2, %v2571_v39  ;;  %1721 = vmatpush.msrb.mxu2 %v2549_v22  ;;  %v2603_v22 = vld [vmem:[%s4597_s5 + $0x90] sm:$0xff] }
 0x1d6   :  { %1749 = vmatpush.msrb.mxu3 %v2546_v58  ;;  %2506 = vmatmul.msk.f32.gmra.mxu0 %vm1257_vm3, %v3953_v21 }
 0x1d7   :  { %1814 = vmatpush.msra.mxu1 %v2570_v55  ;;  %1722 = vmatpush.msrb.mxu2 %v2548_v29  ;;  %v2618_v29 = vld [vmem:[%s4597_s5 + $0xe8] sm:$0xff] }
 0x1d8   :  { %2526 = vmatmul.msk.f32.gmra.mxu3 %vm1257_vm3, %v4059_v17  ;;  %1652 = vmatpush.msrb.mxu0 %v2528_v23  ;;  %v1914_v23 = vld [vmem:[%s4597_s5 + $0x10] sm:$0xff] }
 0x1d9   :  { %1750 = vmatpush.msrb.mxu3 %v2545_v37  ;;  %1723 = vmatpush.msrb.mxu2 %v2547_v38 }
 0x1da   :  { %1815 = vmatpush.msra.mxu1 %v2569_v40  ;;  %1653 = vmatpush.msrb.mxu0 %v2527_v30  ;;  %v2602_v30 = vld [vmem:[%s4597_s5 + $0x88] sm:$0xff] }
 0x1db   :  { %2542 = vmatmul.msk.f32.vlgmr.msrb.gmra.mxu1 %vm1257_vm3, %v3979_v13  ;;  %1751 = vmatpush.msrb.mxu3 %v2544_v41 }
 0x1dc   :  { %1724 = vmatpush.msrb.mxu2 %v2546_v58  ;;  %2572 = vmatpush.msk.msra.mxu0 %vm1264_vm2, %v2571_v39  ;;  %v1913_v39 = vld [vmem:[%s4597_s5 + $0x8] sm:$0xff]  ;;  %v2617_v58 = vld [vmem:[%s4597_s5 + $0xe0] sm:$0xff] }
 0x1dd   :  { %1816 = vmatpush.msra.mxu1 %v2568_v51  ;;  %2592 = vmatpush.msk.msra.mxu3 %vm1264_vm2, %v2588_v43 }
 0x1de   :  { %2523 = vmatmul.msk.f32.gmra.mxu2 %vm1257_vm3, %v3953_v21  ;;  %1782 = vmatpush.msra.mxu0 %v2570_v55  ;;  %v2563_v21 = vld [vmem:[%s4595_s3 + $0x170] sm:$0xff]  ;;  %v2601_v55 = vld [vmem:[%s4597_s5 + $0x80] sm:$0xff] }
 0x1df   :  { %1725 = vmatpush.msrb.mxu2 %v2545_v37  ;;  %1817 = vmatpush.msra.mxu1 %v2567_v47  ;;  %v1912_v37 = vld [vmem:[%s4597_s5] sm:$0xff] }
 0x1e0   :  { %1879 = vmatpush.msra.mxu3 %v2587_v48  ;;  %1783 = vmatpush.msra.mxu0 %v2569_v40  ;;  %v2616_v40 = vld [vmem:[%s4597_s5 + $0xd8] sm:$0xff] }
 0x1e1   :  { %1726 = vmatpush.msrb.mxu2 %v2544_v41  ;;  %1818 = vmatpush.msra.mxu1 %v2566_v49 }
 0x1e2   :  { %1880 = vmatpush.msra.mxu3 %v2586_v53  ;;  %2539 = vmatmul.msk.f32.vlgmr.msrb.gmra.mxu0 %vm1257_vm3, %v4076_v15 }
 0x1e3   :  { %2559 = vmatmul.msk.f32.vlgmr.msrb.gmra.mxu3 %vm1257_vm3, %v3979_v13  ;;  %2589 = vmatpush.msk.msra.mxu2 %vm1264_vm2, %v2588_v43  ;;  %v2630_v43 = vld [vmem:[%s4597_s5 + $0x138] sm:$0xff] }
 0x1e4   :  { %1784 = vmatpush.msra.mxu0 %v2568_v51  ;;  %1819 = vmatpush.msra.mxu1 %v2565_v42  ;;  %v2600_v51 = vld [vmem:[%s4597_s5 + $0x78] sm:$0xff] }
 0x1e5   :  { %1881 = vmatpush.msra.mxu3 %v2585_v56  ;;  %2543 = vmatmul.msk.f32.gmra.mxu1 %vm1257_vm3, %v3956_v6 }
 0x1e6   :  { %1854 = vmatpush.msra.mxu2 %v2587_v48  ;;  %1785 = vmatpush.msra.mxu0 %v2567_v47 }
 0x1e7   :  { %1820 = vmatpush.msra.mxu1 %v2564_v5  ;;  %1882 = vmatpush.msra.mxu3 %v2584_v3 }
 0x1e8   :  { %1855 = vmatpush.msra.mxu2 %v2586_v53  ;;  %1786 = vmatpush.msra.mxu0 %v2566_v49  ;;  %v2615_v49 = vld [vmem:[%s4597_s5 + $0xd0] sm:$0xff] }
 0x1e9   :  { %2556 = vmatmul.msk.f32.vlgmr.msrb.gmra.mxu2 %vm1257_vm3, %v4076_v15  ;;  %1821 = vmatpush.msra.mxu1 %v2563_v21  ;;  %v1918_v15 = vld [vmem:[%s4597_s5 + $0x30] sm:$0xff] }
 0x1ea   :  { %1883 = vmatpush.msra.mxu3 %v2583_v24  ;;  %1856 = vmatpush.msra.mxu2 %v2585_v56  ;;  %v2599_v53 = vld [vmem:[%s4597_s5 + $0x70] sm:$0xff]  ;;  %v2614_v56 = vld [vmem:[%s4597_s5 + $0xc8] sm:$0xff] }
 0x1eb   :  { %1787 = vmatpush.msra.mxu0 %v2565_v42  ;;  %1822 = vmatpush.msra.mxu1 %v2562_v8  ;;  %v2629_v42 = vld [vmem:[%s4597_s5 + $0x130] sm:$0xff] }
 0x1ec   :  { %1884 = vmatpush.msra.mxu3 %v2582_v10  ;;  %2540 = vmatmul.msk.f32.gmra.mxu0 %vm1257_vm3, %v4059_v17 }
 0x1ed   :  { %2560 = vmatmul.msk.f32.gmra.mxu3 %vm1257_vm3, %v3956_v6  ;;  %1857 = vmatpush.msra.mxu2 %v2584_v3  ;;  %v2628_v3 = vld [vmem:[%s4597_s5 + $0x128] sm:$0xff] }
 0x1ee   :  { %1788 = vmatpush.msra.mxu0 %v2564_v5  ;;  %1823 = vmatpush.msra.mxu1 %v2561_v27  ;;  %v2598_v5 = vld [vmem:[%s4597_s5 + $0x68] sm:$0xff] }
 0x1ef   :  { %1885 = vmatpush.msra.mxu3 %v2581_v63  ;;  %2576 = vmatmul.msk.f32.vlgmr.msra.gmra.mxu1 %vm1257_vm3, %v1803_v11 }
 0x1f0   :  { %1858 = vmatpush.msra.mxu2 %v2583_v24  ;;  %1789 = vmatpush.msra.mxu0 %v2563_v21  ;;  %v2613_v21 = vld [vmem:[%s4597_s5 + $0xc0] sm:$0xff] }
 0x1f1   :  { %1886 = vmatpush.msra.mxu3 %v2580_v18  ;;  %2557 = vmatmul.msk.f32.gmra.mxu2 %vm1257_vm3, %v4059_v17  ;;  %v1921_v17 = vld [vmem:[%s4597_s5 + $0x48] sm:$0xff]  ;;  %v2597_v24 = vld [vmem:[%s4597_s5 + $0x60] sm:$0xff] }
 0x1f2   :  { %1859 = vmatpush.msra.mxu2 %v2582_v10  ;;  %1790 = vmatpush.msra.mxu0 %v2562_v8  ;;  %v2627_v8 = vld [vmem:[%s4597_s5 + $0x120] sm:$0xff] }
 0x1f3   :  { %1887 = vmatpush.msra.mxu3 %v2579_v46 }
 0x1f4   :  { %1860 = vmatpush.msra.mxu2 %v2581_v63  ;;  %1791 = vmatpush.msra.mxu0 %v2561_v27  ;;  %v2596_v27 = vld [vmem:[%s4597_s5 + $0x58] sm:$0xff] }
 0x1f5   :  { %1888 = vmatpush.msra.mxu3 %v2578_v16  ;;  %2573 = vmatmul.msk.f32.vlgmr.msra.gmra.mxu0 %vm1257_vm3, %v3979_v13  ;;  %v2626_v63 = vld [vmem:[%s4597_s5 + $0x118] sm:$0xff] }
 0x1f6   :  { %1861 = vmatpush.msra.mxu2 %v2580_v18  ;;  %2593 = vmatmul.msk.f32.vlgmr.msra.gmra.mxu3 %vm1257_vm3, %v1803_v11  ;;  %v2595_v18 = vld [vmem:[%s4597_s5 + $0x50] sm:$0xff] }
 0x1f7   :  { %2577 = vmatmul.msk.f32.gmra.mxu1 %vm1257_vm3, %v1802_v25  ;;  %1976 = vmatpush.msrb.mxu3 %v1921_v17 }
 0x1f8   :  { %1862 = vmatpush.msra.mxu2 %v2579_v46  ;;  %1949 = vmatpush.msrb.mxu0 %v2604_v4  ;;  %v2625_v46 = vld [vmem:[%s4597_s5 + $0x110] sm:$0xff]  ;;  %v2623_v4 = vld [vmem:[%s4597_s5 + $0x100] sm:$0xff] }
 0x1f9   :  { %1977 = vmatpush.msrb.mxu3 %v1920_v26  ;;  %v2610_v26 = vld [vmem:[%s4597_s5 + $0xa8] sm:$0xff] }
 0x1fa   :  { %1863 = vmatpush.msra.mxu2 %v2578_v16  ;;  %1950 = vmatpush.msrb.mxu0 %v2603_v22  ;;  %v2640_v22 = vld [vmem:[%s4597_s5 + $0x178] sm:$0xff] }
 0x1fb   :  { %2590 = vmatmul.msk.f32.vlgmr.msra.gmra.mxu2 %vm1257_vm3, %v3979_v13  ;;  %1978 = vmatpush.msrb.mxu3 %v1919_v12  ;;  %v2642_v12 = vld [vmem:[%s4597_s5 + $0x188] sm:$0xff] }
 0x1fc   :  { %2017 = vmatpush.msrb.mxu2 %v2618_v29  ;;  %1951 = vmatpush.msrb.mxu0 %v2602_v30  ;;  %v2639_v29 = vld [vmem:[%s4597_s5 + $0x170] sm:$0xff] }
 0x1fd   :  { %2574 = vmatmul.msk.f32.gmra.mxu0 %vm1257_vm3, %v3956_v6  ;;  %1979 = vmatpush.msrb.mxu3 %v1918_v15  ;;  %v2624_v15 = vld [vmem:[%s4597_s5 + $0x108] sm:$0xff]  ;;  %v2621_v30 = vld [vmem:[%s4597_s5 + $0xf0] sm:$0xff] }
 0x1fe   :  { %2594 = vmatmul.msk.f32.gmra.mxu3 %vm1257_vm3, %v1802_v25  ;;  %2018 = vmatpush.msrb.mxu2 %v2617_v58  ;;  %v2612_v25 = vld [vmem:[%s4597_s5 + $0xb8] sm:$0xff]  ;;  %v2638_v58 = vld [vmem:[%s4597_s5 + $0x168] sm:$0xff] }
 0x1ff   :  { %1980 = vmatpush.msrb.mxu3 %v1917_v19  ;;  %1952 = vmatpush.msrb.mxu0 %v2601_v55  ;;  %v2609_v19 = vld [vmem:[%s4597_s5 + $0xa0] sm:$0xff] }
 0x200   :  { %2019 = vmatpush.msrb.mxu2 %v2616_v40 }
 0x201   :  { %1981 = vmatpush.msrb.mxu3 %v1916_v44  ;;  %1953 = vmatpush.msrb.mxu0 %v2600_v51  ;;  %v2641_v44 = vld [vmem:[%s4597_s5 + $0x180] sm:$0xff] }
 0x202   :  { %2020 = vmatpush.msrb.mxu2 %v2615_v49 }
 0x203   :  { %2591 = vmatmul.msk.f32.gmra.mxu2 %vm1257_vm3, %v3956_v6  ;;  %1982 = vmatpush.msrb.mxu3 %v1915_v45 }
 0x204   :  { %1954 = vmatpush.msrb.mxu0 %v2599_v53  ;;  %2021 = vmatpush.msrb.mxu2 %v2614_v56 }
 0x205   :  { %1983 = vmatpush.msrb.mxu3 %v1914_v23  ;;  %v2622_v23 = vld [vmem:[%s4597_s5 + $0xf8] sm:$0xff] }
 0x206   :  { %1955 = vmatpush.msrb.mxu0 %v2598_v5  ;;  %2022 = vmatpush.msrb.mxu2 %v2613_v21 }
 0x207   :  { %1984 = vmatpush.msrb.mxu3 %v1913_v39 }
 0x208   :  { %1956 = vmatpush.msrb.mxu0 %v2597_v24  ;;  %2023 = vmatpush.msrb.mxu2 %v2612_v25 }
 0x209   :  { %1985 = vmatpush.msrb.mxu3 %v1912_v37 }
 0x20a   :  { %1957 = vmatpush.msrb.mxu0 %v2596_v27  ;;  %2024 = vmatpush.msrb.mxu2 %v2611_v2 }
 0x20b   :  { %2061 = vmatpush.msra.mxu3 %v2630_v43 }
 0x20c   :  { %1958 = vmatpush.msrb.mxu0 %v2595_v18  ;;  %2025 = vmatpush.msrb.mxu2 %v2610_v26 }
 0x20d   :  { %2062 = vmatpush.msra.mxu3 %v2629_v42 }
 0x20e   :  { %2104 = vmatpush.msra.mxu0 %v2642_v12  ;;  %2026 = vmatpush.msrb.mxu2 %v2609_v19 }
 0x20f   :  { %2063 = vmatpush.msra.mxu3 %v2628_v3 }
 0x210   :  { %2105 = vmatpush.msra.mxu0 %v2641_v44 }
 0x211   :  { %2064 = vmatpush.msra.mxu3 %v2627_v8  ;;  %v2652_v8 = vld [vmem:[%s4596_s4] ss:$0 sm:$0xff] }
 0x212   :  { %2106 = vmatpush.msra.mxu0 %v2640_v22 }
 0x213   :  { %2065 = vmatpush.msra.mxu3 %v2626_v63 }
 0x214   :  { %2107 = vmatpush.msra.mxu0 %v2639_v29 }
 0x215   :  { %2066 = vmatpush.msra.mxu3 %v2625_v46 }
 0x216   :  { %2108 = vmatpush.msra.mxu0 %v2638_v58 }
 0x217   :  { %2067 = vmatpush.msra.mxu3 %v2624_v15 }
 0x219   :  { %2068 = vmatpush.msra.mxu3 %v2623_v4 }
 0x21b   :  { %2069 = vmatpush.msra.mxu3 %v2622_v23 }
 0x21c   :  { %v4243_v31 = vpop.f32.mrf.mxu1 }
 0x21d   :  { %2070 = vmatpush.msra.mxu3 %v2621_v30 }
 0x223   :  { %v4245_v9 = vpop.f32.mrf.mxu0 }
 0x224   :  { %v1318_v55 = vadd.f32 %v4243_v31, %v4245_v9 }
 0x225   :  { %v4251_v50 = vpop.f32.mrf.mxu1 }
 0x229   :  { %v4247_v34 = vpop.f32.mrf.mxu3 }
 0x22b   :  { %v4253_v61 = vpop.f32.mrf.mxu0 }
 0x22c   :  { %v1321_v3 = vadd.f32 %v4251_v50, %v4253_v61  ;;  %v2633_v50 = vld [vmem:[%s4597_s5 + $0x140] sm:$0xff] }
 0x22d   :  { %v4249_v54 = vpop.f32.mrf.mxu2 }
 0x22e   :  { %v4259_v59 = vpop.f32.mrf.mxu1  ;;  %v1371_v37 = vadd.f32 %v4247_v34, %v4249_v54  ;;  %v2636_v54 = vld [vmem:[%s4597_s5 + $0x158] sm:$0xff] }
 0x232   :  { %v4255_v13 = vpop.f32.mrf.mxu3 }
 0x235   :  { %v4261_v57 = vpop.f32.mrf.mxu0 }
 0x236   :  { %v1435_v40 = vadd.f32 %v4259_v59, %v4261_v57  ;;  %v2635_v59 = vld [vmem:[%s4597_s5 + $0x150] sm:$0xff] }
 0x238   :  { %v4257_v62 = vpop.f32.mrf.mxu2  ;;  %v4267_v0 = vpop.f32.mrf.mxu1 }
 0x239   :  { %v1374_v21 = vadd.f32 %v4255_v13, %v4257_v62 }
 0x23c   :  { %v4263_v6 = vpop.f32.mrf.mxu3 }
 0x23f   :  { %v4269_v28 = vpop.f32.mrf.mxu0 }
 0x242   :  { %v4265_v60 = vpop.f32.mrf.mxu2  ;;  %v4275_v32 = vpop.f32.mrf.mxu1 }
 0x243   :  { %v1481_v39 = vadd.f32 %v4263_v6, %v4265_v60  ;;  %v2637_v6 = vld [vmem:[%s4597_s5 + $0x160] sm:$0xff]  ;;  %v1556_v53 = vadd.f32 %v4275_v32, %v1371_v37 }
 0x244   :  { %2109 = vmatpush.msra.mxu0 %v2637_v6  ;;  %v2143_v6 = vld [vmem:[%s4599_s7 + $0x60] sm:$0xff] }
 0x246   :  { %v4271_v52 = vpop.f32.mrf.mxu3  ;;  %2110 = vmatpush.msra.mxu0 %v2636_v54  ;;  %v2136_v54 = vld [vmem:[%s4599_s7 + $0x28] sm:$0xff] }
 0x248   :  { %2111 = vmatpush.msra.mxu0 %v2635_v59  ;;  %v2135_v59 = vld [vmem:[%s4599_s7 + $0x20] sm:$0xff] }
 0x249   :  { %v4277_v33 = vpop.f32.mrf.mxu0 }
 0x24a   :  { %v1524_v31 = vadd.f32 %v4277_v33, %v1318_v55 }
 0x24d   :  { %v4273_v1 = vpop.f32.mrf.mxu2  ;;  %v4298_v20 = vpop.f32.mrf.mxu1 }
 0x24e   :  { %v1557_v61 = vadd.f32 %v4298_v20, %v1374_v21  ;;  %v2189_v21 = vld [vmem:[%s4601_s9 + $0x38] sm:$0xff] }
 0x250   :  { %v4279_v36 = vpop.f32.mrf.mxu3 }
 0x251   :  { %v1621_v51 = vadd.f32 %v4279_v36, %v1481_v39 }
 0x253   :  { %v4300_v7 = vpop.f32.mrf.mxu0 }
 0x254   :  { %v1525_v62 = vadd.f32 %v4300_v7, %v1321_v3 }
 0x257   :  { %v4290_v14 = vpop.f32.mrf.mxu2 }
 0x258   :  { %v4342_v41 = vpop.f32.mrf.mxu1  ;;  %v1596_v9 = vadd.f32 %v4290_v14, %v1435_v40  ;;  %v1484_v14 = vadd.f32 %v4271_v52, %v4273_v1 }
 0x259   :  { %v1694_v57 = vadd.f32 %v4342_v41, %v1556_v53  ;;  %v2634_v41 = vld [vmem:[%s4597_s5 + $0x148] sm:$0xff] }
 0x25a   :  { %2112 = vmatpush.msra.mxu0 %v2634_v41  ;;  %v2140_v53 = vld [vmem:[%s4599_s7 + $0x48] sm:$0xff]  ;;  %v2188_v41 = vld [vmem:[%s4601_s9 + $0x30] sm:$0xff] }
 0x25b   :  { %v4302_v35 = vpop.f32.mrf.mxu3 }
 0x25c   :  { %v1622_v24 = vadd.f32 %v4302_v35, %v1484_v14  ;;  %2113 = vmatpush.msra.mxu0 %v2633_v50  ;;  %v2192_v14 = vld [vmem:[%s4601_s9 + $0x50] sm:$0xf] }
 0x25d   :  { %2647 = vmatpush.msk.msra.mxu2 %vm1264_vm2, %v2192_v14 }
 0x25f   :  { %v4350_v47 = vpop.f32.mrf.mxu0 }
 0x260   :  { %v1661_v36 = vadd.f32 %v4350_v47, %v1524_v31  ;;  %v1438_v47 = vadd.f32 %v4267_v0, %v4269_v28  ;;  %v2139_v31 = vld [vmem:[%s4599_s7 + $0x40] sm:$0xff] }
 0x261   :  { %v4325_v38 = vpop.f32.mrf.mxu2 }
 0x262   :  { %v4393_v11 = vpop.f32.mrf.mxu1  ;;  %v1597_v0 = vadd.f32 %v4325_v38, %v1438_v47  ;;  %v2187_v47 = vld [vmem:[%s4601_s9 + $0x28] sm:$0xff] }
 0x266   :  { %v4352_v48 = vpop.f32.mrf.mxu3 }
 0x267   :  { %v1759_v34 = vadd.f32 %v4352_v48, %v1621_v51 }
 0x269   :  { %v4401_v16 = vpop.f32.mrf.mxu0 }
 0x26a   :  { %v1662_v63 = vadd.f32 %v4401_v16, %v1525_v62 }
 0x26c   :  { %v1728_v10 = vpop.f32.mrf.mxu2  ;;  %v1825_v60 = vpop.f32.mrf.mxu1 }
 0x26d   :  { %v1734_v32 = vadd.f32 %v1728_v10, %v1596_v9  ;;  %v1831_v48 = vadd.f32 %v1825_v60, %v1694_v57  ;;  %v1695_v10 = vadd.f32 %v4393_v11, %v1557_v61  ;;  %v2145_v11 = vld [vmem:[%s4599_s7 + $0x70] sm:$0xff]  ;;  %v2142_v60 = vld [vmem:[%s4599_s7 + $0x58] sm:$0xff] }
 0x26e   :  { %2158 = vmatpush.msrb.mxu1 %v2145_v11  ;;  %v2138_v9 = vld [vmem:[%s4599_s7 + $0x38] sm:$0xff] }
 0x26f   :  { %v2134_v57 = vld [vmem:[%s4599_s7 + $0x18] sm:$0xff] }
 0x270   :  { %v4403_v17 = vpop.f32.mrf.mxu3  ;;  %v2185_v61 = vld [vmem:[%s4601_s9 + $0x18] sm:$0xff] }
 0x271   :  { %v1760_v28 = vadd.f32 %v4403_v17, %v1622_v24 }
 0x272   :  { %v1793_v49 = vpop.f32.mrf.mxu0 }
 0x273   :  { %v1799_v56 = vadd.f32 %v1793_v49, %v1661_v36  ;;  %v2141_v49 = vld [vmem:[%s4599_s7 + $0x50] sm:$0xff] }
 0x274   :  { %v1731_v45 = vpop.f32.mrf.mxu2  ;;  %v1828_v25 = vpop.f32.mrf.mxu1  ;;  %v2133_v36 = vld [vmem:[%s4599_s7 + $0x10] sm:$0xff] }
 0x275   :  { %v1735_v2 = vadd.f32 %v1731_v45, %v1597_v0  ;;  %v1832_v20 = vadd.f32 %v1828_v25, %v1695_v10  ;;  %v2653_v0 = vld [vmem:[%s4598_s6] ss:$0 sm:$0xff] }
 0x279   :  { %v1890_v43 = vpop.f32.mrf.mxu3 }
 0x27a   :  { %v1896_v42 = vadd.f32 %v1890_v43, %v1759_v34  ;;  %v1796_v27 = vpop.f32.mrf.mxu0  ;;  %v2144_v43 = vld [vmem:[%s4599_s7 + $0x68] sm:$0xff]  ;;  %v2137_v34 = vld [vmem:[%s4599_s7 + $0x30] sm:$0xff] }
 0x27b   :  { %v1800_v12 = vadd.f32 %v1796_v27, %v1662_v63  ;;  %2159 = vmatpush.msrb.mxu1 %v2144_v43 }
 0x27c   :  { %v1901_v52 = vmax.f32 %v1831_v48, %v1896_v42  ;;  %v2131_v42 = vld [vmem:[%s4599_s7] sm:$0xff]  ;;  %v2191_v48 = vld [vmem:[%s4601_s9 + $0x48] sm:$0xff] }
 0x27d   :  { %2160 = vmatpush.msrb.mxu1 %v2143_v6  ;;  %2212 = vmatpush.msra.mxu2 %v2191_v48 }
 0x27e   :  { %v1865_v33 = vpop.f32.mrf.mxu2 }
 0x27f   :  { %v1871_v5 = vadd.f32 %v1865_v33, %v1734_v32  ;;  %2161 = vmatpush.msrb.mxu1 %v2142_v60  ;;  %v2132_v32 = vld [vmem:[%s4599_s7 + $0x8] sm:$0xff] }
 0x281   :  { %v1899_v1 = vmax.f32 %v1799_v56, %v1871_v5  ;;  %v1893_v13 = vpop.f32.mrf.mxu3  ;;  %2162 = vmatpush.msrb.mxu1 %v2141_v49  ;;  %v2190_v5 = vld [vmem:[%s4601_s9 + $0x40] sm:$0xff] }
 0x282   :  { %v1897_v46 = vadd.f32 %v1893_v13, %v1760_v28  ;;  %2213 = vmatpush.msra.mxu2 %v2190_v5 }
 0x283   :  { %v1903_v35 = vmax.f32 %v1899_v1, %v1901_v52  ;;  %2163 = vmatpush.msrb.mxu1 %v2140_v53  ;;  %v2186_v1 = vld [vmem:[%s4601_s9 + $0x20] sm:$0xff] }
 0x284   :  { %v1902_v38 = vmax.f32 %v1832_v20, %v1897_v46  ;;  %2214 = vmatpush.msra.mxu2 %v2189_v21 }
 0x285   :  { %v1908_v18 = vadd.f32 %v2652_v8, %v1903_v35  ;;  %2164 = vmatpush.msrb.mxu1 %v2139_v31 }
 0x286   :  { %v1868_v26 = vpop.f32.mrf.mxu2  ;;  %2215 = vmatpush.msra.mxu2 %v2188_v41 }
 0x287   :  { %v1910_v7 = vmax.f32 %v1908_v18, 0.0  ;;  %v1872_v15 = vadd.f32 %v1868_v26, %v1735_v2  ;;  %2165 = vmatpush.msrb.mxu1 %v2138_v9 }
 0x288   :  { %2216 = vmatpush.msra.mxu2 %v2187_v47 }
 0x289   :  { %v1900_v19 = vmax.f32 %v1800_v12, %v1872_v15  ;;  %2607 = vmatmul.msk.f32.vlgmr.msrb.gmra.mxu3 %vm1938_vm5, %v1910_v7  ;;  %v1935_v4 = vrot.slane %v1910_v7, 1  ;;  %v2004_v22 = vrot.slane %v1910_v7, 2  ;;  %v2048_v58 = vrot.slane %v1910_v7, 3  ;;  %2166 = vmatpush.msrb.mxu1 %v2137_v34  ;;  %v2184_v15 = vld [vmem:[%s4601_s9 + $0x10] sm:$0xff] }
 0x28a   :  { %v2091_v40 = vrot.slane %v1910_v7, 4  ;;  %2217 = vmatpush.msra.mxu2 %v2186_v1 }
 0x28b   :  { %v1904_v17 = vmax.f32 %v1900_v19, %v1902_v38  ;;  %2167 = vmatpush.msrb.mxu1 %v2136_v54  ;;  %v2183_v38 = vld [vmem:[%s4601_s9 + $0x8] sm:$0xff]  ;;  %v2182_v19 = vld [vmem:[%s4601_s9] sm:$0xff]  ;;  %s2682_s9 = smov [#allocation2]  }
 0x28c   :  { %2218 = vmatpush.msra.mxu2 %v2185_v61 }
 0x28d   :  { %v1909_v44 = vadd.f32 %v2652_v8, %v1904_v17  ;;  %2168 = vmatpush.msrb.mxu1 %v2135_v59  ;;  %v2654_v17 = vld [vmem:[%s4600_s8] ss:$0 sm:$0xff]  ;;  %s2237_s8 = sshll.u32 %s2682_s9, 4  ;;  %s2238_s8 = int_to_ptr.vmem [resolvable:$true] %s2237_s8 }
 0x28e   :  { %2219 = vmatpush.msra.mxu2 %v2184_v15 }
 0x28f   :  { %v1911_v16 = vmax.f32 %v1909_v44, 0.0  ;;  %2169 = vmatpush.msrb.mxu1 %v2134_v57 }
 0x290   :  { %2220 = vmatpush.msra.mxu2 %v2183_v38 }
 0x291   :  { %2608 = vmatmul.msk.f32.gmra.mxu3 %vm1938_vm5, %v1911_v16  ;;  %v1936_v45 = vrot.slane %v1911_v16, 1  ;;  %v2005_v23 = vrot.slane %v1911_v16, 2  ;;  %v2049_v39 = vrot.slane %v1911_v16, 3  ;;  %v2092_v37 = vrot.slane %v1911_v16, 4  ;;  %2170 = vmatpush.msrb.mxu1 %v2133_v36 }
 0x292   :  { %2221 = vmatpush.msra.mxu2 %v2182_v19 }
 0x293   :  { %v1937_v29 = vsel %vm248_vm1, %v1935_v4, %v1936_v45  ;;  %v2006_v30 = vsel %vm1663_vm4, %v2004_v22, %v2005_v23  ;;  %v2050_v55 = vsel %vm2047_vm6, %v2048_v58, %v2049_v39  ;;  %v2093_v51 = vsel %vm1264_vm2, %v2091_v40, %v2092_v37  ;;  %2171 = vmatpush.msrb.mxu1 %v2132_v32 }
 0x294   :  { %2605 = vmatmul.msk.f32.vlgmr.msrb.gmra.mxu0 %vm1938_vm5, %v1937_v29  ;;  %2619 = vmatmul.msk.f32.vlgmr.msrb.gmra.mxu2 %vm1938_vm5, %v2006_v30 }
 0x295   :  { %2172 = vmatpush.msrb.mxu1 %v2131_v42 }
 0x299   :  { %2631 = vmatmul.msk.f32.vlgmr.msra.gmra.mxu3 %vm1938_vm5, %v2050_v55 }
 0x29c   :  { %2606 = vmatmul.msk.f32.gmra.mxu0 %vm1938_vm5, %v1936_v45  ;;  %2620 = vmatmul.msk.f32.gmra.mxu2 %vm1938_vm5, %v2005_v23  ;;  %v2655_v23 = vld [vmem:[%s4602_s10] ss:$0 sm:$0xff] }
 0x2a1   :  { %2632 = vmatmul.msk.f32.gmra.mxu3 %vm1938_vm5, %v2049_v39 }
 0x2a4   :  { %2643 = vmatmul.msk.f32.vlgmr.msra.gmra.mxu0 %vm1938_vm5, %v2093_v51 }
 0x2ac   :  { %2644 = vmatmul.msk.f32.gmra.mxu0 %vm1938_vm5, %v2092_v37 }
 0x30c   :  { %v1987_v33 = vpop.f32.mrf.mxu3 }
 0x311   :  { %v1960_v56 = vpop.f32.mrf.mxu0 }
 0x312   :  { %v1988_v8 = vadd.f32 %v1987_v33, %v1960_v56 }
 0x314   :  { %v1990_v3 = vpop.f32.mrf.mxu3 }
 0x317   :  { %v2028_v24 = vpop.f32.mrf.mxu2 }
 0x318   :  { %v2034_v13 = vadd.f32 %v2028_v24, %v1988_v8 }
 0x319   :  { %v1963_v52 = vpop.f32.mrf.mxu0 }
 0x31a   :  { %v1991_v25 = vadd.f32 %v1990_v3, %v1963_v52 }
 0x31c   :  { %v2072_v50 = vpop.f32.mrf.mxu3 }
 0x31d   :  { %v2078_v62 = vadd.f32 %v2072_v50, %v2034_v13 }
 0x31f   :  { %v2031_v10 = vpop.f32.mrf.mxu2 }
 0x320   :  { %v2035_v2 = vadd.f32 %v2031_v10, %v1991_v25 }
 0x321   :  { %v2115_v28 = vpop.f32.mrf.mxu0 }
 0x322   :  { %v2121_v35 = vadd.f32 %v2115_v28, %v2078_v62 }
 0x324   :  { %v2127_v27 = vadd.f32 %v2653_v0, %v2121_v35  ;;  %v2075_v63 = vpop.f32.mrf.mxu3 }
 0x325   :  { %v2079_v46 = vadd.f32 %v2075_v63, %v2035_v2 }
 0x326   :  { %v2129_v18 = vmax.f32 %v2127_v27, 0.0 }
 0x328   :  { %2645 = vmatmul.msk.f32.vlgmr.msrb.gmra.mxu1 %vm2150_vm7, %v2129_v18 }
 0x329   :  { %v2118_v26 = vpop.f32.mrf.mxu0 }
 0x32a   :  { %v2122_v20 = vadd.f32 %v2118_v26, %v2079_v46 }
 0x32c   :  { %v2128_v12 = vadd.f32 %v2653_v0, %v2122_v20 }
 0x32e   :  { %v2130_v7 = vmax.f32 %v2128_v12, 0.0 }
 0x330   :  { %2646 = vmatmul.msk.f32.gmra.mxu1 %vm2150_vm7, %v2130_v7 }
 0x3a5   :  { %v2174_v11 = vpop.f32.mrf.mxu1 }
 0x3a6   :  { %v2175_v44 = vadd.f32 %v2654_v17, %v2174_v11 }
 0x3a8   :  { %v2180_v16 = vmax.f32 %v2175_v44, 0.0 }
 0x3aa   :  { %2648 = vmatmul.msk.f32.vlgmr.msra.gmra.mxu2 %vm1257_vm3, %v2180_v16 }
 0x3ad   :  { %v2177_v4 = vpop.f32.mrf.mxu1 }
 0x3ae   :  { %v2178_v45 = vadd.f32 %v2654_v17, %v2177_v4 }
 0x3b0   :  { %v2181_v22 = vmax.f32 %v2178_v45, 0.0 }
 0x3b2   :  { %2649 = vmatmul.msk.f32.gmra.mxu2 %vm1257_vm3, %v2181_v22 }
 0x42d   :  { %v2223_v29 = vpop.f32.mrf.mxu2 }
 0x42e   :  { %v2224_v30 = vadd.f32 %v2655_v23, %v2223_v29 }
 0x430   :  { %2230 = vst.msk [vmem:[#allocation2] sm:$0x1] %vm2229_vm8, %v2224_v30 }
 0x435   :  { %v2226_v39 = vpop.f32.mrf.mxu2 }
 0x436   :  { %v2227_v58 = vadd.f32 %v2655_v23, %v2226_v39 }
 0x438   :  { %2231 = vst.msk [vmem:[#allocation2 + $0x1] sm:$0x1] %vm2229_vm8, %v2227_v58 }
 0x439   :  { %2242 = dma.vmem_to_hbm [thread:$0]  %s2238_s8, 32, %s2240_s17, [#allocation3]  }
 0x43a   :  { %2680 = dma.done.wait [#allocation3], 32  }
 0x43b   :  { %2681 = vsyncadd [#allocation3], 4294967264 }
 0x43c   :  { %2247 = vsyncpa [#allocation3], 1 }

</bundles_post_ra>
